<compile_context>
chip_gen: v5e
topology: v5e:2x2
jax: 0.10.0
libtpu: 0.0.40
codegen_flags: <defaults>
</compile_context>

<pallas_src>
import functools

import jax
import jax.numpy as jnp
from jax.experimental import pallas as pl
from jax.experimental.pallas import tpu as pltpu

SOS_TOKEN = 1


# --------------------------------------------------------------------------
# Pallas kernel: the whole greedy decode loop in one invocation (grid=()).
# --------------------------------------------------------------------------
def _greedy_decode_kernel(H, V, max_length,
                          emb_ref, wih_ref, whh_ref, bih_ref, bhh_ref,
                          mem_ref, wc_ref, bc_ref, wo_ref, bo_ref, h0_ref,
                          tokens_ref, scores_ref,
                          hc_ref):
    # Constant operands: load into vregs once, reuse every decode step.
    wih = wih_ref[...]
    whh = whh_ref[...]
    bih = bih_ref[...]
    bhh = bhh_ref[...]
    mem = mem_ref[...]                                                     # (Tm, H)
    wc = wc_ref[...]
    bc = bc_ref[...]
    wo = wo_ref[...]
    bo = bo_ref[...]
    # Hoisted out of the loop (JAX does not CSE broadcast_in_dim / iota).
    lane = jax.lax.broadcasted_iota(jnp.int32, (1, V), 1)

    def step_fn(step, carry):
        h, tok = carry

        # Embedding lookup: dynamic row load on the leading (untiled) dim.
        x = emb_ref[tok]                                                   # (1, H)

        # GRU cell (torch gate order r, z, n).
        gi = jnp.dot(x, wih, preferred_element_type=jnp.float32) + bih     # (1, 3H)
        gh = jnp.dot(h, whh, preferred_element_type=jnp.float32) + bhh     # (1, 3H)
        r = jax.nn.sigmoid(gi[:, 0:H] + gh[:, 0:H])
        z = jax.nn.sigmoid(gi[:, H:2 * H] + gh[:, H:2 * H])
        n = jnp.tanh(gi[:, 2 * H:3 * H] + r * gh[:, 2 * H:3 * H])
        h_new = (1.0 - z) * n + z * h                                      # (1, H)

        # Luong "dot" attention over the memory the spec hands to the decoder.
        energies = jax.lax.dot_general(h_new, mem, (((1,), (1,)), ((), ())),
                                       preferred_element_type=jnp.float32)  # (1, Tm)
        energies = energies - jnp.max(energies, axis=1, keepdims=True)
        ew = jnp.exp(energies)
        # approx=False here: the attention weights feed the argmax'd token,
        # which the test compares exactly against the f32 reference; the
        # reciprocal is a single (1,1) element so approx buys nothing.
        attn = ew * pl.reciprocal(jnp.sum(ew, axis=1, keepdims=True),
                                  approx=False)
        context = jnp.dot(attn, mem, preferred_element_type=jnp.float32)    # (1, H)

        # concat([h, context]) @ Wc as ONE (1,2H)@(2H,H) matmul, staged
        # through a small VMEM scratch.
        hc_ref[:, 0:H] = h_new
        hc_ref[:, H:2 * H] = context
        concat_out = jnp.tanh(
            jnp.dot(hc_ref[...], wc, preferred_element_type=jnp.float32) + bc)

        logits = jnp.dot(concat_out, wo,
                         preferred_element_type=jnp.float32) + bo           # (1, V)
        shifted = logits - jnp.max(logits, axis=1, keepdims=True)

        # torch.max(softmax(logits), dim=1) without normalizing the probs:
        #   index = first lane whose shifted logit is exactly 0,
        #   value = exp(0) / sum(exp(shifted)) = 1 / denom.
        tok_new = jnp.min(jnp.where(shifted == 0.0, lane, V)).astype(jnp.int32)
        denom = jnp.sum(jnp.exp(shifted), axis=1, keepdims=True)            # (1, 1)
        score = jnp.max(pl.reciprocal(denom, approx=True))                  # scalar (EUP)

        tokens_ref[step] = tok_new
        scores_ref[step] = score
        return h_new, tok_new

    jax.lax.fori_loop(0, max_length, step_fn,
                      (h0_ref[...], jnp.int32(SOS_TOKEN)),
                      unroll=True)   # short fixed trip count -> full unroll


def greedy_decode_pallas(dec, emb, memory, h0, max_length):
    H = h0.shape[1]
    V = emb.shape[0]
    # (V, 1, H): dynamic token index lands on the leading, untiled dim.
    emb3 = emb.reshape(V, 1, H)

    operands = (emb3, dec["wih"], dec["whh"], dec["bih"], dec["bhh"],
                memory, dec["wc"], dec["bc"], dec["wo"], dec["bo"], h0)

    kernel = functools.partial(_greedy_decode_kernel, H, V, max_length)

    # TODO(synk): at chatbot scale (V~8K, H=500) keep emb/wo in HBM
    # (memory_space=pl.ANY, per-row DMA) or cast them to bf16 to fit v7x/v5e
    # scoped VMEM; batch multiple sequences to use the MXU meaningfully.
    tokens, scores = pl.pallas_call(
        kernel,
        in_specs=[pl.BlockSpec(memory_space=pltpu.MemorySpace.VMEM)
                  for _ in operands],
        out_specs=(pl.BlockSpec(memory_space=pltpu.MemorySpace.SMEM),
                   pl.BlockSpec(memory_space=pltpu.MemorySpace.SMEM)),
        out_shape=(jax.ShapeDtypeStruct((max_length,), jnp.int32),
                   jax.ShapeDtypeStruct((max_length,), jnp.float32)),
        scratch_shapes=[pltpu.VMEM((1, 2 * H), jnp.float32)],
    )(*operands)
    return tokens, scores


# --------------------------------------------------------------------------
# Plain-JAX glue: encoder (bidirectional GRU, run once) + reference decoder.
# --------------------------------------------------------------------------
def gru_cell(x, h, p, H):
    gi = x @ p["wih"] + p["bih"]
    gh = h @ p["whh"] + p["bhh"]
    r = jax.nn.sigmoid(gi[:, 0:H] + gh[:, 0:H])
    z = jax.nn.sigmoid(gi[:, H:2 * H] + gh[:, H:2 * H])
    n = jnp.tanh(gi[:, 2 * H:3 * H] + r * gh[:, 2 * H:3 * H])
    return (1.0 - z) * n + z * h


def run_encoder(enc, emb, input_seq, input_length, H):
    # TODO(synk): pack_padded_sequence masking omitted (batch=1, full-length input).
    del input_length
    embedded = emb[input_seq[:, 0]]                       # (T, H)
    h0 = jnp.zeros((1, H), jnp.float32)

    def step(p):
        def f(h, x):
            h_new = gru_cell(x[None, :], h, p, H)
            return h_new, h_new[0]
        return f

    h_fwd, out_fwd = jax.lax.scan(step(enc["fwd"]), h0, embedded)
    h_bwd, out_bwd = jax.lax.scan(step(enc["bwd"]), h0, embedded[::-1])
    encoder_hidden = jnp.stack([h_fwd, h_bwd], axis=0)    # (2, 1, H) = (dirs, batch, H)
    encoder_outputs = (out_fwd + out_bwd[::-1])[:, None, :]
    return encoder_outputs, encoder_hidden


def greedy_search_decoder(params, input_seq, input_length, max_length, n_layers=1):
    """Pallas implementation of greedySearchDecoder.forward -> (all_tokens, all_scores)."""
    emb = params["embedding"]
    H = params["hidden_size"]
    _, encoder_hidden = run_encoder(params["encoder"], emb, input_seq, input_length, H)
    decoder_hidden = encoder_hidden[:n_layers]                      # (1, 1, H)
    memory = encoder_hidden.reshape(encoder_hidden.shape[0], H)     # decoder attends over
    h0 = decoder_hidden.reshape(1, H)                               # the hidden it is given
    return greedy_decode_pallas(params["decoder"], emb, memory, h0, max_length)


def greedy_search_decoder_ref(params, input_seq, input_length, max_length, n_layers=1):
    """Pure-JAX reference of the same forward pass."""
    emb = params["embedding"]
    H = params["hidden_size"]
    _, encoder_hidden = run_encoder(params["encoder"], emb, input_seq, input_length, H)
    memory = encoder_hidden.reshape(encoder_hidden.shape[0], H)
    h = encoder_hidden[:n_layers].reshape(1, H)
    dec = params["decoder"]
    tok = SOS_TOKEN
    tokens, scores = [], []
    for _ in range(max_length):
        x = emb[tok][None, :]
        h = gru_cell(x, h, dec, H)
        a = jax.nn.softmax(h @ memory.T, axis=1)
        c = a @ memory
        co = jnp.tanh(jnp.concatenate([h, c], axis=1) @ dec["wc"] + dec["bc"])
        probs = jax.nn.softmax(co @ dec["wo"] + dec["bo"], axis=1)
        tok = int(jnp.argmax(probs[0]))
        tokens.append(tok)
        scores.append(float(jnp.max(probs)))
    return jnp.array(tokens, jnp.int32), jnp.array(scores, jnp.float32)


def init_params(key, V, H, scale=0.3):
    ks = jax.random.split(key, 17)
    rnd = lambda k, s: scale * jax.random.normal(k, s, jnp.float32)
    return {
        "hidden_size": H,
        "embedding": rnd(ks[0], (V, H)),
        "encoder": {
            "fwd": {"wih": rnd(ks[1], (H, 3 * H)), "whh": rnd(ks[2], (H, 3 * H)),
                    "bih": rnd(ks[3], (1, 3 * H)), "bhh": rnd(ks[4], (1, 3 * H))},
            "bwd": {"wih": rnd(ks[5], (H, 3 * H)), "whh": rnd(ks[6], (H, 3 * H)),
                    "bih": rnd(ks[7], (1, 3 * H)), "bhh": rnd(ks[8], (1, 3 * H))},
        },
        "decoder": {
            "wih": rnd(ks[9], (H, 3 * H)), "whh": rnd(ks[10], (H, 3 * H)),
            "bih": rnd(ks[11], (1, 3 * H)), "bhh": rnd(ks[12], (1, 3 * H)),
            "wc": rnd(ks[13], (2 * H, H)), "bc": rnd(ks[14], (1, H)),
            "wo": rnd(ks[15], (H, V)), "bo": rnd(ks[16], (1, V)),
        },
    }


if __name__ == "__main__":
    V, H, T_IN, MAX_LENGTH = 64, 32, 8, 10
    key = jax.random.PRNGKey(0)
    pkey, skey = jax.random.split(key)
    params = init_params(pkey, V, H)

    input_seq = jax.random.randint(skey, (T_IN, 1), 2, V, dtype=jnp.int32)
    input_length = jnp.array([T_IN], jnp.int32)

    tokens, scores = greedy_search_decoder(params, input_seq, input_length, MAX_LENGTH)
    tokens, scores = jax.block_until_ready((tokens, scores))

    ref_tokens, ref_scores = greedy_search_decoder_ref(
        params, input_seq, input_length, MAX_LENGTH)

    assert tokens.shape == (MAX_LENGTH,) and tokens.dtype == jnp.int32
    assert scores.shape == (MAX_LENGTH,) and scores.dtype == jnp.float32
    assert jnp.array_equal(tokens, ref_tokens), (tokens, ref_tokens)
    assert jnp.allclose(scores, ref_scores, atol=1e-2), (scores, ref_scores)

    print("KERNEL_OK")
</pallas_src>

<mosaic_0001>
module attributes {stable_mosaic.version = 11 : i64} {
  func.func @_greedy_decode_kernel(%arg0: memref<64x1x32xf32, #tpu.memory_space<vmem>>, %arg1: memref<32x96xf32, #tpu.memory_space<vmem>>, %arg2: memref<32x96xf32, #tpu.memory_space<vmem>>, %arg3: memref<1x96xf32, #tpu.memory_space<vmem>>, %arg4: memref<1x96xf32, #tpu.memory_space<vmem>>, %arg5: memref<2x32xf32, #tpu.memory_space<vmem>>, %arg6: memref<64x32xf32, #tpu.memory_space<vmem>>, %arg7: memref<1x32xf32, #tpu.memory_space<vmem>>, %arg8: memref<32x64xf32, #tpu.memory_space<vmem>>, %arg9: memref<1x64xf32, #tpu.memory_space<vmem>>, %arg10: memref<1x32xf32, #tpu.memory_space<vmem>>, %arg11: memref<10xi32, #tpu.memory_space<smem>>, %arg12: memref<10xf32, #tpu.memory_space<smem>>, %arg13: memref<1x64xf32, #tpu.memory_space<vmem>>) attributes {dimension_semantics = [], scalar_prefetch = 0 : i64, scratch_operands = 1 : i64, tpu.core_type = #tpu.core_type<tc>} {
    %c0 = arith.constant 0 : index
    %c0_0 = arith.constant 0 : index
    %0 = vector.load %arg1[%c0, %c0_0] : memref<32x96xf32, #tpu.memory_space<vmem>>, vector<32x96xf32>
    %c0_1 = arith.constant 0 : index
    %c0_2 = arith.constant 0 : index
    %1 = vector.load %arg2[%c0_1, %c0_2] : memref<32x96xf32, #tpu.memory_space<vmem>>, vector<32x96xf32>
    %c0_3 = arith.constant 0 : index
    %c0_4 = arith.constant 0 : index
    %2 = vector.load %arg3[%c0_3, %c0_4] : memref<1x96xf32, #tpu.memory_space<vmem>>, vector<1x96xf32>
    %c0_5 = arith.constant 0 : index
    %c0_6 = arith.constant 0 : index
    %3 = vector.load %arg4[%c0_5, %c0_6] : memref<1x96xf32, #tpu.memory_space<vmem>>, vector<1x96xf32>
    %c0_7 = arith.constant 0 : index
    %c0_8 = arith.constant 0 : index
    %4 = vector.load %arg5[%c0_7, %c0_8] : memref<2x32xf32, #tpu.memory_space<vmem>>, vector<2x32xf32>
    %c0_9 = arith.constant 0 : index
    %c0_10 = arith.constant 0 : index
    %5 = vector.load %arg6[%c0_9, %c0_10] : memref<64x32xf32, #tpu.memory_space<vmem>>, vector<64x32xf32>
    %c0_11 = arith.constant 0 : index
    %c0_12 = arith.constant 0 : index
    %6 = vector.load %arg7[%c0_11, %c0_12] : memref<1x32xf32, #tpu.memory_space<vmem>>, vector<1x32xf32>
    %c0_13 = arith.constant 0 : index
    %c0_14 = arith.constant 0 : index
    %7 = vector.load %arg8[%c0_13, %c0_14] : memref<32x64xf32, #tpu.memory_space<vmem>>, vector<32x64xf32>
    %c0_15 = arith.constant 0 : index
    %c0_16 = arith.constant 0 : index
    %8 = vector.load %arg9[%c0_15, %c0_16] : memref<1x64xf32, #tpu.memory_space<vmem>>, vector<1x64xf32>
    %9 = tpu.iota {dimensions = array<i32: 1>} : vector<1x64xi32>
    %c0_17 = arith.constant 0 : index
    %c0_18 = arith.constant 0 : index
    %10 = vector.load %arg10[%c0_17, %c0_18] : memref<1x32xf32, #tpu.memory_space<vmem>>, vector<1x32xf32>
    %c1_i32 = arith.constant 1 : i32
    %c0_i32 = arith.constant 0 : i32
    %11 = arith.index_cast %c1_i32 : i32 to index
    %c0_19 = arith.constant 0 : index
    %c0_20 = arith.constant 0 : index
    %12 = vector.load %arg0[%11, %c0_19, %c0_20] : memref<64x1x32xf32, #tpu.memory_space<vmem>>, vector<1x1x32xf32>
    %13 = vector.shape_cast %12 : vector<1x1x32xf32> to vector<1x32xf32>
    %cst = arith.constant dense<0.000000e+00> : vector<1x96xf32>
    %14 = tpu.matmul %13, %0, %cst {dimension_numbers = #tpu.dot_dimension_numbers<[1], [0], [0], [1], [0, 0, 1, 1], [], []>} : vector<1x32xf32>, vector<32x96xf32>, vector<1x96xf32> -> vector<1x96xf32>
    %15 = arith.addf %14, %2 : vector<1x96xf32>
    %cst_21 = arith.constant dense<0.000000e+00> : vector<1x96xf32>
    %16 = tpu.matmul %10, %1, %cst_21 {dimension_numbers = #tpu.dot_dimension_numbers<[1], [0], [0], [1], [0, 0, 1, 1], [], []>} : vector<1x32xf32>, vector<32x96xf32>, vector<1x96xf32> -> vector<1x96xf32>
    %17 = arith.addf %16, %3 : vector<1x96xf32>
    %18 = vector.extract_strided_slice %15 {offsets = [0, 0], sizes = [1, 32], strides = [1, 1]} : vector<1x96xf32> to vector<1x32xf32>
    %19 = vector.extract_strided_slice %17 {offsets = [0, 0], sizes = [1, 32], strides = [1, 1]} : vector<1x96xf32> to vector<1x32xf32>
    %20 = arith.addf %18, %19 : vector<1x32xf32>
    %21 = arith.negf %20 : vector<1x32xf32>
    %22 = math.exp %21 : vector<1x32xf32>
    %cst_22 = arith.constant 1.000000e+00 : f32
    %23 = vector.broadcast %cst_22 : f32 to vector<1x32xf32>
    %24 = arith.addf %23, %22 : vector<1x32xf32>
    %25 = arith.divf %23, %24 : vector<1x32xf32>
    %26 = vector.extract_strided_slice %15 {offsets = [0, 32], sizes = [1, 32], strides = [1, 1]} : vector<1x96xf32> to vector<1x32xf32>
    %27 = vector.extract_strided_slice %17 {offsets = [0, 32], sizes = [1, 32], strides = [1, 1]} : vector<1x96xf32> to vector<1x32xf32>
    %28 = arith.addf %26, %27 : vector<1x32xf32>
    %29 = arith.negf %28 : vector<1x32xf32>
    %30 = math.exp %29 : vector<1x32xf32>
    %cst_23 = arith.constant 1.000000e+00 : f32
    %31 = vector.broadcast %cst_23 : f32 to vector<1x32xf32>
    %32 = arith.addf %31, %30 : vector<1x32xf32>
    %33 = arith.divf %31, %32 : vector<1x32xf32>
    %34 = vector.extract_strided_slice %15 {offsets = [0, 64], sizes = [1, 32], strides = [1, 1]} : vector<1x96xf32> to vector<1x32xf32>
    %35 = vector.extract_strided_slice %17 {offsets = [0, 64], sizes = [1, 32], strides = [1, 1]} : vector<1x96xf32> to vector<1x32xf32>
    %36 = arith.mulf %25, %35 : vector<1x32xf32>
    %37 = arith.addf %34, %36 : vector<1x32xf32>
    %38 = math.tanh %37 : vector<1x32xf32>
    %cst_24 = arith.constant 1.000000e+00 : f32
    %39 = vector.broadcast %cst_24 : f32 to vector<1x32xf32>
    %40 = arith.subf %39, %33 : vector<1x32xf32>
    %41 = arith.mulf %40, %38 : vector<1x32xf32>
    %42 = arith.mulf %33, %10 : vector<1x32xf32>
    %43 = arith.addf %41, %42 : vector<1x32xf32>
    %cst_25 = arith.constant dense<0.000000e+00> : vector<1x2xf32>
    %44 = tpu.matmul %43, %4, %cst_25 {dimension_numbers = #tpu.dot_dimension_numbers<[1], [1], [0], [0], [0, 0, 1, 0], [], []>} : vector<1x32xf32>, vector<2x32xf32>, vector<1x2xf32> -> vector<1x2xf32>
    %cst_26 = arith.constant dense<0xFF800000> : vector<1xf32>
    %45 = vector.multi_reduction <maximumf>, %44, %cst_26 [1] : vector<1x2xf32> to vector<1xf32>
    %46 = vector.shape_cast %45 : vector<1xf32> to vector<1x1xf32>
    %47 = vector.broadcast %46 : vector<1x1xf32> to vector<1x2xf32>
    %48 = arith.subf %44, %47 : vector<1x2xf32>
    %49 = math.exp %48 : vector<1x2xf32>
    %cst_27 = arith.constant dense<0.000000e+00> : vector<1xf32>
    %50 = vector.multi_reduction <add>, %49, %cst_27 [1] : vector<1x2xf32> to vector<1xf32>
    %51 = vector.shape_cast %50 : vector<1xf32> to vector<1x1xf32>
    %52 = tpu.reciprocal %51 : vector<1x1xf32> -> vector<1x1xf32>
    %53 = vector.broadcast %52 : vector<1x1xf32> to vector<1x2xf32>
    %54 = arith.mulf %49, %53 : vector<1x2xf32>
    %cst_28 = arith.constant dense<0.000000e+00> : vector<1x32xf32>
    %55 = tpu.matmul %54, %4, %cst_28 {dimension_numbers = #tpu.dot_dimension_numbers<[1], [0], [0], [1], [0, 0, 1, 1], [], []>} : vector<1x2xf32>, vector<2x32xf32>, vector<1x32xf32> -> vector<1x32xf32>
    %c0_29 = arith.constant 0 : index
    %c0_30 = arith.constant 0 : index
    %56 = vector.load %arg13[%c0_29, %c0_30] : memref<1x64xf32, #tpu.memory_space<vmem>>, vector<1x32xf32>
    tpu.vector_store %arg13[%c0_29, %c0_30], %43 {strides = array<i32>} : memref<1x64xf32, #tpu.memory_space<vmem>>, vector<1x32xf32>,
    %c0_31 = arith.constant 0 : index
    %c32 = arith.constant 32 : index
    %57 = vector.load %arg13[%c0_31, %c32] : memref<1x64xf32, #tpu.memory_space<vmem>>, vector<1x32xf32>
    tpu.vector_store %arg13[%c0_31, %c32], %55 {strides = array<i32>} : memref<1x64xf32, #tpu.memory_space<vmem>>, vector<1x32xf32>,
    %c0_32 = arith.constant 0 : index
    %c0_33 = arith.constant 0 : index
    %58 = vector.load %arg13[%c0_32, %c0_33] : memref<1x64xf32, #tpu.memory_space<vmem>>, vector<1x64xf32>
    %cst_34 = arith.constant dense<0.000000e+00> : vector<1x32xf32>
    %59 = tpu.matmul %58, %5, %cst_34 {dimension_numbers = #tpu.dot_dimension_numbers<[1], [0], [0], [1], [0, 0, 1, 1], [], []>} : vector<1x64xf32>, vector<64x32xf32>, vector<1x32xf32> -> vector<1x32xf32>
    %60 = arith.addf %59, %6 : vector<1x32xf32>
    %61 = math.tanh %60 : vector<1x32xf32>
    %cst_35 = arith.constant dense<0.000000e+00> : vector<1x64xf32>
    %62 = tpu.matmul %61, %7, %cst_35 {dimension_numbers = #tpu.dot_dimension_numbers<[1], [0], [0], [1], [0, 0, 1, 1], [], []>} : vector<1x32xf32>, vector<32x64xf32>, vector<1x64xf32> -> vector<1x64xf32>
    %63 = arith.addf %62, %8 : vector<1x64xf32>
    %cst_36 = arith.constant dense<0xFF800000> : vector<1xf32>
    %64 = vector.multi_reduction <maximumf>, %63, %cst_36 [1] : vector<1x64xf32> to vector<1xf32>
    %65 = vector.shape_cast %64 : vector<1xf32> to vector<1x1xf32>
    %66 = vector.broadcast %65 : vector<1x1xf32> to vector<1x64xf32>
    %67 = arith.subf %63, %66 : vector<1x64xf32>
    %cst_37 = arith.constant 0.000000e+00 : f32
    %68 = vector.broadcast %cst_37 : f32 to vector<1x64xf32>
    %69 = arith.cmpf oeq, %67, %68 : vector<1x64xf32>
    %c64_i32 = arith.constant 64 : i32
    %70 = vector.broadcast %c64_i32 : i32 to vector<1x64xi32>
    %71 = arith.select %69, %9, %70 : vector<1x64xi1>, vector<1x64xi32>
    %72 = vector.shape_cast %71 : vector<1x64xi32> to vector<1x1x64xi32>
    %cst_38 = arith.constant dense<2147483647> : vector<1xi32>
    %73 = vector.multi_reduction <minsi>, %72, %cst_38 [1, 2] : vector<1x1x64xi32> to vector<1xi32>
    %74 = vector.shape_cast %73 : vector<1xi32> to vector<1x1x1xi32>
    %75 = vector.extract %74[0, 0, 0] : i32 from vector<1x1x1xi32>
    %76 = math.exp %67 : vector<1x64xf32>
    %cst_39 = arith.constant dense<0.000000e+00> : vector<1xf32>
    %77 = vector.multi_reduction <add>, %76, %cst_39 [1] : vector<1x64xf32> to vector<1xf32>
    %78 = vector.shape_cast %77 : vector<1xf32> to vector<1x1xf32>
    %79 = tpu.reciprocal %78 {approx = true} : vector<1x1xf32> -> vector<1x1xf32>
    %80 = vector.shape_cast %79 : vector<1x1xf32> to vector<1x1x1xf32>
    %cst_40 = arith.constant dense<0xFF800000> : vector<1xf32>
    %81 = vector.multi_reduction <maximumf>, %80, %cst_40 [1, 2] : vector<1x1x1xf32> to vector<1xf32>
    %82 = vector.shape_cast %81 : vector<1xf32> to vector<1x1x1xf32>
    %83 = vector.extract %82[0, 0, 0] : f32 from vector<1x1x1xf32>
    %84 = arith.index_cast %c0_i32 : i32 to index
    %85 = memref.load %arg11[%84] : memref<10xi32, #tpu.memory_space<smem>>
    memref.store %75, %arg11[%84] : memref<10xi32, #tpu.memory_space<smem>>
    %86 = arith.index_cast %c0_i32 : i32 to index
    %87 = memref.load %arg12[%86] : memref<10xf32, #tpu.memory_space<smem>>
    memref.store %83, %arg12[%86] : memref<10xf32, #tpu.memory_space<smem>>
    %c1_i32_41 = arith.constant 1 : i32
    %88 = arith.index_cast %75 : i32 to index
    %c0_42 = arith.constant 0 : index
    %c0_43 = arith.constant 0 : index
    %89 = vector.load %arg0[%88, %c0_42, %c0_43] : memref<64x1x32xf32, #tpu.memory_space<vmem>>, vector<1x1x32xf32>
    %90 = vector.shape_cast %89 : vector<1x1x32xf32> to vector<1x32xf32>
    %cst_44 = arith.constant dense<0.000000e+00> : vector<1x96xf32>
    %91 = tpu.matmul %90, %0, %cst_44 {dimension_numbers = #tpu.dot_dimension_numbers<[1], [0], [0], [1], [0, 0, 1, 1], [], []>} : vector<1x32xf32>, vector<32x96xf32>, vector<1x96xf32> -> vector<1x96xf32>
    %92 = arith.addf %91, %2 : vector<1x96xf32>
    %cst_45 = arith.constant dense<0.000000e+00> : vector<1x96xf32>
    %93 = tpu.matmul %43, %1, %cst_45 {dimension_numbers = #tpu.dot_dimension_numbers<[1], [0], [0], [1], [0, 0, 1, 1], [], []>} : vector<1x32xf32>, vector<32x96xf32>, vector<1x96xf32> -> vector<1x96xf32>
    %94 = arith.addf %93, %3 : vector<1x96xf32>
    %95 = vector.extract_strided_slice %92 {offsets = [0, 0], sizes = [1, 32], strides = [1, 1]} : vector<1x96xf32> to vector<1x32xf32>
    %96 = vector.extract_strided_slice %94 {offsets = [0, 0], sizes = [1, 32], strides = [1, 1]} : vector<1x96xf32> to vector<1x32xf32>
    %97 = arith.addf %95, %96 : vector<1x32xf32>
    %98 = arith.negf %97 : vector<1x32xf32>
    %99 = math.exp %98 : vector<1x32xf32>
    %cst_46 = arith.constant 1.000000e+00 : f32
    %100 = vector.broadcast %cst_46 : f32 to vector<1x32xf32>
    %101 = arith.addf %100, %99 : vector<1x32xf32>
    %102 = arith.divf %100, %101 : vector<1x32xf32>
    %103 = vector.extract_strided_slice %92 {offsets = [0, 32], sizes = [1, 32], strides = [1, 1]} : vector<1x96xf32> to vector<1x32xf32>
    %104 = vector.extract_strided_slice %94 {offsets = [0, 32], sizes = [1, 32], strides = [1, 1]} : vector<1x96xf32> to vector<1x32xf32>
    %105 = arith.addf %103, %104 : vector<1x32xf32>
    %106 = arith.negf %105 : vector<1x32xf32>
    %107 = math.exp %106 : vector<1x32xf32>
    %cst_47 = arith.constant 1.000000e+00 : f32
    %108 = vector.broadcast %cst_47 : f32 to vector<1x32xf32>
    %109 = arith.addf %108, %107 : vector<1x32xf32>
    %110 = arith.divf %108, %109 : vector<1x32xf32>
    %111 = vector.extract_strided_slice %92 {offsets = [0, 64], sizes = [1, 32], strides = [1, 1]} : vector<1x96xf32> to vector<1x32xf32>
    %112 = vector.extract_strided_slice %94 {offsets = [0, 64], sizes = [1, 32], strides = [1, 1]} : vector<1x96xf32> to vector<1x32xf32>
    %113 = arith.mulf %102, %112 : vector<1x32xf32>
    %114 = arith.addf %111, %113 : vector<1x32xf32>
    %115 = math.tanh %114 : vector<1x32xf32>
    %cst_48 = arith.constant 1.000000e+00 : f32
    %116 = vector.broadcast %cst_48 : f32 to vector<1x32xf32>
    %117 = arith.subf %116, %110 : vector<1x32xf32>
    %118 = arith.mulf %117, %115 : vector<1x32xf32>
    %119 = arith.mulf %110, %43 : vector<1x32xf32>
    %120 = arith.addf %118, %119 : vector<1x32xf32>
    %cst_49 = arith.constant dense<0.000000e+00> : vector<1x2xf32>
    %121 = tpu.matmul %120, %4, %cst_49 {dimension_numbers = #tpu.dot_dimension_numbers<[1], [1], [0], [0], [0, 0, 1, 0], [], []>} : vector<1x32xf32>, vector<2x32xf32>, vector<1x2xf32> -> vector<1x2xf32>
    %cst_50 = arith.constant dense<0xFF800000> : vector<1xf32>
    %122 = vector.multi_reduction <maximumf>, %121, %cst_50 [1] : vector<1x2xf32> to vector<1xf32>
    %123 = vector.shape_cast %122 : vector<1xf32> to vector<1x1xf32>
    %124 = vector.broadcast %123 : vector<1x1xf32> to vector<1x2xf32>
    %125 = arith.subf %121, %124 : vector<1x2xf32>
    %126 = math.exp %125 : vector<1x2xf32>
    %cst_51 = arith.constant dense<0.000000e+00> : vector<1xf32>
    %127 = vector.multi_reduction <add>, %126, %cst_51 [1] : vector<1x2xf32> to vector<1xf32>
    %128 = vector.shape_cast %127 : vector<1xf32> to vector<1x1xf32>
    %129 = tpu.reciprocal %128 : vector<1x1xf32> -> vector<1x1xf32>
    %130 = vector.broadcast %129 : vector<1x1xf32> to vector<1x2xf32>
    %131 = arith.mulf %126, %130 : vector<1x2xf32>
    %cst_52 = arith.constant dense<0.000000e+00> : vector<1x32xf32>
    %132 = tpu.matmul %131, %4, %cst_52 {dimension_numbers = #tpu.dot_dimension_numbers<[1], [0], [0], [1], [0, 0, 1, 1], [], []>} : vector<1x2xf32>, vector<2x32xf32>, vector<1x32xf32> -> vector<1x32xf32>
    %c0_53 = arith.constant 0 : index
    %c0_54 = arith.constant 0 : index
    %133 = vector.load %arg13[%c0_53, %c0_54] : memref<1x64xf32, #tpu.memory_space<vmem>>, vector<1x32xf32>
    tpu.vector_store %arg13[%c0_53, %c0_54], %120 {strides = array<i32>} : memref<1x64xf32, #tpu.memory_space<vmem>>, vector<1x32xf32>,
    %c0_55 = arith.constant 0 : index
    %c32_56 = arith.constant 32 : index
    %134 = vector.load %arg13[%c0_55, %c32_56] : memref<1x64xf32, #tpu.memory_space<vmem>>, vector<1x32xf32>
    tpu.vector_store %arg13[%c0_55, %c32_56], %132 {strides = array<i32>} : memref<1x64xf32, #tpu.memory_space<vmem>>, vector<1x32xf32>,
    %c0_57 = arith.constant 0 : index
    %c0_58 = arith.constant 0 : index
    %135 = vector.load %arg13[%c0_57, %c0_58] : memref<1x64xf32, #tpu.memory_space<vmem>>, vector<1x64xf32>
    %cst_59 = arith.constant dense<0.000000e+00> : vector<1x32xf32>
    %136 = tpu.matmul %135, %5, %cst_59 {dimension_numbers = #tpu.dot_dimension_numbers<[1], [0], [0], [1], [0, 0, 1, 1], [], []>} : vector<1x64xf32>, vector<64x32xf32>, vector<1x32xf32> -> vector<1x32xf32>
    %137 = arith.addf %136, %6 : vector<1x32xf32>
    %138 = math.tanh %137 : vector<1x32xf32>
    %cst_60 = arith.constant dense<0.000000e+00> : vector<1x64xf32>
    %139 = tpu.matmul %138, %7, %cst_60 {dimension_numbers = #tpu.dot_dimension_numbers<[1], [0], [0], [1], [0, 0, 1, 1], [], []>} : vector<1x32xf32>, vector<32x64xf32>, vector<1x64xf32> -> vector<1x64xf32>
    %140 = arith.addf %139, %8 : vector<1x64xf32>
    %cst_61 = arith.constant dense<0xFF800000> : vector<1xf32>
    %141 = vector.multi_reduction <maximumf>, %140, %cst_61 [1] : vector<1x64xf32> to vector<1xf32>
    %142 = vector.shape_cast %141 : vector<1xf32> to vector<1x1xf32>
    %143 = vector.broadcast %142 : vector<1x1xf32> to vector<1x64xf32>
    %144 = arith.subf %140, %143 : vector<1x64xf32>
    %cst_62 = arith.constant 0.000000e+00 : f32
    %145 = vector.broadcast %cst_62 : f32 to vector<1x64xf32>
    %146 = arith.cmpf oeq, %144, %145 : vector<1x64xf32>
    %c64_i32_63 = arith.constant 64 : i32
    %147 = vector.broadcast %c64_i32_63 : i32 to vector<1x64xi32>
    %148 = arith.select %146, %9, %147 : vector<1x64xi1>, vector<1x64xi32>
    %149 = vector.shape_cast %148 : vector<1x64xi32> to vector<1x1x64xi32>
    %cst_64 = arith.constant dense<2147483647> : vector<1xi32>
    %150 = vector.multi_reduction <minsi>, %149, %cst_64 [1, 2] : vector<1x1x64xi32> to vector<1xi32>
    %151 = vector.shape_cast %150 : vector<1xi32> to vector<1x1x1xi32>
    %152 = vector.extract %151[0, 0, 0] : i32 from vector<1x1x1xi32>
    %153 = math.exp %144 : vector<1x64xf32>
    %cst_65 = arith.constant dense<0.000000e+00> : vector<1xf32>
    %154 = vector.multi_reduction <add>, %153, %cst_65 [1] : vector<1x64xf32> to vector<1xf32>
    %155 = vector.shape_cast %154 : vector<1xf32> to vector<1x1xf32>
    %156 = tpu.reciprocal %155 {approx = true} : vector<1x1xf32> -> vector<1x1xf32>
    %157 = vector.shape_cast %156 : vector<1x1xf32> to vector<1x1x1xf32>
    %cst_66 = arith.constant dense<0xFF800000> : vector<1xf32>
    %158 = vector.multi_reduction <maximumf>, %157, %cst_66 [1, 2] : vector<1x1x1xf32> to vector<1xf32>
    %159 = vector.shape_cast %158 : vector<1xf32> to vector<1x1x1xf32>
    %160 = vector.extract %159[0, 0, 0] : f32 from vector<1x1x1xf32>
    %161 = arith.index_cast %c1_i32_41 : i32 to index
    %162 = memref.load %arg11[%161] : memref<10xi32, #tpu.memory_space<smem>>
    memref.store %152, %arg11[%161] : memref<10xi32, #tpu.memory_space<smem>>
    %163 = arith.index_cast %c1_i32_41 : i32 to index
    %164 = memref.load %arg12[%163] : memref<10xf32, #tpu.memory_space<smem>>
    memref.store %160, %arg12[%163] : memref<10xf32, #tpu.memory_space<smem>>
    %c2_i32 = arith.constant 2 : i32
    %165 = arith.index_cast %152 : i32 to index
    %c0_67 = arith.constant 0 : index
    %c0_68 = arith.constant 0 : index
    %166 = vector.load %arg0[%165, %c0_67, %c0_68] : memref<64x1x32xf32, #tpu.memory_space<vmem>>, vector<1x1x32xf32>
    %167 = vector.shape_cast %166 : vector<1x1x32xf32> to vector<1x32xf32>
    %cst_69 = arith.constant dense<0.000000e+00> : vector<1x96xf32>
    %168 = tpu.matmul %167, %0, %cst_69 {dimension_numbers = #tpu.dot_dimension_numbers<[1], [0], [0], [1], [0, 0, 1, 1], [], []>} : vector<1x32xf32>, vector<32x96xf32>, vector<1x96xf32> -> vector<1x96xf32>
    %169 = arith.addf %168, %2 : vector<1x96xf32>
    %cst_70 = arith.constant dense<0.000000e+00> : vector<1x96xf32>
    %170 = tpu.matmul %120, %1, %cst_70 {dimension_numbers = #tpu.dot_dimension_numbers<[1], [0], [0], [1], [0, 0, 1, 1], [], []>} : vector<1x32xf32>, vector<32x96xf32>, vector<1x96xf32> -> vector<1x96xf32>
    %171 = arith.addf %170, %3 : vector<1x96xf32>
    %172 = vector.extract_strided_slice %169 {offsets = [0, 0], sizes = [1, 32], strides = [1, 1]} : vector<1x96xf32> to vector<1x32xf32>
    %173 = vector.extract_strided_slice %171 {offsets = [0, 0], sizes = [1, 32], strides = [1, 1]} : vector<1x96xf32> to vector<1x32xf32>
    %174 = arith.addf %172, %173 : vector<1x32xf32>
    %175 = arith.negf %174 : vector<1x32xf32>
    %176 = math.exp %175 : vector<1x32xf32>
    %cst_71 = arith.constant 1.000000e+00 : f32
    %177 = vector.broadcast %cst_71 : f32 to vector<1x32xf32>
    %178 = arith.addf %177, %176 : vector<1x32xf32>
    %179 = arith.divf %177, %178 : vector<1x32xf32>
    %180 = vector.extract_strided_slice %169 {offsets = [0, 32], sizes = [1, 32], strides = [1, 1]} : vector<1x96xf32> to vector<1x32xf32>
    %181 = vector.extract_strided_slice %171 {offsets = [0, 32], sizes = [1, 32], strides = [1, 1]} : vector<1x96xf32> to vector<1x32xf32>
    %182 = arith.addf %180, %181 : vector<1x32xf32>
    %183 = arith.negf %182 : vector<1x32xf32>
    %184 = math.exp %183 : vector<1x32xf32>
    %cst_72 = arith.constant 1.000000e+00 : f32
    %185 = vector.broadcast %cst_72 : f32 to vector<1x32xf32>
    %186 = arith.addf %185, %184 : vector<1x32xf32>
    %187 = arith.divf %185, %186 : vector<1x32xf32>
    %188 = vector.extract_strided_slice %169 {offsets = [0, 64], sizes = [1, 32], strides = [1, 1]} : vector<1x96xf32> to vector<1x32xf32>
    %189 = vector.extract_strided_slice %171 {offsets = [0, 64], sizes = [1, 32], strides = [1, 1]} : vector<1x96xf32> to vector<1x32xf32>
    %190 = arith.mulf %179, %189 : vector<1x32xf32>
    %191 = arith.addf %188, %190 : vector<1x32xf32>
    %192 = math.tanh %191 : vector<1x32xf32>
    %cst_73 = arith.constant 1.000000e+00 : f32
    %193 = vector.broadcast %cst_73 : f32 to vector<1x32xf32>
    %194 = arith.subf %193, %187 : vector<1x32xf32>
    %195 = arith.mulf %194, %192 : vector<1x32xf32>
    %196 = arith.mulf %187, %120 : vector<1x32xf32>
    %197 = arith.addf %195, %196 : vector<1x32xf32>
    %cst_74 = arith.constant dense<0.000000e+00> : vector<1x2xf32>
    %198 = tpu.matmul %197, %4, %cst_74 {dimension_numbers = #tpu.dot_dimension_numbers<[1], [1], [0], [0], [0, 0, 1, 0], [], []>} : vector<1x32xf32>, vector<2x32xf32>, vector<1x2xf32> -> vector<1x2xf32>
    %cst_75 = arith.constant dense<0xFF800000> : vector<1xf32>
    %199 = vector.multi_reduction <maximumf>, %198, %cst_75 [1] : vector<1x2xf32> to vector<1xf32>
    %200 = vector.shape_cast %199 : vector<1xf32> to vector<1x1xf32>
    %201 = vector.broadcast %200 : vector<1x1xf32> to vector<1x2xf32>
    %202 = arith.subf %198, %201 : vector<1x2xf32>
    %203 = math.exp %202 : vector<1x2xf32>
    %cst_76 = arith.constant dense<0.000000e+00> : vector<1xf32>
    %204 = vector.multi_reduction <add>, %203, %cst_76 [1] : vector<1x2xf32> to vector<1xf32>
    %205 = vector.shape_cast %204 : vector<1xf32> to vector<1x1xf32>
    %206 = tpu.reciprocal %205 : vector<1x1xf32> -> vector<1x1xf32>
    %207 = vector.broadcast %206 : vector<1x1xf32> to vector<1x2xf32>
    %208 = arith.mulf %203, %207 : vector<1x2xf32>
    %cst_77 = arith.constant dense<0.000000e+00> : vector<1x32xf32>
    %209 = tpu.matmul %208, %4, %cst_77 {dimension_numbers = #tpu.dot_dimension_numbers<[1], [0], [0], [1], [0, 0, 1, 1], [], []>} : vector<1x2xf32>, vector<2x32xf32>, vector<1x32xf32> -> vector<1x32xf32>
    %c0_78 = arith.constant 0 : index
    %c0_79 = arith.constant 0 : index
    %210 = vector.load %arg13[%c0_78, %c0_79] : memref<1x64xf32, #tpu.memory_space<vmem>>, vector<1x32xf32>
    tpu.vector_store %arg13[%c0_78, %c0_79], %197 {strides = array<i32>} : memref<1x64xf32, #tpu.memory_space<vmem>>, vector<1x32xf32>,
    %c0_80 = arith.constant 0 : index
    %c32_81 = arith.constant 32 : index
    %211 = vector.load %arg13[%c0_80, %c32_81] : memref<1x64xf32, #tpu.memory_space<vmem>>, vector<1x32xf32>
    tpu.vector_store %arg13[%c0_80, %c32_81], %209 {strides = array<i32>} : memref<1x64xf32, #tpu.memory_space<vmem>>, vector<1x32xf32>,
    %c0_82 = arith.constant 0 : index
    %c0_83 = arith.constant 0 : index
    %212 = vector.load %arg13[%c0_82, %c0_83] : memref<1x64xf32, #tpu.memory_space<vmem>>, vector<1x64xf32>
    %cst_84 = arith.constant dense<0.000000e+00> : vector<1x32xf32>
    %213 = tpu.matmul %212, %5, %cst_84 {dimension_numbers = #tpu.dot_dimension_numbers<[1], [0], [0], [1], [0, 0, 1, 1], [], []>} : vector<1x64xf32>, vector<64x32xf32>, vector<1x32xf32> -> vector<1x32xf32>
    %214 = arith.addf %213, %6 : vector<1x32xf32>
    %215 = math.tanh %214 : vector<1x32xf32>
    %cst_85 = arith.constant dense<0.000000e+00> : vector<1x64xf32>
    %216 = tpu.matmul %215, %7, %cst_85 {dimension_numbers = #tpu.dot_dimension_numbers<[1], [0], [0], [1], [0, 0, 1, 1], [], []>} : vector<1x32xf32>, vector<32x64xf32>, vector<1x64xf32> -> vector<1x64xf32>
    %217 = arith.addf %216, %8 : vector<1x64xf32>
    %cst_86 = arith.constant dense<0xFF800000> : vector<1xf32>
    %218 = vector.multi_reduction <maximumf>, %217, %cst_86 [1] : vector<1x64xf32> to vector<1xf32>
    %219 = vector.shape_cast %218 : vector<1xf32> to vector<1x1xf32>
    %220 = vector.broadcast %219 : vector<1x1xf32> to vector<1x64xf32>
    %221 = arith.subf %217, %220 : vector<1x64xf32>
    %cst_87 = arith.constant 0.000000e+00 : f32
    %222 = vector.broadcast %cst_87 : f32 to vector<1x64xf32>
    %223 = arith.cmpf oeq, %221, %222 : vector<1x64xf32>
    %c64_i32_88 = arith.constant 64 : i32
    %224 = vector.broadcast %c64_i32_88 : i32 to vector<1x64xi32>
    %225 = arith.select %223, %9, %224 : vector<1x64xi1>, vector<1x64xi32>
    %226 = vector.shape_cast %225 : vector<1x64xi32> to vector<1x1x64xi32>
    %cst_89 = arith.constant dense<2147483647> : vector<1xi32>
    %227 = vector.multi_reduction <minsi>, %226, %cst_89 [1, 2] : vector<1x1x64xi32> to vector<1xi32>
    %228 = vector.shape_cast %227 : vector<1xi32> to vector<1x1x1xi32>
    %229 = vector.extract %228[0, 0, 0] : i32 from vector<1x1x1xi32>
    %230 = math.exp %221 : vector<1x64xf32>
    %cst_90 = arith.constant dense<0.000000e+00> : vector<1xf32>
    %231 = vector.multi_reduction <add>, %230, %cst_90 [1] : vector<1x64xf32> to vector<1xf32>
    %232 = vector.shape_cast %231 : vector<1xf32> to vector<1x1xf32>
    %233 = tpu.reciprocal %232 {approx = true} : vector<1x1xf32> -> vector<1x1xf32>
    %234 = vector.shape_cast %233 : vector<1x1xf32> to vector<1x1x1xf32>
    %cst_91 = arith.constant dense<0xFF800000> : vector<1xf32>
    %235 = vector.multi_reduction <maximumf>, %234, %cst_91 [1, 2] : vector<1x1x1xf32> to vector<1xf32>
    %236 = vector.shape_cast %235 : vector<1xf32> to vector<1x1x1xf32>
    %237 = vector.extract %236[0, 0, 0] : f32 from vector<1x1x1xf32>
    %238 = arith.index_cast %c2_i32 : i32 to index
    %239 = memref.load %arg11[%238] : memref<10xi32, #tpu.memory_space<smem>>
    memref.store %229, %arg11[%238] : memref<10xi32, #tpu.memory_space<smem>>
    %240 = arith.index_cast %c2_i32 : i32 to index
    %241 = memref.load %arg12[%240] : memref<10xf32, #tpu.memory_space<smem>>
    memref.store %237, %arg12[%240] : memref<10xf32, #tpu.memory_space<smem>>
    %c3_i32 = arith.constant 3 : i32
    %242 = arith.index_cast %229 : i32 to index
    %c0_92 = arith.constant 0 : index
    %c0_93 = arith.constant 0 : index
    %243 = vector.load %arg0[%242, %c0_92, %c0_93] : memref<64x1x32xf32, #tpu.memory_space<vmem>>, vector<1x1x32xf32>
    %244 = vector.shape_cast %243 : vector<1x1x32xf32> to vector<1x32xf32>
    %cst_94 = arith.constant dense<0.000000e+00> : vector<1x96xf32>
    %245 = tpu.matmul %244, %0, %cst_94 {dimension_numbers = #tpu.dot_dimension_numbers<[1], [0], [0], [1], [0, 0, 1, 1], [], []>} : vector<1x32xf32>, vector<32x96xf32>, vector<1x96xf32> -> vector<1x96xf32>
    %246 = arith.addf %245, %2 : vector<1x96xf32>
    %cst_95 = arith.constant dense<0.000000e+00> : vector<1x96xf32>
    %247 = tpu.matmul %197, %1, %cst_95 {dimension_numbers = #tpu.dot_dimension_numbers<[1], [0], [0], [1], [0, 0, 1, 1], [], []>} : vector<1x32xf32>, vector<32x96xf32>, vector<1x96xf32> -> vector<1x96xf32>
    %248 = arith.addf %247, %3 : vector<1x96xf32>
    %249 = vector.extract_strided_slice %246 {offsets = [0, 0], sizes = [1, 32], strides = [1, 1]} : vector<1x96xf32> to vector<1x32xf32>
    %250 = vector.extract_strided_slice %248 {offsets = [0, 0], sizes = [1, 32], strides = [1, 1]} : vector<1x96xf32> to vector<1x32xf32>
    %251 = arith.addf %249, %250 : vector<1x32xf32>
    %252 = arith.negf %251 : vector<1x32xf32>
    %253 = math.exp %252 : vector<1x32xf32>
    %cst_96 = arith.constant 1.000000e+00 : f32
    %254 = vector.broadcast %cst_96 : f32 to vector<1x32xf32>
    %255 = arith.addf %254, %253 : vector<1x32xf32>
    %256 = arith.divf %254, %255 : vector<1x32xf32>
    %257 = vector.extract_strided_slice %246 {offsets = [0, 32], sizes = [1, 32], strides = [1, 1]} : vector<1x96xf32> to vector<1x32xf32>
    %258 = vector.extract_strided_slice %248 {offsets = [0, 32], sizes = [1, 32], strides = [1, 1]} : vector<1x96xf32> to vector<1x32xf32>
    %259 = arith.addf %257, %258 : vector<1x32xf32>
    %260 = arith.negf %259 : vector<1x32xf32>
    %261 = math.exp %260 : vector<1x32xf32>
    %cst_97 = arith.constant 1.000000e+00 : f32
    %262 = vector.broadcast %cst_97 : f32 to vector<1x32xf32>
    %263 = arith.addf %262, %261 : vector<1x32xf32>
    %264 = arith.divf %262, %263 : vector<1x32xf32>
    %265 = vector.extract_strided_slice %246 {offsets = [0, 64], sizes = [1, 32], strides = [1, 1]} : vector<1x96xf32> to vector<1x32xf32>
    %266 = vector.extract_strided_slice %248 {offsets = [0, 64], sizes = [1, 32], strides = [1, 1]} : vector<1x96xf32> to vector<1x32xf32>
    %267 = arith.mulf %256, %266 : vector<1x32xf32>
    %268 = arith.addf %265, %267 : vector<1x32xf32>
    %269 = math.tanh %268 : vector<1x32xf32>
    %cst_98 = arith.constant 1.000000e+00 : f32
    %270 = vector.broadcast %cst_98 : f32 to vector<1x32xf32>
    %271 = arith.subf %270, %264 : vector<1x32xf32>
    %272 = arith.mulf %271, %269 : vector<1x32xf32>
    %273 = arith.mulf %264, %197 : vector<1x32xf32>
    %274 = arith.addf %272, %273 : vector<1x32xf32>
    %cst_99 = arith.constant dense<0.000000e+00> : vector<1x2xf32>
    %275 = tpu.matmul %274, %4, %cst_99 {dimension_numbers = #tpu.dot_dimension_numbers<[1], [1], [0], [0], [0, 0, 1, 0], [], []>} : vector<1x32xf32>, vector<2x32xf32>, vector<1x2xf32> -> vector<1x2xf32>
    %cst_100 = arith.constant dense<0xFF800000> : vector<1xf32>
    %276 = vector.multi_reduction <maximumf>, %275, %cst_100 [1] : vector<1x2xf32> to vector<1xf32>
    %277 = vector.shape_cast %276 : vector<1xf32> to vector<1x1xf32>
    %278 = vector.broadcast %277 : vector<1x1xf32> to vector<1x2xf32>
    %279 = arith.subf %275, %278 : vector<1x2xf32>
    %280 = math.exp %279 : vector<1x2xf32>
    %cst_101 = arith.constant dense<0.000000e+00> : vector<1xf32>
    %281 = vector.multi_reduction <add>, %280, %cst_101 [1] : vector<1x2xf32> to vector<1xf32>
    %282 = vector.shape_cast %281 : vector<1xf32> to vector<1x1xf32>
    %283 = tpu.reciprocal %282 : vector<1x1xf32> -> vector<1x1xf32>
    %284 = vector.broadcast %283 : vector<1x1xf32> to vector<1x2xf32>
    %285 = arith.mulf %280, %284 : vector<1x2xf32>
    %cst_102 = arith.constant dense<0.000000e+00> : vector<1x32xf32>
    %286 = tpu.matmul %285, %4, %cst_102 {dimension_numbers = #tpu.dot_dimension_numbers<[1], [0], [0], [1], [0, 0, 1, 1], [], []>} : vector<1x2xf32>, vector<2x32xf32>, vector<1x32xf32> -> vector<1x32xf32>
    %c0_103 = arith.constant 0 : index
    %c0_104 = arith.constant 0 : index
    %287 = vector.load %arg13[%c0_103, %c0_104] : memref<1x64xf32, #tpu.memory_space<vmem>>, vector<1x32xf32>
    tpu.vector_store %arg13[%c0_103, %c0_104], %274 {strides = array<i32>} : memref<1x64xf32, #tpu.memory_space<vmem>>, vector<1x32xf32>,
    %c0_105 = arith.constant 0 : index
    %c32_106 = arith.constant 32 : index
    %288 = vector.load %arg13[%c0_105, %c32_106] : memref<1x64xf32, #tpu.memory_space<vmem>>, vector<1x32xf32>
    tpu.vector_store %arg13[%c0_105, %c32_106], %286 {strides = array<i32>} : memref<1x64xf32, #tpu.memory_space<vmem>>, vector<1x32xf32>,
    %c0_107 = arith.constant 0 : index
    %c0_108 = arith.constant 0 : index
    %289 = vector.load %arg13[%c0_107, %c0_108] : memref<1x64xf32, #tpu.memory_space<vmem>>, vector<1x64xf32>
    %cst_109 = arith.constant dense<0.000000e+00> : vector<1x32xf32>
    %290 = tpu.matmul %289, %5, %cst_109 {dimension_numbers = #tpu.dot_dimension_numbers<[1], [0], [0], [1], [0, 0, 1, 1], [], []>} : vector<1x64xf32>, vector<64x32xf32>, vector<1x32xf32> -> vector<1x32xf32>
    %291 = arith.addf %290, %6 : vector<1x32xf32>
    %292 = math.tanh %291 : vector<1x32xf32>
    %cst_110 = arith.constant dense<0.000000e+00> : vector<1x64xf32>
    %293 = tpu.matmul %292, %7, %cst_110 {dimension_numbers = #tpu.dot_dimension_numbers<[1], [0], [0], [1], [0, 0, 1, 1], [], []>} : vector<1x32xf32>, vector<32x64xf32>, vector<1x64xf32> -> vector<1x64xf32>
    %294 = arith.addf %293, %8 : vector<1x64xf32>
    %cst_111 = arith.constant dense<0xFF800000> : vector<1xf32>
    %295 = vector.multi_reduction <maximumf>, %294, %cst_111 [1] : vector<1x64xf32> to vector<1xf32>
    %296 = vector.shape_cast %295 : vector<1xf32> to vector<1x1xf32>
    %297 = vector.broadcast %296 : vector<1x1xf32> to vector<1x64xf32>
    %298 = arith.subf %294, %297 : vector<1x64xf32>
    %cst_112 = arith.constant 0.000000e+00 : f32
    %299 = vector.broadcast %cst_112 : f32 to vector<1x64xf32>
    %300 = arith.cmpf oeq, %298, %299 : vector<1x64xf32>
    %c64_i32_113 = arith.constant 64 : i32
    %301 = vector.broadcast %c64_i32_113 : i32 to vector<1x64xi32>
    %302 = arith.select %300, %9, %301 : vector<1x64xi1>, vector<1x64xi32>
    %303 = vector.shape_cast %302 : vector<1x64xi32> to vector<1x1x64xi32>
    %cst_114 = arith.constant dense<2147483647> : vector<1xi32>
    %304 = vector.multi_reduction <minsi>, %303, %cst_114 [1, 2] : vector<1x1x64xi32> to vector<1xi32>
    %305 = vector.shape_cast %304 : vector<1xi32> to vector<1x1x1xi32>
    %306 = vector.extract %305[0, 0, 0] : i32 from vector<1x1x1xi32>
    %307 = math.exp %298 : vector<1x64xf32>
    %cst_115 = arith.constant dense<0.000000e+00> : vector<1xf32>
    %308 = vector.multi_reduction <add>, %307, %cst_115 [1] : vector<1x64xf32> to vector<1xf32>
    %309 = vector.shape_cast %308 : vector<1xf32> to vector<1x1xf32>
    %310 = tpu.reciprocal %309 {approx = true} : vector<1x1xf32> -> vector<1x1xf32>
    %311 = vector.shape_cast %310 : vector<1x1xf32> to vector<1x1x1xf32>
    %cst_116 = arith.constant dense<0xFF800000> : vector<1xf32>
    %312 = vector.multi_reduction <maximumf>, %311, %cst_116 [1, 2] : vector<1x1x1xf32> to vector<1xf32>
    %313 = vector.shape_cast %312 : vector<1xf32> to vector<1x1x1xf32>
    %314 = vector.extract %313[0, 0, 0] : f32 from vector<1x1x1xf32>
    %315 = arith.index_cast %c3_i32 : i32 to index
    %316 = memref.load %arg11[%315] : memref<10xi32, #tpu.memory_space<smem>>
    memref.store %306, %arg11[%315] : memref<10xi32, #tpu.memory_space<smem>>
    %317 = arith.index_cast %c3_i32 : i32 to index
    %318 = memref.load %arg12[%317] : memref<10xf32, #tpu.memory_space<smem>>
    memref.store %314, %arg12[%317] : memref<10xf32, #tpu.memory_space<smem>>
    %c4_i32 = arith.constant 4 : i32
    %319 = arith.index_cast %306 : i32 to index
    %c0_117 = arith.constant 0 : index
    %c0_118 = arith.constant 0 : index
    %320 = vector.load %arg0[%319, %c0_117, %c0_118] : memref<64x1x32xf32, #tpu.memory_space<vmem>>, vector<1x1x32xf32>
    %321 = vector.shape_cast %320 : vector<1x1x32xf32> to vector<1x32xf32>
    %cst_119 = arith.constant dense<0.000000e+00> : vector<1x96xf32>
    %322 = tpu.matmul %321, %0, %cst_119 {dimension_numbers = #tpu.dot_dimension_numbers<[1], [0], [0], [1], [0, 0, 1, 1], [], []>} : vector<1x32xf32>, vector<32x96xf32>, vector<1x96xf32> -> vector<1x96xf32>
    %323 = arith.addf %322, %2 : vector<1x96xf32>
    %cst_120 = arith.constant dense<0.000000e+00> : vector<1x96xf32>
    %324 = tpu.matmul %274, %1, %cst_120 {dimension_numbers = #tpu.dot_dimension_numbers<[1], [0], [0], [1], [0, 0, 1, 1], [], []>} : vector<1x32xf32>, vector<32x96xf32>, vector<1x96xf32> -> vector<1x96xf32>
    %325 = arith.addf %324, %3 : vector<1x96xf32>
    %326 = vector.extract_strided_slice %323 {offsets = [0, 0], sizes = [1, 32], strides = [1, 1]} : vector<1x96xf32> to vector<1x32xf32>
    %327 = vector.extract_strided_slice %325 {offsets = [0, 0], sizes = [1, 32], strides = [1, 1]} : vector<1x96xf32> to vector<1x32xf32>
    %328 = arith.addf %326, %327 : vector<1x32xf32>
    %329 = arith.negf %328 : vector<1x32xf32>
    %330 = math.exp %329 : vector<1x32xf32>
    %cst_121 = arith.constant 1.000000e+00 : f32
    %331 = vector.broadcast %cst_121 : f32 to vector<1x32xf32>
    %332 = arith.addf %331, %330 : vector<1x32xf32>
    %333 = arith.divf %331, %332 : vector<1x32xf32>
    %334 = vector.extract_strided_slice %323 {offsets = [0, 32], sizes = [1, 32], strides = [1, 1]} : vector<1x96xf32> to vector<1x32xf32>
    %335 = vector.extract_strided_slice %325 {offsets = [0, 32], sizes = [1, 32], strides = [1, 1]} : vector<1x96xf32> to vector<1x32xf32>
    %336 = arith.addf %334, %335 : vector<1x32xf32>
    %337 = arith.negf %336 : vector<1x32xf32>
    %338 = math.exp %337 : vector<1x32xf32>
    %cst_122 = arith.constant 1.000000e+00 : f32
    %339 = vector.broadcast %cst_122 : f32 to vector<1x32xf32>
    %340 = arith.addf %339, %338 : vector<1x32xf32>
    %341 = arith.divf %339, %340 : vector<1x32xf32>
    %342 = vector.extract_strided_slice %323 {offsets = [0, 64], sizes = [1, 32], strides = [1, 1]} : vector<1x96xf32> to vector<1x32xf32>
    %343 = vector.extract_strided_slice %325 {offsets = [0, 64], sizes = [1, 32], strides = [1, 1]} : vector<1x96xf32> to vector<1x32xf32>
    %344 = arith.mulf %333, %343 : vector<1x32xf32>
    %345 = arith.addf %342, %344 : vector<1x32xf32>
    %346 = math.tanh %345 : vector<1x32xf32>
    %cst_123 = arith.constant 1.000000e+00 : f32
    %347 = vector.broadcast %cst_123 : f32 to vector<1x32xf32>
    %348 = arith.subf %347, %341 : vector<1x32xf32>
    %349 = arith.mulf %348, %346 : vector<1x32xf32>
    %350 = arith.mulf %341, %274 : vector<1x32xf32>
    %351 = arith.addf %349, %350 : vector<1x32xf32>
    %cst_124 = arith.constant dense<0.000000e+00> : vector<1x2xf32>
    %352 = tpu.matmul %351, %4, %cst_124 {dimension_numbers = #tpu.dot_dimension_numbers<[1], [1], [0], [0], [0, 0, 1, 0], [], []>} : vector<1x32xf32>, vector<2x32xf32>, vector<1x2xf32> -> vector<1x2xf32>
    %cst_125 = arith.constant dense<0xFF800000> : vector<1xf32>
    %353 = vector.multi_reduction <maximumf>, %352, %cst_125 [1] : vector<1x2xf32> to vector<1xf32>
    %354 = vector.shape_cast %353 : vector<1xf32> to vector<1x1xf32>
    %355 = vector.broadcast %354 : vector<1x1xf32> to vector<1x2xf32>
    %356 = arith.subf %352, %355 : vector<1x2xf32>
    %357 = math.exp %356 : vector<1x2xf32>
    %cst_126 = arith.constant dense<0.000000e+00> : vector<1xf32>
    %358 = vector.multi_reduction <add>, %357, %cst_126 [1] : vector<1x2xf32> to vector<1xf32>
    %359 = vector.shape_cast %358 : vector<1xf32> to vector<1x1xf32>
    %360 = tpu.reciprocal %359 : vector<1x1xf32> -> vector<1x1xf32>
    %361 = vector.broadcast %360 : vector<1x1xf32> to vector<1x2xf32>
    %362 = arith.mulf %357, %361 : vector<1x2xf32>
    %cst_127 = arith.constant dense<0.000000e+00> : vector<1x32xf32>
    %363 = tpu.matmul %362, %4, %cst_127 {dimension_numbers = #tpu.dot_dimension_numbers<[1], [0], [0], [1], [0, 0, 1, 1], [], []>} : vector<1x2xf32>, vector<2x32xf32>, vector<1x32xf32> -> vector<1x32xf32>
    %c0_128 = arith.constant 0 : index
    %c0_129 = arith.constant 0 : index
    %364 = vector.load %arg13[%c0_128, %c0_129] : memref<1x64xf32, #tpu.memory_space<vmem>>, vector<1x32xf32>
    tpu.vector_store %arg13[%c0_128, %c0_129], %351 {strides = array<i32>} : memref<1x64xf32, #tpu.memory_space<vmem>>, vector<1x32xf32>,
    %c0_130 = arith.constant 0 : index
    %c32_131 = arith.constant 32 : index
    %365 = vector.load %arg13[%c0_130, %c32_131] : memref<1x64xf32, #tpu.memory_space<vmem>>, vector<1x32xf32>
    tpu.vector_store %arg13[%c0_130, %c32_131], %363 {strides = array<i32>} : memref<1x64xf32, #tpu.memory_space<vmem>>, vector<1x32xf32>,
    %c0_132 = arith.constant 0 : index
    %c0_133 = arith.constant 0 : index
    %366 = vector.load %arg13[%c0_132, %c0_133] : memref<1x64xf32, #tpu.memory_space<vmem>>, vector<1x64xf32>
    %cst_134 = arith.constant dense<0.000000e+00> : vector<1x32xf32>
    %367 = tpu.matmul %366, %5, %cst_134 {dimension_numbers = #tpu.dot_dimension_numbers<[1], [0], [0], [1], [0, 0, 1, 1], [], []>} : vector<1x64xf32>, vector<64x32xf32>, vector<1x32xf32> -> vector<1x32xf32>
    %368 = arith.addf %367, %6 : vector<1x32xf32>
    %369 = math.tanh %368 : vector<1x32xf32>
    %cst_135 = arith.constant dense<0.000000e+00> : vector<1x64xf32>
    %370 = tpu.matmul %369, %7, %cst_135 {dimension_numbers = #tpu.dot_dimension_numbers<[1], [0], [0], [1], [0, 0, 1, 1], [], []>} : vector<1x32xf32>, vector<32x64xf32>, vector<1x64xf32> -> vector<1x64xf32>
    %371 = arith.addf %370, %8 : vector<1x64xf32>
    %cst_136 = arith.constant dense<0xFF800000> : vector<1xf32>
    %372 = vector.multi_reduction <maximumf>, %371, %cst_136 [1] : vector<1x64xf32> to vector<1xf32>
    %373 = vector.shape_cast %372 : vector<1xf32> to vector<1x1xf32>
    %374 = vector.broadcast %373 : vector<1x1xf32> to vector<1x64xf32>
    %375 = arith.subf %371, %374 : vector<1x64xf32>
    %cst_137 = arith.constant 0.000000e+00 : f32
    %376 = vector.broadcast %cst_137 : f32 to vector<1x64xf32>
    %377 = arith.cmpf oeq, %375, %376 : vector<1x64xf32>
    %c64_i32_138 = arith.constant 64 : i32
    %378 = vector.broadcast %c64_i32_138 : i32 to vector<1x64xi32>
    %379 = arith.select %377, %9, %378 : vector<1x64xi1>, vector<1x64xi32>
    %380 = vector.shape_cast %379 : vector<1x64xi32> to vector<1x1x64xi32>
    %cst_139 = arith.constant dense<2147483647> : vector<1xi32>
    %381 = vector.multi_reduction <minsi>, %380, %cst_139 [1, 2] : vector<1x1x64xi32> to vector<1xi32>
    %382 = vector.shape_cast %381 : vector<1xi32> to vector<1x1x1xi32>
    %383 = vector.extract %382[0, 0, 0] : i32 from vector<1x1x1xi32>
    %384 = math.exp %375 : vector<1x64xf32>
    %cst_140 = arith.constant dense<0.000000e+00> : vector<1xf32>
    %385 = vector.multi_reduction <add>, %384, %cst_140 [1] : vector<1x64xf32> to vector<1xf32>
    %386 = vector.shape_cast %385 : vector<1xf32> to vector<1x1xf32>
    %387 = tpu.reciprocal %386 {approx = true} : vector<1x1xf32> -> vector<1x1xf32>
    %388 = vector.shape_cast %387 : vector<1x1xf32> to vector<1x1x1xf32>
    %cst_141 = arith.constant dense<0xFF800000> : vector<1xf32>
    %389 = vector.multi_reduction <maximumf>, %388, %cst_141 [1, 2] : vector<1x1x1xf32> to vector<1xf32>
    %390 = vector.shape_cast %389 : vector<1xf32> to vector<1x1x1xf32>
    %391 = vector.extract %390[0, 0, 0] : f32 from vector<1x1x1xf32>
    %392 = arith.index_cast %c4_i32 : i32 to index
    %393 = memref.load %arg11[%392] : memref<10xi32, #tpu.memory_space<smem>>
    memref.store %383, %arg11[%392] : memref<10xi32, #tpu.memory_space<smem>>
    %394 = arith.index_cast %c4_i32 : i32 to index
    %395 = memref.load %arg12[%394] : memref<10xf32, #tpu.memory_space<smem>>
    memref.store %391, %arg12[%394] : memref<10xf32, #tpu.memory_space<smem>>
    %c5_i32 = arith.constant 5 : i32
    %396 = arith.index_cast %383 : i32 to index
    %c0_142 = arith.constant 0 : index
    %c0_143 = arith.constant 0 : index
    %397 = vector.load %arg0[%396, %c0_142, %c0_143] : memref<64x1x32xf32, #tpu.memory_space<vmem>>, vector<1x1x32xf32>
    %398 = vector.shape_cast %397 : vector<1x1x32xf32> to vector<1x32xf32>
    %cst_144 = arith.constant dense<0.000000e+00> : vector<1x96xf32>
    %399 = tpu.matmul %398, %0, %cst_144 {dimension_numbers = #tpu.dot_dimension_numbers<[1], [0], [0], [1], [0, 0, 1, 1], [], []>} : vector<1x32xf32>, vector<32x96xf32>, vector<1x96xf32> -> vector<1x96xf32>
    %400 = arith.addf %399, %2 : vector<1x96xf32>
    %cst_145 = arith.constant dense<0.000000e+00> : vector<1x96xf32>
    %401 = tpu.matmul %351, %1, %cst_145 {dimension_numbers = #tpu.dot_dimension_numbers<[1], [0], [0], [1], [0, 0, 1, 1], [], []>} : vector<1x32xf32>, vector<32x96xf32>, vector<1x96xf32> -> vector<1x96xf32>
    %402 = arith.addf %401, %3 : vector<1x96xf32>
    %403 = vector.extract_strided_slice %400 {offsets = [0, 0], sizes = [1, 32], strides = [1, 1]} : vector<1x96xf32> to vector<1x32xf32>
    %404 = vector.extract_strided_slice %402 {offsets = [0, 0], sizes = [1, 32], strides = [1, 1]} : vector<1x96xf32> to vector<1x32xf32>
    %405 = arith.addf %403, %404 : vector<1x32xf32>
    %406 = arith.negf %405 : vector<1x32xf32>
    %407 = math.exp %406 : vector<1x32xf32>
    %cst_146 = arith.constant 1.000000e+00 : f32
    %408 = vector.broadcast %cst_146 : f32 to vector<1x32xf32>
    %409 = arith.addf %408, %407 : vector<1x32xf32>
    %410 = arith.divf %408, %409 : vector<1x32xf32>
    %411 = vector.extract_strided_slice %400 {offsets = [0, 32], sizes = [1, 32], strides = [1, 1]} : vector<1x96xf32> to vector<1x32xf32>
    %412 = vector.extract_strided_slice %402 {offsets = [0, 32], sizes = [1, 32], strides = [1, 1]} : vector<1x96xf32> to vector<1x32xf32>
    %413 = arith.addf %411, %412 : vector<1x32xf32>
    %414 = arith.negf %413 : vector<1x32xf32>
    %415 = math.exp %414 : vector<1x32xf32>
    %cst_147 = arith.constant 1.000000e+00 : f32
    %416 = vector.broadcast %cst_147 : f32 to vector<1x32xf32>
    %417 = arith.addf %416, %415 : vector<1x32xf32>
    %418 = arith.divf %416, %417 : vector<1x32xf32>
    %419 = vector.extract_strided_slice %400 {offsets = [0, 64], sizes = [1, 32], strides = [1, 1]} : vector<1x96xf32> to vector<1x32xf32>
    %420 = vector.extract_strided_slice %402 {offsets = [0, 64], sizes = [1, 32], strides = [1, 1]} : vector<1x96xf32> to vector<1x32xf32>
    %421 = arith.mulf %410, %420 : vector<1x32xf32>
    %422 = arith.addf %419, %421 : vector<1x32xf32>
    %423 = math.tanh %422 : vector<1x32xf32>
    %cst_148 = arith.constant 1.000000e+00 : f32
    %424 = vector.broadcast %cst_148 : f32 to vector<1x32xf32>
    %425 = arith.subf %424, %418 : vector<1x32xf32>
    %426 = arith.mulf %425, %423 : vector<1x32xf32>
    %427 = arith.mulf %418, %351 : vector<1x32xf32>
    %428 = arith.addf %426, %427 : vector<1x32xf32>
    %cst_149 = arith.constant dense<0.000000e+00> : vector<1x2xf32>
    %429 = tpu.matmul %428, %4, %cst_149 {dimension_numbers = #tpu.dot_dimension_numbers<[1], [1], [0], [0], [0, 0, 1, 0], [], []>} : vector<1x32xf32>, vector<2x32xf32>, vector<1x2xf32> -> vector<1x2xf32>
    %cst_150 = arith.constant dense<0xFF800000> : vector<1xf32>
    %430 = vector.multi_reduction <maximumf>, %429, %cst_150 [1] : vector<1x2xf32> to vector<1xf32>
    %431 = vector.shape_cast %430 : vector<1xf32> to vector<1x1xf32>
    %432 = vector.broadcast %431 : vector<1x1xf32> to vector<1x2xf32>
    %433 = arith.subf %429, %432 : vector<1x2xf32>
    %434 = math.exp %433 : vector<1x2xf32>
    %cst_151 = arith.constant dense<0.000000e+00> : vector<1xf32>
    %435 = vector.multi_reduction <add>, %434, %cst_151 [1] : vector<1x2xf32> to vector<1xf32>
    %436 = vector.shape_cast %435 : vector<1xf32> to vector<1x1xf32>
    %437 = tpu.reciprocal %436 : vector<1x1xf32> -> vector<1x1xf32>
    %438 = vector.broadcast %437 : vector<1x1xf32> to vector<1x2xf32>
    %439 = arith.mulf %434, %438 : vector<1x2xf32>
    %cst_152 = arith.constant dense<0.000000e+00> : vector<1x32xf32>
    %440 = tpu.matmul %439, %4, %cst_152 {dimension_numbers = #tpu.dot_dimension_numbers<[1], [0], [0], [1], [0, 0, 1, 1], [], []>} : vector<1x2xf32>, vector<2x32xf32>, vector<1x32xf32> -> vector<1x32xf32>
    %c0_153 = arith.constant 0 : index
    %c0_154 = arith.constant 0 : index
    %441 = vector.load %arg13[%c0_153, %c0_154] : memref<1x64xf32, #tpu.memory_space<vmem>>, vector<1x32xf32>
    tpu.vector_store %arg13[%c0_153, %c0_154], %428 {strides = array<i32>} : memref<1x64xf32, #tpu.memory_space<vmem>>, vector<1x32xf32>,
    %c0_155 = arith.constant 0 : index
    %c32_156 = arith.constant 32 : index
    %442 = vector.load %arg13[%c0_155, %c32_156] : memref<1x64xf32, #tpu.memory_space<vmem>>, vector<1x32xf32>
    tpu.vector_store %arg13[%c0_155, %c32_156], %440 {strides = array<i32>} : memref<1x64xf32, #tpu.memory_space<vmem>>, vector<1x32xf32>,
    %c0_157 = arith.constant 0 : index
    %c0_158 = arith.constant 0 : index
    %443 = vector.load %arg13[%c0_157, %c0_158] : memref<1x64xf32, #tpu.memory_space<vmem>>, vector<1x64xf32>
    %cst_159 = arith.constant dense<0.000000e+00> : vector<1x32xf32>
    %444 = tpu.matmul %443, %5, %cst_159 {dimension_numbers = #tpu.dot_dimension_numbers<[1], [0], [0], [1], [0, 0, 1, 1], [], []>} : vector<1x64xf32>, vector<64x32xf32>, vector<1x32xf32> -> vector<1x32xf32>
    %445 = arith.addf %444, %6 : vector<1x32xf32>
    %446 = math.tanh %445 : vector<1x32xf32>
    %cst_160 = arith.constant dense<0.000000e+00> : vector<1x64xf32>
    %447 = tpu.matmul %446, %7, %cst_160 {dimension_numbers = #tpu.dot_dimension_numbers<[1], [0], [0], [1], [0, 0, 1, 1], [], []>} : vector<1x32xf32>, vector<32x64xf32>, vector<1x64xf32> -> vector<1x64xf32>
    %448 = arith.addf %447, %8 : vector<1x64xf32>
    %cst_161 = arith.constant dense<0xFF800000> : vector<1xf32>
    %449 = vector.multi_reduction <maximumf>, %448, %cst_161 [1] : vector<1x64xf32> to vector<1xf32>
    %450 = vector.shape_cast %449 : vector<1xf32> to vector<1x1xf32>
    %451 = vector.broadcast %450 : vector<1x1xf32> to vector<1x64xf32>
    %452 = arith.subf %448, %451 : vector<1x64xf32>
    %cst_162 = arith.constant 0.000000e+00 : f32
    %453 = vector.broadcast %cst_162 : f32 to vector<1x64xf32>
    %454 = arith.cmpf oeq, %452, %453 : vector<1x64xf32>
    %c64_i32_163 = arith.constant 64 : i32
    %455 = vector.broadcast %c64_i32_163 : i32 to vector<1x64xi32>
    %456 = arith.select %454, %9, %455 : vector<1x64xi1>, vector<1x64xi32>
    %457 = vector.shape_cast %456 : vector<1x64xi32> to vector<1x1x64xi32>
    %cst_164 = arith.constant dense<2147483647> : vector<1xi32>
    %458 = vector.multi_reduction <minsi>, %457, %cst_164 [1, 2] : vector<1x1x64xi32> to vector<1xi32>
    %459 = vector.shape_cast %458 : vector<1xi32> to vector<1x1x1xi32>
    %460 = vector.extract %459[0, 0, 0] : i32 from vector<1x1x1xi32>
    %461 = math.exp %452 : vector<1x64xf32>
    %cst_165 = arith.constant dense<0.000000e+00> : vector<1xf32>
    %462 = vector.multi_reduction <add>, %461, %cst_165 [1] : vector<1x64xf32> to vector<1xf32>
    %463 = vector.shape_cast %462 : vector<1xf32> to vector<1x1xf32>
    %464 = tpu.reciprocal %463 {approx = true} : vector<1x1xf32> -> vector<1x1xf32>
    %465 = vector.shape_cast %464 : vector<1x1xf32> to vector<1x1x1xf32>
    %cst_166 = arith.constant dense<0xFF800000> : vector<1xf32>
    %466 = vector.multi_reduction <maximumf>, %465, %cst_166 [1, 2] : vector<1x1x1xf32> to vector<1xf32>
    %467 = vector.shape_cast %466 : vector<1xf32> to vector<1x1x1xf32>
    %468 = vector.extract %467[0, 0, 0] : f32 from vector<1x1x1xf32>
    %469 = arith.index_cast %c5_i32 : i32 to index
    %470 = memref.load %arg11[%469] : memref<10xi32, #tpu.memory_space<smem>>
    memref.store %460, %arg11[%469] : memref<10xi32, #tpu.memory_space<smem>>
    %471 = arith.index_cast %c5_i32 : i32 to index
    %472 = memref.load %arg12[%471] : memref<10xf32, #tpu.memory_space<smem>>
    memref.store %468, %arg12[%471] : memref<10xf32, #tpu.memory_space<smem>>
    %c6_i32 = arith.constant 6 : i32
    %473 = arith.index_cast %460 : i32 to index
    %c0_167 = arith.constant 0 : index
    %c0_168 = arith.constant 0 : index
    %474 = vector.load %arg0[%473, %c0_167, %c0_168] : memref<64x1x32xf32, #tpu.memory_space<vmem>>, vector<1x1x32xf32>
    %475 = vector.shape_cast %474 : vector<1x1x32xf32> to vector<1x32xf32>
    %cst_169 = arith.constant dense<0.000000e+00> : vector<1x96xf32>
    %476 = tpu.matmul %475, %0, %cst_169 {dimension_numbers = #tpu.dot_dimension_numbers<[1], [0], [0], [1], [0, 0, 1, 1], [], []>} : vector<1x32xf32>, vector<32x96xf32>, vector<1x96xf32> -> vector<1x96xf32>
    %477 = arith.addf %476, %2 : vector<1x96xf32>
    %cst_170 = arith.constant dense<0.000000e+00> : vector<1x96xf32>
    %478 = tpu.matmul %428, %1, %cst_170 {dimension_numbers = #tpu.dot_dimension_numbers<[1], [0], [0], [1], [0, 0, 1, 1], [], []>} : vector<1x32xf32>, vector<32x96xf32>, vector<1x96xf32> -> vector<1x96xf32>
    %479 = arith.addf %478, %3 : vector<1x96xf32>
    %480 = vector.extract_strided_slice %477 {offsets = [0, 0], sizes = [1, 32], strides = [1, 1]} : vector<1x96xf32> to vector<1x32xf32>
    %481 = vector.extract_strided_slice %479 {offsets = [0, 0], sizes = [1, 32], strides = [1, 1]} : vector<1x96xf32> to vector<1x32xf32>
    %482 = arith.addf %480, %481 : vector<1x32xf32>
    %483 = arith.negf %482 : vector<1x32xf32>
    %484 = math.exp %483 : vector<1x32xf32>
    %cst_171 = arith.constant 1.000000e+00 : f32
    %485 = vector.broadcast %cst_171 : f32 to vector<1x32xf32>
    %486 = arith.addf %485, %484 : vector<1x32xf32>
    %487 = arith.divf %485, %486 : vector<1x32xf32>
    %488 = vector.extract_strided_slice %477 {offsets = [0, 32], sizes = [1, 32], strides = [1, 1]} : vector<1x96xf32> to vector<1x32xf32>
    %489 = vector.extract_strided_slice %479 {offsets = [0, 32], sizes = [1, 32], strides = [1, 1]} : vector<1x96xf32> to vector<1x32xf32>
    %490 = arith.addf %488, %489 : vector<1x32xf32>
    %491 = arith.negf %490 : vector<1x32xf32>
    %492 = math.exp %491 : vector<1x32xf32>
    %cst_172 = arith.constant 1.000000e+00 : f32
    %493 = vector.broadcast %cst_172 : f32 to vector<1x32xf32>
    %494 = arith.addf %493, %492 : vector<1x32xf32>
    %495 = arith.divf %493, %494 : vector<1x32xf32>
    %496 = vector.extract_strided_slice %477 {offsets = [0, 64], sizes = [1, 32], strides = [1, 1]} : vector<1x96xf32> to vector<1x32xf32>
    %497 = vector.extract_strided_slice %479 {offsets = [0, 64], sizes = [1, 32], strides = [1, 1]} : vector<1x96xf32> to vector<1x32xf32>
    %498 = arith.mulf %487, %497 : vector<1x32xf32>
    %499 = arith.addf %496, %498 : vector<1x32xf32>
    %500 = math.tanh %499 : vector<1x32xf32>
    %cst_173 = arith.constant 1.000000e+00 : f32
    %501 = vector.broadcast %cst_173 : f32 to vector<1x32xf32>
    %502 = arith.subf %501, %495 : vector<1x32xf32>
    %503 = arith.mulf %502, %500 : vector<1x32xf32>
    %504 = arith.mulf %495, %428 : vector<1x32xf32>
    %505 = arith.addf %503, %504 : vector<1x32xf32>
    %cst_174 = arith.constant dense<0.000000e+00> : vector<1x2xf32>
    %506 = tpu.matmul %505, %4, %cst_174 {dimension_numbers = #tpu.dot_dimension_numbers<[1], [1], [0], [0], [0, 0, 1, 0], [], []>} : vector<1x32xf32>, vector<2x32xf32>, vector<1x2xf32> -> vector<1x2xf32>
    %cst_175 = arith.constant dense<0xFF800000> : vector<1xf32>
    %507 = vector.multi_reduction <maximumf>, %506, %cst_175 [1] : vector<1x2xf32> to vector<1xf32>
    %508 = vector.shape_cast %507 : vector<1xf32> to vector<1x1xf32>
    %509 = vector.broadcast %508 : vector<1x1xf32> to vector<1x2xf32>
    %510 = arith.subf %506, %509 : vector<1x2xf32>
    %511 = math.exp %510 : vector<1x2xf32>
    %cst_176 = arith.constant dense<0.000000e+00> : vector<1xf32>
    %512 = vector.multi_reduction <add>, %511, %cst_176 [1] : vector<1x2xf32> to vector<1xf32>
    %513 = vector.shape_cast %512 : vector<1xf32> to vector<1x1xf32>
    %514 = tpu.reciprocal %513 : vector<1x1xf32> -> vector<1x1xf32>
    %515 = vector.broadcast %514 : vector<1x1xf32> to vector<1x2xf32>
    %516 = arith.mulf %511, %515 : vector<1x2xf32>
    %cst_177 = arith.constant dense<0.000000e+00> : vector<1x32xf32>
    %517 = tpu.matmul %516, %4, %cst_177 {dimension_numbers = #tpu.dot_dimension_numbers<[1], [0], [0], [1], [0, 0, 1, 1], [], []>} : vector<1x2xf32>, vector<2x32xf32>, vector<1x32xf32> -> vector<1x32xf32>
    %c0_178 = arith.constant 0 : index
    %c0_179 = arith.constant 0 : index
    %518 = vector.load %arg13[%c0_178, %c0_179] : memref<1x64xf32, #tpu.memory_space<vmem>>, vector<1x32xf32>
    tpu.vector_store %arg13[%c0_178, %c0_179], %505 {strides = array<i32>} : memref<1x64xf32, #tpu.memory_space<vmem>>, vector<1x32xf32>,
    %c0_180 = arith.constant 0 : index
    %c32_181 = arith.constant 32 : index
    %519 = vector.load %arg13[%c0_180, %c32_181] : memref<1x64xf32, #tpu.memory_space<vmem>>, vector<1x32xf32>
    tpu.vector_store %arg13[%c0_180, %c32_181], %517 {strides = array<i32>} : memref<1x64xf32, #tpu.memory_space<vmem>>, vector<1x32xf32>,
    %c0_182 = arith.constant 0 : index
    %c0_183 = arith.constant 0 : index
    %520 = vector.load %arg13[%c0_182, %c0_183] : memref<1x64xf32, #tpu.memory_space<vmem>>, vector<1x64xf32>
    %cst_184 = arith.constant dense<0.000000e+00> : vector<1x32xf32>
    %521 = tpu.matmul %520, %5, %cst_184 {dimension_numbers = #tpu.dot_dimension_numbers<[1], [0], [0], [1], [0, 0, 1, 1], [], []>} : vector<1x64xf32>, vector<64x32xf32>, vector<1x32xf32> -> vector<1x32xf32>
    %522 = arith.addf %521, %6 : vector<1x32xf32>
    %523 = math.tanh %522 : vector<1x32xf32>
    %cst_185 = arith.constant dense<0.000000e+00> : vector<1x64xf32>
    %524 = tpu.matmul %523, %7, %cst_185 {dimension_numbers = #tpu.dot_dimension_numbers<[1], [0], [0], [1], [0, 0, 1, 1], [], []>} : vector<1x32xf32>, vector<32x64xf32>, vector<1x64xf32> -> vector<1x64xf32>
    %525 = arith.addf %524, %8 : vector<1x64xf32>
    %cst_186 = arith.constant dense<0xFF800000> : vector<1xf32>
    %526 = vector.multi_reduction <maximumf>, %525, %cst_186 [1] : vector<1x64xf32> to vector<1xf32>
    %527 = vector.shape_cast %526 : vector<1xf32> to vector<1x1xf32>
    %528 = vector.broadcast %527 : vector<1x1xf32> to vector<1x64xf32>
    %529 = arith.subf %525, %528 : vector<1x64xf32>
    %cst_187 = arith.constant 0.000000e+00 : f32
    %530 = vector.broadcast %cst_187 : f32 to vector<1x64xf32>
    %531 = arith.cmpf oeq, %529, %530 : vector<1x64xf32>
    %c64_i32_188 = arith.constant 64 : i32
    %532 = vector.broadcast %c64_i32_188 : i32 to vector<1x64xi32>
    %533 = arith.select %531, %9, %532 : vector<1x64xi1>, vector<1x64xi32>
    %534 = vector.shape_cast %533 : vector<1x64xi32> to vector<1x1x64xi32>
    %cst_189 = arith.constant dense<2147483647> : vector<1xi32>
    %535 = vector.multi_reduction <minsi>, %534, %cst_189 [1, 2] : vector<1x1x64xi32> to vector<1xi32>
    %536 = vector.shape_cast %535 : vector<1xi32> to vector<1x1x1xi32>
    %537 = vector.extract %536[0, 0, 0] : i32 from vector<1x1x1xi32>
    %538 = math.exp %529 : vector<1x64xf32>
    %cst_190 = arith.constant dense<0.000000e+00> : vector<1xf32>
    %539 = vector.multi_reduction <add>, %538, %cst_190 [1] : vector<1x64xf32> to vector<1xf32>
    %540 = vector.shape_cast %539 : vector<1xf32> to vector<1x1xf32>
    %541 = tpu.reciprocal %540 {approx = true} : vector<1x1xf32> -> vector<1x1xf32>
    %542 = vector.shape_cast %541 : vector<1x1xf32> to vector<1x1x1xf32>
    %cst_191 = arith.constant dense<0xFF800000> : vector<1xf32>
    %543 = vector.multi_reduction <maximumf>, %542, %cst_191 [1, 2] : vector<1x1x1xf32> to vector<1xf32>
    %544 = vector.shape_cast %543 : vector<1xf32> to vector<1x1x1xf32>
    %545 = vector.extract %544[0, 0, 0] : f32 from vector<1x1x1xf32>
    %546 = arith.index_cast %c6_i32 : i32 to index
    %547 = memref.load %arg11[%546] : memref<10xi32, #tpu.memory_space<smem>>
    memref.store %537, %arg11[%546] : memref<10xi32, #tpu.memory_space<smem>>
    %548 = arith.index_cast %c6_i32 : i32 to index
    %549 = memref.load %arg12[%548] : memref<10xf32, #tpu.memory_space<smem>>
    memref.store %545, %arg12[%548] : memref<10xf32, #tpu.memory_space<smem>>
    %c7_i32 = arith.constant 7 : i32
    %550 = arith.index_cast %537 : i32 to index
    %c0_192 = arith.constant 0 : index
    %c0_193 = arith.constant 0 : index
    %551 = vector.load %arg0[%550, %c0_192, %c0_193] : memref<64x1x32xf32, #tpu.memory_space<vmem>>, vector<1x1x32xf32>
    %552 = vector.shape_cast %551 : vector<1x1x32xf32> to vector<1x32xf32>
    %cst_194 = arith.constant dense<0.000000e+00> : vector<1x96xf32>
    %553 = tpu.matmul %552, %0, %cst_194 {dimension_numbers = #tpu.dot_dimension_numbers<[1], [0], [0], [1], [0, 0, 1, 1], [], []>} : vector<1x32xf32>, vector<32x96xf32>, vector<1x96xf32> -> vector<1x96xf32>
    %554 = arith.addf %553, %2 : vector<1x96xf32>
    %cst_195 = arith.constant dense<0.000000e+00> : vector<1x96xf32>
    %555 = tpu.matmul %505, %1, %cst_195 {dimension_numbers = #tpu.dot_dimension_numbers<[1], [0], [0], [1], [0, 0, 1, 1], [], []>} : vector<1x32xf32>, vector<32x96xf32>, vector<1x96xf32> -> vector<1x96xf32>
    %556 = arith.addf %555, %3 : vector<1x96xf32>
    %557 = vector.extract_strided_slice %554 {offsets = [0, 0], sizes = [1, 32], strides = [1, 1]} : vector<1x96xf32> to vector<1x32xf32>
    %558 = vector.extract_strided_slice %556 {offsets = [0, 0], sizes = [1, 32], strides = [1, 1]} : vector<1x96xf32> to vector<1x32xf32>
    %559 = arith.addf %557, %558 : vector<1x32xf32>
    %560 = arith.negf %559 : vector<1x32xf32>
    %561 = math.exp %560 : vector<1x32xf32>
    %cst_196 = arith.constant 1.000000e+00 : f32
    %562 = vector.broadcast %cst_196 : f32 to vector<1x32xf32>
    %563 = arith.addf %562, %561 : vector<1x32xf32>
    %564 = arith.divf %562, %563 : vector<1x32xf32>
    %565 = vector.extract_strided_slice %554 {offsets = [0, 32], sizes = [1, 32], strides = [1, 1]} : vector<1x96xf32> to vector<1x32xf32>
    %566 = vector.extract_strided_slice %556 {offsets = [0, 32], sizes = [1, 32], strides = [1, 1]} : vector<1x96xf32> to vector<1x32xf32>
    %567 = arith.addf %565, %566 : vector<1x32xf32>
    %568 = arith.negf %567 : vector<1x32xf32>
    %569 = math.exp %568 : vector<1x32xf32>
    %cst_197 = arith.constant 1.000000e+00 : f32
    %570 = vector.broadcast %cst_197 : f32 to vector<1x32xf32>
    %571 = arith.addf %570, %569 : vector<1x32xf32>
    %572 = arith.divf %570, %571 : vector<1x32xf32>
    %573 = vector.extract_strided_slice %554 {offsets = [0, 64], sizes = [1, 32], strides = [1, 1]} : vector<1x96xf32> to vector<1x32xf32>
    %574 = vector.extract_strided_slice %556 {offsets = [0, 64], sizes = [1, 32], strides = [1, 1]} : vector<1x96xf32> to vector<1x32xf32>
    %575 = arith.mulf %564, %574 : vector<1x32xf32>
    %576 = arith.addf %573, %575 : vector<1x32xf32>
    %577 = math.tanh %576 : vector<1x32xf32>
    %cst_198 = arith.constant 1.000000e+00 : f32
    %578 = vector.broadcast %cst_198 : f32 to vector<1x32xf32>
    %579 = arith.subf %578, %572 : vector<1x32xf32>
    %580 = arith.mulf %579, %577 : vector<1x32xf32>
    %581 = arith.mulf %572, %505 : vector<1x32xf32>
    %582 = arith.addf %580, %581 : vector<1x32xf32>
    %cst_199 = arith.constant dense<0.000000e+00> : vector<1x2xf32>
    %583 = tpu.matmul %582, %4, %cst_199 {dimension_numbers = #tpu.dot_dimension_numbers<[1], [1], [0], [0], [0, 0, 1, 0], [], []>} : vector<1x32xf32>, vector<2x32xf32>, vector<1x2xf32> -> vector<1x2xf32>
    %cst_200 = arith.constant dense<0xFF800000> : vector<1xf32>
    %584 = vector.multi_reduction <maximumf>, %583, %cst_200 [1] : vector<1x2xf32> to vector<1xf32>
    %585 = vector.shape_cast %584 : vector<1xf32> to vector<1x1xf32>
    %586 = vector.broadcast %585 : vector<1x1xf32> to vector<1x2xf32>
    %587 = arith.subf %583, %586 : vector<1x2xf32>
    %588 = math.exp %587 : vector<1x2xf32>
    %cst_201 = arith.constant dense<0.000000e+00> : vector<1xf32>
    %589 = vector.multi_reduction <add>, %588, %cst_201 [1] : vector<1x2xf32> to vector<1xf32>
    %590 = vector.shape_cast %589 : vector<1xf32> to vector<1x1xf32>
    %591 = tpu.reciprocal %590 : vector<1x1xf32> -> vector<1x1xf32>
    %592 = vector.broadcast %591 : vector<1x1xf32> to vector<1x2xf32>
    %593 = arith.mulf %588, %592 : vector<1x2xf32>
    %cst_202 = arith.constant dense<0.000000e+00> : vector<1x32xf32>
    %594 = tpu.matmul %593, %4, %cst_202 {dimension_numbers = #tpu.dot_dimension_numbers<[1], [0], [0], [1], [0, 0, 1, 1], [], []>} : vector<1x2xf32>, vector<2x32xf32>, vector<1x32xf32> -> vector<1x32xf32>
    %c0_203 = arith.constant 0 : index
    %c0_204 = arith.constant 0 : index
    %595 = vector.load %arg13[%c0_203, %c0_204] : memref<1x64xf32, #tpu.memory_space<vmem>>, vector<1x32xf32>
    tpu.vector_store %arg13[%c0_203, %c0_204], %582 {strides = array<i32>} : memref<1x64xf32, #tpu.memory_space<vmem>>, vector<1x32xf32>,
    %c0_205 = arith.constant 0 : index
    %c32_206 = arith.constant 32 : index
    %596 = vector.load %arg13[%c0_205, %c32_206] : memref<1x64xf32, #tpu.memory_space<vmem>>, vector<1x32xf32>
    tpu.vector_store %arg13[%c0_205, %c32_206], %594 {strides = array<i32>} : memref<1x64xf32, #tpu.memory_space<vmem>>, vector<1x32xf32>,
    %c0_207 = arith.constant 0 : index
    %c0_208 = arith.constant 0 : index
    %597 = vector.load %arg13[%c0_207, %c0_208] : memref<1x64xf32, #tpu.memory_space<vmem>>, vector<1x64xf32>
    %cst_209 = arith.constant dense<0.000000e+00> : vector<1x32xf32>
    %598 = tpu.matmul %597, %5, %cst_209 {dimension_numbers = #tpu.dot_dimension_numbers<[1], [0], [0], [1], [0, 0, 1, 1], [], []>} : vector<1x64xf32>, vector<64x32xf32>, vector<1x32xf32> -> vector<1x32xf32>
    %599 = arith.addf %598, %6 : vector<1x32xf32>
    %600 = math.tanh %599 : vector<1x32xf32>
    %cst_210 = arith.constant dense<0.000000e+00> : vector<1x64xf32>
    %601 = tpu.matmul %600, %7, %cst_210 {dimension_numbers = #tpu.dot_dimension_numbers<[1], [0], [0], [1], [0, 0, 1, 1], [], []>} : vector<1x32xf32>, vector<32x64xf32>, vector<1x64xf32> -> vector<1x64xf32>
    %602 = arith.addf %601, %8 : vector<1x64xf32>
    %cst_211 = arith.constant dense<0xFF800000> : vector<1xf32>
    %603 = vector.multi_reduction <maximumf>, %602, %cst_211 [1] : vector<1x64xf32> to vector<1xf32>
    %604 = vector.shape_cast %603 : vector<1xf32> to vector<1x1xf32>
    %605 = vector.broadcast %604 : vector<1x1xf32> to vector<1x64xf32>
    %606 = arith.subf %602, %605 : vector<1x64xf32>
    %cst_212 = arith.constant 0.000000e+00 : f32
    %607 = vector.broadcast %cst_212 : f32 to vector<1x64xf32>
    %608 = arith.cmpf oeq, %606, %607 : vector<1x64xf32>
    %c64_i32_213 = arith.constant 64 : i32
    %609 = vector.broadcast %c64_i32_213 : i32 to vector<1x64xi32>
    %610 = arith.select %608, %9, %609 : vector<1x64xi1>, vector<1x64xi32>
    %611 = vector.shape_cast %610 : vector<1x64xi32> to vector<1x1x64xi32>
    %cst_214 = arith.constant dense<2147483647> : vector<1xi32>
    %612 = vector.multi_reduction <minsi>, %611, %cst_214 [1, 2] : vector<1x1x64xi32> to vector<1xi32>
    %613 = vector.shape_cast %612 : vector<1xi32> to vector<1x1x1xi32>
    %614 = vector.extract %613[0, 0, 0] : i32 from vector<1x1x1xi32>
    %615 = math.exp %606 : vector<1x64xf32>
    %cst_215 = arith.constant dense<0.000000e+00> : vector<1xf32>
    %616 = vector.multi_reduction <add>, %615, %cst_215 [1] : vector<1x64xf32> to vector<1xf32>
    %617 = vector.shape_cast %616 : vector<1xf32> to vector<1x1xf32>
    %618 = tpu.reciprocal %617 {approx = true} : vector<1x1xf32> -> vector<1x1xf32>
    %619 = vector.shape_cast %618 : vector<1x1xf32> to vector<1x1x1xf32>
    %cst_216 = arith.constant dense<0xFF800000> : vector<1xf32>
    %620 = vector.multi_reduction <maximumf>, %619, %cst_216 [1, 2] : vector<1x1x1xf32> to vector<1xf32>
    %621 = vector.shape_cast %620 : vector<1xf32> to vector<1x1x1xf32>
    %622 = vector.extract %621[0, 0, 0] : f32 from vector<1x1x1xf32>
    %623 = arith.index_cast %c7_i32 : i32 to index
    %624 = memref.load %arg11[%623] : memref<10xi32, #tpu.memory_space<smem>>
    memref.store %614, %arg11[%623] : memref<10xi32, #tpu.memory_space<smem>>
    %625 = arith.index_cast %c7_i32 : i32 to index
    %626 = memref.load %arg12[%625] : memref<10xf32, #tpu.memory_space<smem>>
    memref.store %622, %arg12[%625] : memref<10xf32, #tpu.memory_space<smem>>
    %c8_i32 = arith.constant 8 : i32
    %627 = arith.index_cast %614 : i32 to index
    %c0_217 = arith.constant 0 : index
    %c0_218 = arith.constant 0 : index
    %628 = vector.load %arg0[%627, %c0_217, %c0_218] : memref<64x1x32xf32, #tpu.memory_space<vmem>>, vector<1x1x32xf32>
    %629 = vector.shape_cast %628 : vector<1x1x32xf32> to vector<1x32xf32>
    %cst_219 = arith.constant dense<0.000000e+00> : vector<1x96xf32>
    %630 = tpu.matmul %629, %0, %cst_219 {dimension_numbers = #tpu.dot_dimension_numbers<[1], [0], [0], [1], [0, 0, 1, 1], [], []>} : vector<1x32xf32>, vector<32x96xf32>, vector<1x96xf32> -> vector<1x96xf32>
    %631 = arith.addf %630, %2 : vector<1x96xf32>
    %cst_220 = arith.constant dense<0.000000e+00> : vector<1x96xf32>
    %632 = tpu.matmul %582, %1, %cst_220 {dimension_numbers = #tpu.dot_dimension_numbers<[1], [0], [0], [1], [0, 0, 1, 1], [], []>} : vector<1x32xf32>, vector<32x96xf32>, vector<1x96xf32> -> vector<1x96xf32>
    %633 = arith.addf %632, %3 : vector<1x96xf32>
    %634 = vector.extract_strided_slice %631 {offsets = [0, 0], sizes = [1, 32], strides = [1, 1]} : vector<1x96xf32> to vector<1x32xf32>
    %635 = vector.extract_strided_slice %633 {offsets = [0, 0], sizes = [1, 32], strides = [1, 1]} : vector<1x96xf32> to vector<1x32xf32>
    %636 = arith.addf %634, %635 : vector<1x32xf32>
    %637 = arith.negf %636 : vector<1x32xf32>
    %638 = math.exp %637 : vector<1x32xf32>
    %cst_221 = arith.constant 1.000000e+00 : f32
    %639 = vector.broadcast %cst_221 : f32 to vector<1x32xf32>
    %640 = arith.addf %639, %638 : vector<1x32xf32>
    %641 = arith.divf %639, %640 : vector<1x32xf32>
    %642 = vector.extract_strided_slice %631 {offsets = [0, 32], sizes = [1, 32], strides = [1, 1]} : vector<1x96xf32> to vector<1x32xf32>
    %643 = vector.extract_strided_slice %633 {offsets = [0, 32], sizes = [1, 32], strides = [1, 1]} : vector<1x96xf32> to vector<1x32xf32>
    %644 = arith.addf %642, %643 : vector<1x32xf32>
    %645 = arith.negf %644 : vector<1x32xf32>
    %646 = math.exp %645 : vector<1x32xf32>
    %cst_222 = arith.constant 1.000000e+00 : f32
    %647 = vector.broadcast %cst_222 : f32 to vector<1x32xf32>
    %648 = arith.addf %647, %646 : vector<1x32xf32>
    %649 = arith.divf %647, %648 : vector<1x32xf32>
    %650 = vector.extract_strided_slice %631 {offsets = [0, 64], sizes = [1, 32], strides = [1, 1]} : vector<1x96xf32> to vector<1x32xf32>
    %651 = vector.extract_strided_slice %633 {offsets = [0, 64], sizes = [1, 32], strides = [1, 1]} : vector<1x96xf32> to vector<1x32xf32>
    %652 = arith.mulf %641, %651 : vector<1x32xf32>
    %653 = arith.addf %650, %652 : vector<1x32xf32>
    %654 = math.tanh %653 : vector<1x32xf32>
    %cst_223 = arith.constant 1.000000e+00 : f32
    %655 = vector.broadcast %cst_223 : f32 to vector<1x32xf32>
    %656 = arith.subf %655, %649 : vector<1x32xf32>
    %657 = arith.mulf %656, %654 : vector<1x32xf32>
    %658 = arith.mulf %649, %582 : vector<1x32xf32>
    %659 = arith.addf %657, %658 : vector<1x32xf32>
    %cst_224 = arith.constant dense<0.000000e+00> : vector<1x2xf32>
    %660 = tpu.matmul %659, %4, %cst_224 {dimension_numbers = #tpu.dot_dimension_numbers<[1], [1], [0], [0], [0, 0, 1, 0], [], []>} : vector<1x32xf32>, vector<2x32xf32>, vector<1x2xf32> -> vector<1x2xf32>
    %cst_225 = arith.constant dense<0xFF800000> : vector<1xf32>
    %661 = vector.multi_reduction <maximumf>, %660, %cst_225 [1] : vector<1x2xf32> to vector<1xf32>
    %662 = vector.shape_cast %661 : vector<1xf32> to vector<1x1xf32>
    %663 = vector.broadcast %662 : vector<1x1xf32> to vector<1x2xf32>
    %664 = arith.subf %660, %663 : vector<1x2xf32>
    %665 = math.exp %664 : vector<1x2xf32>
    %cst_226 = arith.constant dense<0.000000e+00> : vector<1xf32>
    %666 = vector.multi_reduction <add>, %665, %cst_226 [1] : vector<1x2xf32> to vector<1xf32>
    %667 = vector.shape_cast %666 : vector<1xf32> to vector<1x1xf32>
    %668 = tpu.reciprocal %667 : vector<1x1xf32> -> vector<1x1xf32>
    %669 = vector.broadcast %668 : vector<1x1xf32> to vector<1x2xf32>
    %670 = arith.mulf %665, %669 : vector<1x2xf32>
    %cst_227 = arith.constant dense<0.000000e+00> : vector<1x32xf32>
    %671 = tpu.matmul %670, %4, %cst_227 {dimension_numbers = #tpu.dot_dimension_numbers<[1], [0], [0], [1], [0, 0, 1, 1], [], []>} : vector<1x2xf32>, vector<2x32xf32>, vector<1x32xf32> -> vector<1x32xf32>
    %c0_228 = arith.constant 0 : index
    %c0_229 = arith.constant 0 : index
    %672 = vector.load %arg13[%c0_228, %c0_229] : memref<1x64xf32, #tpu.memory_space<vmem>>, vector<1x32xf32>
    tpu.vector_store %arg13[%c0_228, %c0_229], %659 {strides = array<i32>} : memref<1x64xf32, #tpu.memory_space<vmem>>, vector<1x32xf32>,
    %c0_230 = arith.constant 0 : index
    %c32_231 = arith.constant 32 : index
    %673 = vector.load %arg13[%c0_230, %c32_231] : memref<1x64xf32, #tpu.memory_space<vmem>>, vector<1x32xf32>
    tpu.vector_store %arg13[%c0_230, %c32_231], %671 {strides = array<i32>} : memref<1x64xf32, #tpu.memory_space<vmem>>, vector<1x32xf32>,
    %c0_232 = arith.constant 0 : index
    %c0_233 = arith.constant 0 : index
    %674 = vector.load %arg13[%c0_232, %c0_233] : memref<1x64xf32, #tpu.memory_space<vmem>>, vector<1x64xf32>
    %cst_234 = arith.constant dense<0.000000e+00> : vector<1x32xf32>
    %675 = tpu.matmul %674, %5, %cst_234 {dimension_numbers = #tpu.dot_dimension_numbers<[1], [0], [0], [1], [0, 0, 1, 1], [], []>} : vector<1x64xf32>, vector<64x32xf32>, vector<1x32xf32> -> vector<1x32xf32>
    %676 = arith.addf %675, %6 : vector<1x32xf32>
    %677 = math.tanh %676 : vector<1x32xf32>
    %cst_235 = arith.constant dense<0.000000e+00> : vector<1x64xf32>
    %678 = tpu.matmul %677, %7, %cst_235 {dimension_numbers = #tpu.dot_dimension_numbers<[1], [0], [0], [1], [0, 0, 1, 1], [], []>} : vector<1x32xf32>, vector<32x64xf32>, vector<1x64xf32> -> vector<1x64xf32>
    %679 = arith.addf %678, %8 : vector<1x64xf32>
    %cst_236 = arith.constant dense<0xFF800000> : vector<1xf32>
    %680 = vector.multi_reduction <maximumf>, %679, %cst_236 [1] : vector<1x64xf32> to vector<1xf32>
    %681 = vector.shape_cast %680 : vector<1xf32> to vector<1x1xf32>
    %682 = vector.broadcast %681 : vector<1x1xf32> to vector<1x64xf32>
    %683 = arith.subf %679, %682 : vector<1x64xf32>
    %cst_237 = arith.constant 0.000000e+00 : f32
    %684 = vector.broadcast %cst_237 : f32 to vector<1x64xf32>
    %685 = arith.cmpf oeq, %683, %684 : vector<1x64xf32>
    %c64_i32_238 = arith.constant 64 : i32
    %686 = vector.broadcast %c64_i32_238 : i32 to vector<1x64xi32>
    %687 = arith.select %685, %9, %686 : vector<1x64xi1>, vector<1x64xi32>
    %688 = vector.shape_cast %687 : vector<1x64xi32> to vector<1x1x64xi32>
    %cst_239 = arith.constant dense<2147483647> : vector<1xi32>
    %689 = vector.multi_reduction <minsi>, %688, %cst_239 [1, 2] : vector<1x1x64xi32> to vector<1xi32>
    %690 = vector.shape_cast %689 : vector<1xi32> to vector<1x1x1xi32>
    %691 = vector.extract %690[0, 0, 0] : i32 from vector<1x1x1xi32>
    %692 = math.exp %683 : vector<1x64xf32>
    %cst_240 = arith.constant dense<0.000000e+00> : vector<1xf32>
    %693 = vector.multi_reduction <add>, %692, %cst_240 [1] : vector<1x64xf32> to vector<1xf32>
    %694 = vector.shape_cast %693 : vector<1xf32> to vector<1x1xf32>
    %695 = tpu.reciprocal %694 {approx = true} : vector<1x1xf32> -> vector<1x1xf32>
    %696 = vector.shape_cast %695 : vector<1x1xf32> to vector<1x1x1xf32>
    %cst_241 = arith.constant dense<0xFF800000> : vector<1xf32>
    %697 = vector.multi_reduction <maximumf>, %696, %cst_241 [1, 2] : vector<1x1x1xf32> to vector<1xf32>
    %698 = vector.shape_cast %697 : vector<1xf32> to vector<1x1x1xf32>
    %699 = vector.extract %698[0, 0, 0] : f32 from vector<1x1x1xf32>
    %700 = arith.index_cast %c8_i32 : i32 to index
    %701 = memref.load %arg11[%700] : memref<10xi32, #tpu.memory_space<smem>>
    memref.store %691, %arg11[%700] : memref<10xi32, #tpu.memory_space<smem>>
    %702 = arith.index_cast %c8_i32 : i32 to index
    %703 = memref.load %arg12[%702] : memref<10xf32, #tpu.memory_space<smem>>
    memref.store %699, %arg12[%702] : memref<10xf32, #tpu.memory_space<smem>>
    %c9_i32 = arith.constant 9 : i32
    %704 = arith.index_cast %691 : i32 to index
    %c0_242 = arith.constant 0 : index
    %c0_243 = arith.constant 0 : index
    %705 = vector.load %arg0[%704, %c0_242, %c0_243] : memref<64x1x32xf32, #tpu.memory_space<vmem>>, vector<1x1x32xf32>
    %706 = vector.shape_cast %705 : vector<1x1x32xf32> to vector<1x32xf32>
    %cst_244 = arith.constant dense<0.000000e+00> : vector<1x96xf32>
    %707 = tpu.matmul %706, %0, %cst_244 {dimension_numbers = #tpu.dot_dimension_numbers<[1], [0], [0], [1], [0, 0, 1, 1], [], []>} : vector<1x32xf32>, vector<32x96xf32>, vector<1x96xf32> -> vector<1x96xf32>
    %708 = arith.addf %707, %2 : vector<1x96xf32>
    %cst_245 = arith.constant dense<0.000000e+00> : vector<1x96xf32>
    %709 = tpu.matmul %659, %1, %cst_245 {dimension_numbers = #tpu.dot_dimension_numbers<[1], [0], [0], [1], [0, 0, 1, 1], [], []>} : vector<1x32xf32>, vector<32x96xf32>, vector<1x96xf32> -> vector<1x96xf32>
    %710 = arith.addf %709, %3 : vector<1x96xf32>
    %711 = vector.extract_strided_slice %708 {offsets = [0, 0], sizes = [1, 32], strides = [1, 1]} : vector<1x96xf32> to vector<1x32xf32>
    %712 = vector.extract_strided_slice %710 {offsets = [0, 0], sizes = [1, 32], strides = [1, 1]} : vector<1x96xf32> to vector<1x32xf32>
    %713 = arith.addf %711, %712 : vector<1x32xf32>
    %714 = arith.negf %713 : vector<1x32xf32>
    %715 = math.exp %714 : vector<1x32xf32>
    %cst_246 = arith.constant 1.000000e+00 : f32
    %716 = vector.broadcast %cst_246 : f32 to vector<1x32xf32>
    %717 = arith.addf %716, %715 : vector<1x32xf32>
    %718 = arith.divf %716, %717 : vector<1x32xf32>
    %719 = vector.extract_strided_slice %708 {offsets = [0, 32], sizes = [1, 32], strides = [1, 1]} : vector<1x96xf32> to vector<1x32xf32>
    %720 = vector.extract_strided_slice %710 {offsets = [0, 32], sizes = [1, 32], strides = [1, 1]} : vector<1x96xf32> to vector<1x32xf32>
    %721 = arith.addf %719, %720 : vector<1x32xf32>
    %722 = arith.negf %721 : vector<1x32xf32>
    %723 = math.exp %722 : vector<1x32xf32>
    %cst_247 = arith.constant 1.000000e+00 : f32
    %724 = vector.broadcast %cst_247 : f32 to vector<1x32xf32>
    %725 = arith.addf %724, %723 : vector<1x32xf32>
    %726 = arith.divf %724, %725 : vector<1x32xf32>
    %727 = vector.extract_strided_slice %708 {offsets = [0, 64], sizes = [1, 32], strides = [1, 1]} : vector<1x96xf32> to vector<1x32xf32>
    %728 = vector.extract_strided_slice %710 {offsets = [0, 64], sizes = [1, 32], strides = [1, 1]} : vector<1x96xf32> to vector<1x32xf32>
    %729 = arith.mulf %718, %728 : vector<1x32xf32>
    %730 = arith.addf %727, %729 : vector<1x32xf32>
    %731 = math.tanh %730 : vector<1x32xf32>
    %cst_248 = arith.constant 1.000000e+00 : f32
    %732 = vector.broadcast %cst_248 : f32 to vector<1x32xf32>
    %733 = arith.subf %732, %726 : vector<1x32xf32>
    %734 = arith.mulf %733, %731 : vector<1x32xf32>
    %735 = arith.mulf %726, %659 : vector<1x32xf32>
    %736 = arith.addf %734, %735 : vector<1x32xf32>
    %cst_249 = arith.constant dense<0.000000e+00> : vector<1x2xf32>
    %737 = tpu.matmul %736, %4, %cst_249 {dimension_numbers = #tpu.dot_dimension_numbers<[1], [1], [0], [0], [0, 0, 1, 0], [], []>} : vector<1x32xf32>, vector<2x32xf32>, vector<1x2xf32> -> vector<1x2xf32>
    %cst_250 = arith.constant dense<0xFF800000> : vector<1xf32>
    %738 = vector.multi_reduction <maximumf>, %737, %cst_250 [1] : vector<1x2xf32> to vector<1xf32>
    %739 = vector.shape_cast %738 : vector<1xf32> to vector<1x1xf32>
    %740 = vector.broadcast %739 : vector<1x1xf32> to vector<1x2xf32>
    %741 = arith.subf %737, %740 : vector<1x2xf32>
    %742 = math.exp %741 : vector<1x2xf32>
    %cst_251 = arith.constant dense<0.000000e+00> : vector<1xf32>
    %743 = vector.multi_reduction <add>, %742, %cst_251 [1] : vector<1x2xf32> to vector<1xf32>
    %744 = vector.shape_cast %743 : vector<1xf32> to vector<1x1xf32>
    %745 = tpu.reciprocal %744 : vector<1x1xf32> -> vector<1x1xf32>
    %746 = vector.broadcast %745 : vector<1x1xf32> to vector<1x2xf32>
    %747 = arith.mulf %742, %746 : vector<1x2xf32>
    %cst_252 = arith.constant dense<0.000000e+00> : vector<1x32xf32>
    %748 = tpu.matmul %747, %4, %cst_252 {dimension_numbers = #tpu.dot_dimension_numbers<[1], [0], [0], [1], [0, 0, 1, 1], [], []>} : vector<1x2xf32>, vector<2x32xf32>, vector<1x32xf32> -> vector<1x32xf32>
    %c0_253 = arith.constant 0 : index
    %c0_254 = arith.constant 0 : index
    %749 = vector.load %arg13[%c0_253, %c0_254] : memref<1x64xf32, #tpu.memory_space<vmem>>, vector<1x32xf32>
    tpu.vector_store %arg13[%c0_253, %c0_254], %736 {strides = array<i32>} : memref<1x64xf32, #tpu.memory_space<vmem>>, vector<1x32xf32>,
    %c0_255 = arith.constant 0 : index
    %c32_256 = arith.constant 32 : index
    %750 = vector.load %arg13[%c0_255, %c32_256] : memref<1x64xf32, #tpu.memory_space<vmem>>, vector<1x32xf32>
    tpu.vector_store %arg13[%c0_255, %c32_256], %748 {strides = array<i32>} : memref<1x64xf32, #tpu.memory_space<vmem>>, vector<1x32xf32>,
    %c0_257 = arith.constant 0 : index
    %c0_258 = arith.constant 0 : index
    %751 = vector.load %arg13[%c0_257, %c0_258] : memref<1x64xf32, #tpu.memory_space<vmem>>, vector<1x64xf32>
    %cst_259 = arith.constant dense<0.000000e+00> : vector<1x32xf32>
    %752 = tpu.matmul %751, %5, %cst_259 {dimension_numbers = #tpu.dot_dimension_numbers<[1], [0], [0], [1], [0, 0, 1, 1], [], []>} : vector<1x64xf32>, vector<64x32xf32>, vector<1x32xf32> -> vector<1x32xf32>
    %753 = arith.addf %752, %6 : vector<1x32xf32>
    %754 = math.tanh %753 : vector<1x32xf32>
    %cst_260 = arith.constant dense<0.000000e+00> : vector<1x64xf32>
    %755 = tpu.matmul %754, %7, %cst_260 {dimension_numbers = #tpu.dot_dimension_numbers<[1], [0], [0], [1], [0, 0, 1, 1], [], []>} : vector<1x32xf32>, vector<32x64xf32>, vector<1x64xf32> -> vector<1x64xf32>
    %756 = arith.addf %755, %8 : vector<1x64xf32>
    %cst_261 = arith.constant dense<0xFF800000> : vector<1xf32>
    %757 = vector.multi_reduction <maximumf>, %756, %cst_261 [1] : vector<1x64xf32> to vector<1xf32>
    %758 = vector.shape_cast %757 : vector<1xf32> to vector<1x1xf32>
    %759 = vector.broadcast %758 : vector<1x1xf32> to vector<1x64xf32>
    %760 = arith.subf %756, %759 : vector<1x64xf32>
    %cst_262 = arith.constant 0.000000e+00 : f32
    %761 = vector.broadcast %cst_262 : f32 to vector<1x64xf32>
    %762 = arith.cmpf oeq, %760, %761 : vector<1x64xf32>
    %c64_i32_263 = arith.constant 64 : i32
    %763 = vector.broadcast %c64_i32_263 : i32 to vector<1x64xi32>
    %764 = arith.select %762, %9, %763 : vector<1x64xi1>, vector<1x64xi32>
    %765 = vector.shape_cast %764 : vector<1x64xi32> to vector<1x1x64xi32>
    %cst_264 = arith.constant dense<2147483647> : vector<1xi32>
    %766 = vector.multi_reduction <minsi>, %765, %cst_264 [1, 2] : vector<1x1x64xi32> to vector<1xi32>
    %767 = vector.shape_cast %766 : vector<1xi32> to vector<1x1x1xi32>
    %768 = vector.extract %767[0, 0, 0] : i32 from vector<1x1x1xi32>
    %769 = math.exp %760 : vector<1x64xf32>
    %cst_265 = arith.constant dense<0.000000e+00> : vector<1xf32>
    %770 = vector.multi_reduction <add>, %769, %cst_265 [1] : vector<1x64xf32> to vector<1xf32>
    %771 = vector.shape_cast %770 : vector<1xf32> to vector<1x1xf32>
    %772 = tpu.reciprocal %771 {approx = true} : vector<1x1xf32> -> vector<1x1xf32>
    %773 = vector.shape_cast %772 : vector<1x1xf32> to vector<1x1x1xf32>
    %cst_266 = arith.constant dense<0xFF800000> : vector<1xf32>
    %774 = vector.multi_reduction <maximumf>, %773, %cst_266 [1, 2] : vector<1x1x1xf32> to vector<1xf32>
    %775 = vector.shape_cast %774 : vector<1xf32> to vector<1x1x1xf32>
    %776 = vector.extract %775[0, 0, 0] : f32 from vector<1x1x1xf32>
    %777 = arith.index_cast %c9_i32 : i32 to index
    %778 = memref.load %arg11[%777] : memref<10xi32, #tpu.memory_space<smem>>
    memref.store %768, %arg11[%777] : memref<10xi32, #tpu.memory_space<smem>>
    %779 = arith.index_cast %c9_i32 : i32 to index
    %780 = memref.load %arg12[%779] : memref<10xf32, #tpu.memory_space<smem>>
    memref.store %776, %arg12[%779] : memref<10xf32, #tpu.memory_space<smem>>
    %c10_i32 = arith.constant 10 : i32
    return
  }
}

</mosaic_0001>

<bundles_post_ra>
// kernel: tpu_custom_call.1
= control target key start
LH: loop header
LB: loop body
LE: loop exit
PB: predicated region body
PF: predicated region fallthrough
CT: control target
= control target key end

     0   :  { %18 = vsyncpa [#allocation4], 0  ;;  %s4010_s0 = inlined_call_operand.vmem [shape: f32[64,1,32], index: 0, kind: input, shape index: {}]   ;;  %s4011_s1 = inlined_call_operand.vmem [shape: f32[32,96], index: 1, kind: input, shape index: {}]   ;;  %s4012_s2 = inlined_call_operand.vmem [shape: f32[32,96], index: 2, kind: input, shape index: {}]   ;;  %s4013_s3 = inlined_call_operand.vmem [shape: f32[1,96], index: 3, kind: input, shape index: {}]   ;;  %s4014_s4 = inlined_call_operand.vmem [shape: f32[1,96], index: 4, kind: input, shape index: {}]   ;;  %s4015_s5 = inlined_call_operand.vmem [shape: f32[2,32], index: 5, kind: input, shape index: {}]   ;;  %s4016_s6 = inlined_call_operand.vmem [shape: f32[64,32], index: 6, kind: input, shape index: {}]   ;;  %s4017_s7 = inlined_call_operand.vmem [shape: f32[1,32], index: 7, kind: input, shape index: {}]   ;;  %s4018_s8 = inlined_call_operand.vmem [shape: f32[32,64], index: 8, kind: input, shape index: {}]   ;;  %s4019_s9 = inlined_call_operand.vmem [shape: f32[1,64], index: 9, kind: input, shape index: {}]   ;;  %s4020_s10 = inlined_call_operand.vmem [shape: f32[1,32], index: 10, kind: input, shape index: {}]   ;;  %s4021_s11 = inlined_call_operand.hbm [shape: s32[10], index: 11, kind: output, shape index: {0}]   ;;  %s4022_s12 = inlined_call_operand.hbm [shape: f32[10], index: 12, kind: output, shape index: {1}]  }
   0x1   :  { %v3102_v0 = vld [vmem:[%s4011_s1 + $0x18] sm:$0xff]  ;;  %v3112_v2 = vld [vmem:[%s4011_s1 + $0x10] sm:$0xff]  ;;  %v3124_v4 = vld [vmem:[%s4011_s1 + $0x8] sm:$0xff] }
   0x2   :  { %v3107_v1 = vld [vmem:[%s4012_s2 + $0x18] sm:$0xff]  ;;  %88 = vmatpush.msra.mxu0 %v3102_v0  ;;  %v3119_v3 = vld [vmem:[%s4012_s2 + $0x10] sm:$0xff]  ;;  %v3129_v5 = vld [vmem:[%s4012_s2 + $0x8] sm:$0xff] }
   0x3   :  { %111 = vmatpush.msra.mxu1 %v3107_v1  ;;  %v3136_v6 = vld [vmem:[%s4011_s1] sm:$0xff] }
   0x4   :  { %89 = vmatpush.msra.mxu0 %v3112_v2  ;;  %v3141_v7 = vld [vmem:[%s4012_s2] sm:$0xff] }
   0x5   :  { %112 = vmatpush.msra.mxu1 %v3119_v3 }
   0x6   :  { %19 = vsyncpa [#allocation6], 0  ;;  %90 = vmatpush.msra.mxu0 %v3124_v4  ;;  %v2658_v8 = vld [vmem:[%s4010_s0 + $0x1] sm:$0x1]  ;;  %vm72_vm0 = vcmask 261120   ;;  %s3029_s25 = smov 64  }
   0x7   :  { %113 = vmatpush.msra.mxu1 %v3129_v5  ;;  %v69_v9 = vld [vmem:[%s4020_s10] sm:$0x1]  ;;  %s3030_s28 = smov 96   ;;  %s3031_s13 = smov 32   ;;  %vm243_vm5 = vcmask 253952   ;;  %vm190_vm6 = vcmask 8192  }
   0x8   :  { %91 = vmatpush.msra.mxu0 %v3136_v6  ;;  %v3162_v10 = vld [vmem:[%s4014_s4] sm:$0x1]  ;;  %vm219_vm7 = vcmask 1041408   ;;  %vm215_vm12 = vcmask 15360   ;;  %v3205_v63 = vld [vmem:[%s4016_s6 + $0x38] sm:$0xff]  ;;  %vm249_vm13 = vcmask 516352  }
   0x9   :  { %114 = vmatpush.msra.mxu1 %v3141_v7  ;;  %2659 = vmatmul.msk.f32.vlgmr.msra.gmra.mxu0 %vm72_vm0, %v2658_v8  ;;  %v3169_v13 = vld [vmem:[%s4013_s3] sm:$0x1]  ;;  %v3210_v8 = vld [vmem:[%s4016_s6 + $0x30] sm:$0xff]  ;;  %vm252_vm14 = vcmask 523264   ;;  %vm300_vm15 = vcmask 516096   ;;  %s3033_s22 = smov [#allocation5]  }
   0xa   :  { %2660 = vmatmul.msk.f32.vlgmr.msra.gmra.mxu1 %vm72_vm0, %v69_v9  ;;  %360 = vmatpush.msrb.mxu0 %v3102_v0  ;;  %v2794_v35 = vld [vmem:[%s4020_s10] ss:$0 sm:$0xff]  ;;  %v3217_v9 = vld [vmem:[%s4016_s6 + $0x28] sm:$0xff] }
   0xb   :  { %v3181_v36 = vld [vmem:[%s4015_s5] sm:$0x3]  ;;  %518 = vmatpush.msrb.mxu1 %v3205_v63 }
   0xc   :  { %361 = vmatpush.msrb.mxu0 %v3112_v2  ;;  %2662 = vmatpush.xpose.msk.msra.mxu2 %vm72_vm0, %v3181_v36 }
   0xd   :  { %2664 = vmatpush.msk.msra.mxu3 %vm219_vm7, %v3181_v36  ;;  %519 = vmatpush.msrb.mxu1 %v3210_v8 }
   0xe   :  { %362 = vmatpush.msrb.mxu0 %v3124_v4 }
   0xf   :  { %264 = vmatpush.msrb.mxu3 %v3205_v63  ;;  %520 = vmatpush.msrb.mxu1 %v3217_v9 }
  0x10   :  { %363 = vmatpush.msrb.mxu0 %v3136_v6 }
  0x11   :  { %265 = vmatpush.msrb.mxu3 %v3210_v8 }
  0x12   :  { %2673 = vmatpush.msk.msra.mxu0 %vm219_vm7, %v3181_v36 }
  0x13   :  { %266 = vmatpush.msrb.mxu3 %v3217_v9 }
  0x86   :  { %v93_v14 = vpop.f32.mrf.mxu0 }
  0x87   :  { %v116_v11 = vpop.f32.mrf.mxu1  ;;  %v94_v15 = vadd.f32 %v93_v14, %v3169_v13  ;;  %v3234_v14 = vld [vmem:[%s4016_s6 + $0x18] sm:$0xff] }
  0x88   :  { %v117_v12 = vadd.f32 %v116_v11, %v3162_v10  ;;  %v3224_v11 = vld [vmem:[%s4016_s6 + $0x20] sm:$0xff] }
  0x89   :  { %267 = vmatpush.msrb.mxu3 %v3224_v11  ;;  %521 = vmatpush.msrb.mxu1 %v3224_v11 }
  0x8a   :  { %140 = vrot.lane.b32.xlu0 %v117_v12, %s3029_s25  ;;  %v119_v16 = vadd.f32 %v117_v12, %v94_v15 }
  0x8b   :  { %268 = vmatpush.msrb.mxu3 %v3234_v14  ;;  %522 = vmatpush.msrb.mxu1 %v3234_v14 }
  0x8c   :  { %v2661_v17 = vmul.f32 -1.442695, %v119_v16  ;;  %v3248_v16 = vld [vmem:[%s4016_s6 + $0x8] sm:$0xff] }
  0x8e   :  { %2795 = vpow2.f32 %v2661_v17  ;;  %v3255_v17 = vld [vmem:[%s4016_s6] sm:$0xff] }
  0x94   :  { %v2796_v18 = vpop.eup %2795 }
  0x95   :  { %v123_v19 = vadd.f32 1.0, %v2796_v18 }
  0x97   :  { %2797 = vrcp.f32 %v123_v19  ;;  %v135_v25 = vand.u32 2147483648, %v123_v19  ;;  %vm129_vm2 = vweird.f32 %v123_v19  ;;  %v133_v26 = vand.u32 2147483647, %v123_v19 }
  0x99   :  { %v136_v28 = vor.u32 1.1754944e-38, %v135_v25  ;;  %vm134_vm4 = vcmp.eq.f32.partialorder %v133_v26, 8.507059e+37 }
  0x9d   :  { %v2798_v20 = vpop.eup %2797 }
  0x9e   :  { %v125_v21 = vmul.f32 %v2798_v20, %v123_v19  ;;  %vm130_vm1 = vweird.f32 %v2798_v20 }
  0x9f   :  { %vm131_vm3 = vmor %vm129_vm2, %vm130_vm1 }
  0xa0   :  { %v126_v22 = vsub.f32 1.0, %v125_v21  ;;  %v3270_v21 = vld [vmem:[%s4018_s8 + $0x10] sm:$0xff] }
  0xa2   :  { %v127_v23 = vmul.f32 %v2798_v20, %v126_v22  ;;  %v3276_v22 = vld [vmem:[%s4018_s8 + $0x8] sm:$0xff] }
  0xa4   :  { %v128_v24 = vadd.f32 %v2798_v20, %v127_v23  ;;  %v3284_v23 = vld [vmem:[%s4018_s8] sm:$0xff] }
  0xa6   :  { %v132_v27 = vsel %vm131_vm3, %v2798_v20, %v128_v24  ;;  %v3264_v20 = vld [vmem:[%s4018_s8 + $0x18] sm:$0xff]  ;;  %v3302_v24 = vld [vmem:[%s4017_s7] sm:$0x1] }
  0xa7   :  { %v137_v30 = vsel %vm134_vm4, %v136_v28, %v132_v27  ;;  %292 = vmatpush.msrb.mxu2 %v3264_v20  ;;  %v3317_v28 = vld [vmem:[%s4019_s9] sm:$0x1] }
  0xa8   :  { %v150_v38 = vsub.f32 1.0, %v137_v30 }
  0xa9   :  { %293 = vmatpush.msrb.mxu2 %v3270_v21 }
  0xab   :  { %294 = vmatpush.msrb.mxu2 %v3276_v22 }
  0xad   :  { %295 = vmatpush.msrb.mxu2 %v3284_v23 }
  0xfc   :  { %v141_v29 = vpop.permute.xlu0 %140 }
  0xfd   :  { %v143_v31 = vmul.f32 %v141_v29, %v137_v30 }
  0xff   :  { %145 = vrot.lane.b32.xlu0 %v143_v31, %s3029_s25 }
 0x171   :  { %v146_v32 = vpop.permute.xlu0 %145 }
 0x172   :  { %v148_v33 = vadd.f32 %v146_v32, %v94_v15  ;;  %v3241_v15 = vld [vmem:[%s4016_s6 + $0x10] sm:$0xff] }
 0x173   :  { %269 = vmatpush.msrb.mxu3 %v3241_v15  ;;  %523 = vmatpush.msrb.mxu1 %v3241_v15 }
 0x174   :  { %2799 = vtanh.f32 %v148_v33 }
 0x175   :  { %270 = vmatpush.msrb.mxu3 %v3248_v16  ;;  %524 = vmatpush.msrb.mxu1 %v3248_v16 }
 0x177   :  { %271 = vmatpush.msrb.mxu3 %v3255_v17  ;;  %525 = vmatpush.msrb.mxu1 %v3255_v17 }
 0x179   :  { %799 = vmatpush.msra.mxu1 %v3264_v20 }
 0x17a   :  { %v2800_v34 = vpop.eup %2799 }
 0x17b   :  { %152 = vrot.lane.b32.xlu1 %v2800_v34, %s3030_s28  ;;  %800 = vmatpush.msra.mxu1 %v3270_v21  ;;  %v67_v34 = vlaneseq }
 0x17d   :  { %801 = vmatpush.msra.mxu1 %v3276_v22 }
 0x17f   :  { %802 = vmatpush.msra.mxu1 %v3284_v23 }
 0x183   :  { %157 = vrot.lane.b32.xlu1 %v2794_v35, %s3031_s13  ;;  %v3323_v35 = vand.u32 127, %v67_v34 }
 0x1ed   :  { %v153_v37 = vpop.permute.xlu1 %152 }
 0x1ee   :  { %v155_v40 = vmul.f32 %v153_v37, %v150_v38 }
 0x1f5   :  { %v158_v39 = vpop.permute.xlu1 %157 }
 0x1f6   :  { %v160_v41 = vmul.f32 %v158_v39, %v137_v30 }
 0x1f8   :  { %v3185_v42 = vadd.f32 %v160_v41, %v155_v40 }
 0x1fa   :  { %163 = vrot.lane.b32.xlu2 %v3185_v42, %s3030_s28 }
 0x254   :  { %v3189_v43 = vpop.permute.xlu2 %163 }
 0x255   :  { %244 = vst.msk [vmem:[#allocation2] sm:$0x1] %vm243_vm5, %v3189_v43  ;;  %2663 = vmatmul.msk.f32.vlgmr.msra.gmra.mxu2 %vm72_vm0, %v3189_v43 }
 0x256   :  { %380 = vmatpush.msra.mxu2 %v3107_v1 }
 0x258   :  { %381 = vmatpush.msra.mxu2 %v3119_v3 }
 0x25a   :  { %382 = vmatpush.msra.mxu2 %v3129_v5 }
 0x25c   :  { %383 = vmatpush.msra.mxu2 %v3141_v7 }
 0x2d8   :  { %v187_v44 = vpop.f32.mrf.mxu2 }
 0x2d9   :  { %v191_v45 = vsel %vm190_vm6, %v187_v44, -inf }
 0x2da   :  { %192 = vmax.xlane.f32.xlu2 %v191_v45 }
 0x34d   :  { %v193_v46 = vpop.xlane.xlu2 %192 }
 0x34e   :  { %v194_v47 = vsub.f32 %v187_v44, %v193_v46 }
 0x350   :  { %v195_v48 = vmul.f32 1.442695, %v194_v47 }
 0x352   :  { %2801 = vpow2.f32 %v195_v48 }
 0x358   :  { %v2802_v49 = vpop.eup %2801 }
 0x359   :  { %v197_v50 = vsel %vm190_vm6, %v2802_v49, 0.0 }
 0x35a   :  { %198 = vadd.xlane.f32.xlu0 %v197_v50 }
 0x3cd   :  { %v199_v51 = vpop.xlane.xlu0 %198 }
 0x3ce   :  { %2803 = vrcp.f32 %v199_v51  ;;  %v211_v55 = vand.u32 2147483648, %v199_v51  ;;  %v209_v57 = vand.u32 2147483647, %v199_v51  ;;  %vm205_vm9 = vweird.f32 %v199_v51 }
 0x3d0   :  { %v212_v59 = vor.u32 1.1754944e-38, %v211_v55  ;;  %vm210_vm11 = vcmp.eq.f32.partialorder %v209_v57, 8.507059e+37 }
 0x3d4   :  { %v2804_v52 = vpop.eup %2803 }
 0x3d5   :  { %v201_v53 = vmul.f32 %v2804_v52, %v199_v51  ;;  %vm206_vm8 = vweird.f32 %v2804_v52 }
 0x3d6   :  { %vm207_vm10 = vmor %vm205_vm9, %vm206_vm8 }
 0x3d7   :  { %v202_v54 = vsub.f32 1.0, %v201_v53 }
 0x3d9   :  { %v203_v56 = vmul.f32 %v2804_v52, %v202_v54 }
 0x3db   :  { %v204_v58 = vadd.f32 %v2804_v52, %v203_v56 }
 0x3dd   :  { %v208_v60 = vsel %vm207_vm10, %v2804_v52, %v204_v58 }
 0x3de   :  { %v213_v61 = vsel %vm210_vm11, %v212_v59, %v208_v60 }
 0x3df   :  { %v214_v62 = vmul.f32 %v2802_v49, %v213_v61 }
 0x3e1   :  { %2665 = vmatmul.msk.f32.vlgmr.msra.gmra.mxu3 %vm215_vm12, %v214_v62 }
 0x3e2   :  { %546 = vmatpush.msra.mxu3 %v3264_v20 }
 0x3e4   :  { %547 = vmatpush.msra.mxu3 %v3270_v21 }
 0x3e6   :  { %548 = vmatpush.msra.mxu3 %v3276_v22 }
 0x3e8   :  { %549 = vmatpush.msra.mxu3 %v3284_v23 }
 0x464   :  { %v239_v12 = vpop.f32.mrf.mxu3 }
 0x465   :  { %246 = vrot.lane.b32.xlu1 %v239_v12, %s3031_s13 }
 0x4d7   :  { %v247_v18 = vpop.permute.xlu1 %246 }
 0x4d8   :  { %250 = vst.msk [vmem:[#allocation2] sm:$0x1] %vm249_vm13, %v247_v18 }
 0x4df   :  { %v251_v19 = vld [vmem:[#allocation2] sm:$0x1] }
 0x4e0   :  { %2666 = vmatmul.msk.f32.vlgmr.msrb.gmra.mxu3 %vm252_vm14, %v251_v19 }
 0x4e1   :  { %2680 = vmatpush.xpose.msk.msrb.mxu3 %vm72_vm0, %v3181_v36 }
 0x563   :  { %v273_v25 = vpop.f32.mrf.mxu3 }
 0x564   :  { %v274_v26 = vadd.f32 %v273_v25, %v3302_v24 }
 0x566   :  { %2805 = vtanh.f32 %v274_v26 }
 0x56c   :  { %v2806_v27 = vpop.eup %2805 }
 0x56d   :  { %2667 = vmatmul.msk.f32.vlgmr.msrb.gmra.mxu2 %vm72_vm0, %v2806_v27 }
 0x56e   :  { %2671 = vmatpush.xpose.msk.msrb.mxu2 %vm72_vm0, %v3181_v36 }
 0x575   :  { %2669 = vmatmul.msk.f32.vlgmr.msra.gmra.mxu2 %vm72_vm0, %v3189_v43 }
 0x576   :  { %613 = vmatpush.msra.mxu2 %v3102_v0 }
 0x578   :  { %614 = vmatpush.msra.mxu2 %v3112_v2 }
 0x57a   :  { %615 = vmatpush.msra.mxu2 %v3124_v4 }
 0x57c   :  { %616 = vmatpush.msra.mxu2 %v3136_v6 }
 0x5f0   :  { %v297_v29 = vpop.f32.mrf.mxu2 }
 0x5f1   :  { %v298_v30 = vadd.f32 %v297_v29, %v3317_v28 }
 0x5f3   :  { %v301_v31 = vsel %vm300_vm15, %v298_v30, -inf }
 0x5f4   :  { %302 = vmax.xlane.f32.xlu1 %v301_v31 }
 0x5f8   :  { %v385_v32 = vpop.f32.mrf.mxu2 }
 0x5f9   :  { %v386_v33 = vadd.f32 %v385_v32, %v3162_v10 }
 0x5fb   :  { %409 = vrot.lane.b32.xlu0 %v386_v33, %s3029_s25 }
 0x667   :  { %v303_v37 = vpop.xlane.xlu1 %302 }
 0x668   :  { %v3325_v38 = vsub.f32 %v298_v30, %v303_v37 }
 0x66a   :  { %vm305_vm1 = vcmp.eq.f32.partialorder %v3325_v38, 0.0 }
 0x66b   :  { %v306_v39 = vsel %vm305_vm1, %v3323_v35, 64 }
 0x66c   :  { %v307_v40 = vsel %vm300_vm15, %v306_v39, 2147483647 }
 0x66d   :  { %v309_v41 = vshra.s32 %v307_v40, 16  ;;  %v308_v44 = vand.u32 65535, %v307_v40  ;;  %v410_v39 = vpop.permute.xlu0 %409 }
 0x66f   :  { %v311_v43 = vcvt.s32.f32 %v309_v41  ;;  %v310_v46 = vcvt.s32.f32 %v308_v44 }
 0x671   :  { %312 = vmin.xlane.f32.xlu2 %v311_v43 }
 0x6e4   :  { %v313_v45 = vpop.xlane.xlu2 %312 }
 0x6e5   :  { %vm314_vm2 = vcmp.eq.f32.partialorder %v311_v43, %v313_v45  ;;  %v319_v48 = vcvt.f32.s32 %v313_v45 }
 0x6e6   :  { %v315_v47 = vsel %vm314_vm2, %v310_v46, inf }
 0x6e7   :  { %316 = vmin.xlane.f32.xlu2 %v315_v47  ;;  %v320_v50 = vshll.u32 %v319_v48, 16 }
 0x75a   :  { %v317_v49 = vpop.xlane.xlu2 %316 }
 0x75b   :  { %v318_v51 = vcvt.f32.s32 %v317_v49 }
 0x75d   :  { %v321_v52 = vadd.s32 %v320_v50, %v318_v51 }
 0x75f   :  { %v322_v53 = vrot.slane %v321_v52, 4 }
 0x761   :  { %vm323_vm3 = vcmp.lt.s32.totalorder %v321_v52, %v322_v53 }
 0x762   :  { %v324_v54 = vsel %vm323_vm3, %v321_v52, %v322_v53 }
 0x763   :  { %v325_v55 = vrot.slane %v324_v54, 2 }
 0x765   :  { %vm326_vm4 = vcmp.lt.s32.totalorder %v324_v54, %v325_v55 }
 0x766   :  { %v327_v56 = vsel %vm326_vm4, %v324_v54, %v325_v55 }
 0x767   :  { %v328_v57 = vrot.slane %v327_v56, 1 }
 0x769   :  { %vm329_vm8 = vcmp.lt.s32.totalorder %v327_v56, %v328_v57 }
 0x76a   :  { %v330_v58 = vsel %vm329_vm8, %v327_v56, %v328_v57 }
 0x76b   :  { %2749 = vpush %v330_v58 }
 0x79c   :  { %s2750_s29 = spop %2749 }
 0x79d   :  { %340 = sst [smem:[#allocation3]] %s2750_s29  ;;  %s343_s15 = scalar_lea.vmem %s4010_s0, %s2750_s29 }
 0x79e   :  { %v344_v59 = vld [vmem:[%s343_s15] sm:$0x1] }
 0x79f   :  { %2668 = vmatmul.msk.f32.vlgmr.msrb.gmra.mxu0 %vm72_vm0, %v344_v59 }
 0x7a0   :  { %633 = vmatpush.msrb.mxu0 %v3107_v1 }
 0x7a2   :  { %634 = vmatpush.msrb.mxu0 %v3119_v3 }
 0x7a4   :  { %635 = vmatpush.msrb.mxu0 %v3129_v5 }
 0x7a6   :  { %636 = vmatpush.msrb.mxu0 %v3141_v7 }
 0x81c   :  { %v365_v60 = vpop.f32.mrf.mxu0 }
 0x81d   :  { %v366_v61 = vadd.f32 %v365_v60, %v3169_v13 }
 0x81f   :  { %v388_v62 = vadd.f32 %v386_v33, %v366_v61 }
 0x821   :  { %v2670_v12 = vmul.f32 -1.442695, %v388_v62 }
 0x823   :  { %2807 = vpow2.f32 %v2670_v12 }
 0x829   :  { %v2808_v18 = vpop.eup %2807 }
 0x82a   :  { %v392_v19 = vadd.f32 1.0, %v2808_v18 }
 0x82c   :  { %2809 = vrcp.f32 %v392_v19  ;;  %v404_v29 = vand.u32 2147483648, %v392_v19  ;;  %v402_v31 = vand.u32 2147483647, %v392_v19  ;;  %vm398_vm10 = vweird.f32 %v392_v19 }
 0x82e   :  { %v405_v34 = vor.u32 1.1754944e-38, %v404_v29  ;;  %vm403_vm1 = vcmp.eq.f32.partialorder %v402_v31, 8.507059e+37 }
 0x832   :  { %v2810_v25 = vpop.eup %2809 }
 0x833   :  { %v394_v26 = vmul.f32 %v2810_v25, %v392_v19  ;;  %vm399_vm9 = vweird.f32 %v2810_v25 }
 0x834   :  { %vm400_vm11 = vmor %vm398_vm10, %vm399_vm9 }
 0x835   :  { %v395_v27 = vsub.f32 1.0, %v394_v26 }
 0x837   :  { %v396_v30 = vmul.f32 %v2810_v25, %v395_v27 }
 0x839   :  { %v397_v32 = vadd.f32 %v2810_v25, %v396_v30 }
 0x83b   :  { %v401_v37 = vsel %vm400_vm11, %v2810_v25, %v397_v32 }
 0x83c   :  { %v406_v33 = vsel %vm403_vm1, %v405_v34, %v401_v37 }
 0x83d   :  { %v412_v40 = vmul.f32 %v410_v39, %v406_v33  ;;  %v419_v45 = vsub.f32 1.0, %v406_v33  ;;  %v425_v47 = vmul.f32 %v406_v33, %v3185_v42 }
 0x83f   :  { %414 = vrot.lane.b32.xlu2 %v412_v40, %s3029_s25 }
 0x899   :  { %v415_v41 = vpop.permute.xlu2 %414 }
 0x89a   :  { %v417_v43 = vadd.f32 %v415_v41, %v366_v61 }
 0x89c   :  { %2811 = vtanh.f32 %v417_v43 }
 0x8a2   :  { %v2812_v44 = vpop.eup %2811 }
 0x8a3   :  { %421 = vrot.lane.b32.xlu1 %v2812_v44, %s3030_s28  ;;  %v332_v44 = vmul.f32 1.442695, %v3325_v38 }
 0x915   :  { %v422_v46 = vpop.permute.xlu1 %421 }
 0x916   :  { %v424_v48 = vmul.f32 %v422_v46, %v419_v45 }
 0x918   :  { %v3342_v49 = vadd.f32 %v425_v47, %v424_v48 }
 0x91a   :  { %428 = vrot.lane.b32.xlu0 %v3342_v49, %s3030_s28 }
 0x98c   :  { %v429_v50 = vpop.permute.xlu0 %428 }
 0x98d   :  { %500 = vst.msk [vmem:[#allocation2] sm:$0x1] %vm243_vm5, %v429_v50  ;;  %2672 = vmatmul.msk.f32.vlgmr.msrb.gmra.mxu2 %vm72_vm0, %v429_v50 }
 0x98e   :  { %2682 = vmatpush.msk.msrb.mxu2 %vm219_vm7, %v3181_v36 }
 0xa10   :  { %v449_v51 = vpop.f32.mrf.mxu2 }
 0xa11   :  { %v452_v52 = vsel %vm190_vm6, %v449_v51, -inf }
 0xa12   :  { %453 = vmax.xlane.f32.xlu0 %v452_v52 }
 0xa85   :  { %v454_v53 = vpop.xlane.xlu0 %453 }
 0xa86   :  { %v455_v42 = vsub.f32 %v449_v51, %v454_v53 }
 0xa88   :  { %v456_v54 = vmul.f32 1.442695, %v455_v42 }
 0xa8a   :  { %2813 = vpow2.f32 %v456_v54 }
 0xa90   :  { %v2814_v55 = vpop.eup %2813 }
 0xa91   :  { %v458_v56 = vsel %vm190_vm6, %v2814_v55, 0.0 }
 0xa92   :  { %459 = vadd.xlane.f32.xlu2 %v458_v56 }
 0xb05   :  { %v460_v57 = vpop.xlane.xlu2 %459 }
 0xb06   :  { %2815 = vrcp.f32 %v460_v57  ;;  %v472_v61 = vand.u32 2147483648, %v460_v57  ;;  %v470_v12 = vand.u32 2147483647, %v460_v57  ;;  %vm466_vm3 = vweird.f32 %v460_v57 }
 0xb08   :  { %v473_v19 = vor.u32 1.1754944e-38, %v472_v61  ;;  %vm471_vm8 = vcmp.eq.f32.partialorder %v470_v12, 8.507059e+37 }
 0xb0c   :  { %v2816_v58 = vpop.eup %2815 }
 0xb0d   :  { %v462_v59 = vmul.f32 %v2816_v58, %v460_v57  ;;  %vm467_vm2 = vweird.f32 %v2816_v58 }
 0xb0e   :  { %vm468_vm4 = vmor %vm466_vm3, %vm467_vm2 }
 0xb0f   :  { %v463_v60 = vsub.f32 1.0, %v462_v59 }
 0xb11   :  { %v464_v62 = vmul.f32 %v2816_v58, %v463_v60 }
 0xb13   :  { %v465_v18 = vadd.f32 %v2816_v58, %v464_v62 }
 0xb15   :  { %v469_v25 = vsel %vm468_vm4, %v2816_v58, %v465_v18 }
 0xb16   :  { %v474_v26 = vsel %vm471_vm8, %v473_v19, %v469_v25 }
 0xb17   :  { %v475_v27 = vmul.f32 %v2814_v55, %v474_v26 }
 0xb19   :  { %2674 = vmatmul.msk.f32.vlgmr.msra.gmra.mxu0 %vm215_vm12, %v475_v27 }
 0xb1a   :  { %771 = vmatpush.msra.mxu0 %v3205_v63 }
 0xb1c   :  { %772 = vmatpush.msra.mxu0 %v3210_v8 }
 0xb1e   :  { %773 = vmatpush.msra.mxu0 %v3217_v9 }
 0xb20   :  { %774 = vmatpush.msra.mxu0 %v3224_v11 }
 0xb21   :  { %2678 = vmatmul.msk.f32.vlgmr.msrb.gmra.mxu0 %vm72_vm0, %v429_v50 }
 0xb22   :  { %775 = vmatpush.msra.mxu0 %v3234_v14 }
 0xb24   :  { %776 = vmatpush.msra.mxu0 %v3241_v15 }
 0xb26   :  { %777 = vmatpush.msra.mxu0 %v3248_v16 }
 0xb28   :  { %778 = vmatpush.msra.mxu0 %v3255_v17 }
 0xb2a   :  { %1052 = vmatpush.msrb.mxu0 %v3264_v20 }
 0xb2c   :  { %1053 = vmatpush.msrb.mxu0 %v3270_v21 }
 0xb2e   :  { %1054 = vmatpush.msrb.mxu0 %v3276_v22 }
 0xb30   :  { %1055 = vmatpush.msrb.mxu0 %v3284_v23 }
 0xb96   :  { %v496_v29 = vpop.f32.mrf.mxu0 }
 0xb97   :  { %502 = vrot.lane.b32.xlu1 %v496_v29, %s3031_s13 }
 0xb9e   :  { %v638_v56 = vpop.f32.mrf.mxu0 }
 0xb9f   :  { %v639_v57 = vadd.f32 %v638_v56, %v3162_v10 }
 0xc09   :  { %v503_v30 = vpop.permute.xlu1 %502 }
 0xc0a   :  { %505 = vst.msk [vmem:[#allocation2] sm:$0x1] %vm249_vm13, %v503_v30 }
 0xc11   :  { %v506_v31 = vld [vmem:[#allocation2] sm:$0x1] }
 0xc12   :  { %2675 = vmatmul.msk.f32.vlgmr.msrb.gmra.mxu1 %vm252_vm14, %v506_v31 }
 0xc13   :  { %2689 = vmatpush.xpose.msk.msrb.mxu1 %vm72_vm0, %v3181_v36 }
 0xc8f   :  { %v527_v32 = vpop.f32.mrf.mxu1 }
 0xc90   :  { %v528_v34 = vadd.f32 %v527_v32, %v3302_v24 }
 0xc92   :  { %2817 = vtanh.f32 %v528_v34 }
 0xc93   :  { %2819 = vpow2.f32 %v332_v44 }
 0xc98   :  { %v2818_v37 = vpop.eup %2817 }
 0xc99   :  { %2676 = vmatmul.msk.f32.vlgmr.msra.gmra.mxu3 %vm72_vm0, %v2818_v37  ;;  %v2820_v50 = vpop.eup %2819 }
 0xc9a   :  { %866 = vmatpush.msra.mxu3 %v3102_v0  ;;  %v334_v51 = vsel %vm300_vm15, %v2820_v50, 0.0 }
 0xc9c   :  { %867 = vmatpush.msra.mxu3 %v3112_v2 }
 0xc9e   :  { %868 = vmatpush.msra.mxu3 %v3124_v4 }
 0xca0   :  { %869 = vmatpush.msra.mxu3 %v3136_v6 }
 0xd1c   :  { %v551_v39 = vpop.f32.mrf.mxu3 }
 0xd1d   :  { %v552_v33 = vadd.f32 %v551_v39, %v3317_v28 }
 0xd1f   :  { %v554_v40 = vsel %vm300_vm15, %v552_v33, -inf }
 0xd20   :  { %555 = vmax.xlane.f32.xlu1 %v554_v40 }
 0xd93   :  { %v556_v41 = vpop.xlane.xlu1 %555 }
 0xd94   :  { %v3379_v43 = vsub.f32 %v552_v33, %v556_v41 }
 0xd96   :  { %vm558_vm9 = vcmp.eq.f32.partialorder %v3379_v43, 0.0 }
 0xd97   :  { %v559_v45 = vsel %vm558_vm9, %v3323_v35, 64 }
 0xd98   :  { %v560_v46 = vsel %vm300_vm15, %v559_v45, 2147483647 }
 0xd99   :  { %v562_v47 = vshra.s32 %v560_v46, 16  ;;  %v561_v52 = vand.u32 65535, %v560_v46 }
 0xd9b   :  { %v564_v48 = vcvt.s32.f32 %v562_v47  ;;  %v563_v42 = vcvt.s32.f32 %v561_v52 }
 0xd9d   :  { %565 = vmin.xlane.f32.xlu0 %v564_v48 }
 0xda5   :  { %335 = vadd.xlane.f32.xlu0 %v334_v51 }
 0xe10   :  { %v566_v53 = vpop.xlane.xlu0 %565 }
 0xe11   :  { %vm567_vm10 = vcmp.eq.f32.partialorder %v564_v48, %v566_v53  ;;  %v572_v58 = vcvt.f32.s32 %v566_v53 }
 0xe12   :  { %v568_v54 = vsel %vm567_vm10, %v563_v42, inf }
 0xe13   :  { %569 = vmin.xlane.f32.xlu2 %v568_v54  ;;  %v573_v60 = vshll.u32 %v572_v58, 16 }
 0xe18   :  { %v336_v55 = vpop.xlane.xlu0 %335 }
 0xe19   :  { %2821 = vrcp.f32 %v336_v55 }
 0xe1f   :  { %v2822_v38 = vpop.eup %2821 }
 0xe20   :  { %2751 = vpush %v2822_v38 }
 0xe2b   :  { %662 = vrot.lane.b32.xlu2 %v639_v57, %s3029_s25 }
 0xe51   :  { %s2752_s10 = spop %2751 }
 0xe52   :  { %342 = sst [smem:[#allocation5]] %s2752_s10 }
 0xe86   :  { %v570_v59 = vpop.xlane.xlu2 %569 }
 0xe87   :  { %v571_v61 = vcvt.f32.s32 %v570_v59 }
 0xe89   :  { %v574_v62 = vadd.s32 %v573_v60, %v571_v61 }
 0xe8b   :  { %v575_v12 = vrot.slane %v574_v62, 4 }
 0xe8d   :  { %vm576_vm11 = vcmp.lt.s32.totalorder %v574_v62, %v575_v12 }
 0xe8e   :  { %v577_v18 = vsel %vm576_vm11, %v574_v62, %v575_v12  ;;  %v663_v46 = vpop.permute.xlu2 %662 }
 0xe8f   :  { %v578_v19 = vrot.slane %v577_v18, 2 }
 0xe91   :  { %vm579_vm1 = vcmp.lt.s32.totalorder %v577_v18, %v578_v19 }
 0xe92   :  { %v580_v25 = vsel %vm579_vm1, %v577_v18, %v578_v19 }
 0xe93   :  { %v581_v26 = vrot.slane %v580_v25, 1 }
 0xe95   :  { %vm582_vm2 = vcmp.lt.s32.totalorder %v580_v25, %v581_v26 }
 0xe96   :  { %v583_v27 = vsel %vm582_vm2, %v580_v25, %v581_v26 }
 0xe97   :  { %2753 = vpush %v583_v27 }
 0xec8   :  { %s2754_s16 = spop %2753 }
 0xec9   :  { %593 = sst [smem:[#allocation3 + $0x1]] %s2754_s16  ;;  %s596_s19 = scalar_lea.vmem %s4010_s0, %s2754_s16 }
 0xeca   :  { %v597_v29 = vld [vmem:[%s596_s19] sm:$0x1] }
 0xecb   :  { %2677 = vmatmul.msk.f32.vlgmr.msra.gmra.mxu2 %vm72_vm0, %v597_v29 }
 0xecc   :  { %886 = vmatpush.msra.mxu2 %v3107_v1 }
 0xece   :  { %887 = vmatpush.msra.mxu2 %v3119_v3 }
 0xed0   :  { %888 = vmatpush.msra.mxu2 %v3129_v5 }
 0xed2   :  { %889 = vmatpush.msra.mxu2 %v3141_v7 }
 0xf4e   :  { %v618_v30 = vpop.f32.mrf.mxu2 }
 0xf4f   :  { %v619_v31 = vadd.f32 %v618_v30, %v3169_v13 }
 0xf51   :  { %v641_v32 = vadd.f32 %v639_v57, %v619_v31 }
 0xf53   :  { %v2679_v34 = vmul.f32 -1.442695, %v641_v32 }
 0xf55   :  { %2823 = vpow2.f32 %v2679_v34 }
 0xf5b   :  { %v2824_v37 = vpop.eup %2823 }
 0xf5c   :  { %v645_v39 = vadd.f32 1.0, %v2824_v37 }
 0xf5e   :  { %2825 = vrcp.f32 %v645_v39  ;;  %v657_v44 = vand.u32 2147483648, %v645_v39  ;;  %v655_v3 = vand.u32 2147483647, %v645_v39  ;;  %vm651_vm4 = vweird.f32 %v645_v39 }
 0xf60   :  { %v658_v5 = vor.u32 1.1754944e-38, %v657_v44  ;;  %vm656_vm9 = vcmp.eq.f32.partialorder %v655_v3, 8.507059e+37 }
 0xf64   :  { %v2826_v33 = vpop.eup %2825 }
 0xf65   :  { %v647_v40 = vmul.f32 %v2826_v33, %v645_v39  ;;  %vm652_vm3 = vweird.f32 %v2826_v33 }
 0xf66   :  { %vm653_vm8 = vmor %vm651_vm4, %vm652_vm3 }
 0xf67   :  { %v648_v41 = vsub.f32 1.0, %v647_v40 }
 0xf69   :  { %v649_v1 = vmul.f32 %v2826_v33, %v648_v41 }
 0xf6b   :  { %v650_v45 = vadd.f32 %v2826_v33, %v649_v1 }
 0xf6d   :  { %v654_v7 = vsel %vm653_vm8, %v2826_v33, %v650_v45 }
 0xf6e   :  { %v659_v47 = vsel %vm656_vm9, %v658_v5, %v654_v7 }
 0xf6f   :  { %v665_v48 = vmul.f32 %v663_v46, %v659_v47  ;;  %v672_v53 = vsub.f32 1.0, %v659_v47  ;;  %v678_v54 = vmul.f32 %v659_v47, %v3342_v49  ;;  %v585_v47 = vmul.f32 1.442695, %v3379_v43 }
 0xf71   :  { %667 = vrot.lane.b32.xlu1 %v665_v48, %s3029_s25 }
 0xfe3   :  { %v668_v50 = vpop.permute.xlu1 %667 }
 0xfe4   :  { %v670_v51 = vadd.f32 %v668_v50, %v619_v31 }
 0xfe6   :  { %2827 = vtanh.f32 %v670_v51 }
 0xfec   :  { %v2828_v52 = vpop.eup %2827 }
 0xfed   :  { %674 = vrot.lane.b32.xlu0 %v2828_v52, %s3030_s28 }
0x105f   :  { %v675_v42 = vpop.permute.xlu0 %674 }
0x1060   :  { %v677_v55 = vmul.f32 %v675_v42, %v672_v53 }
0x1062   :  { %v3400_v38 = vadd.f32 %v678_v54, %v677_v55 }
0x1064   :  { %681 = vrot.lane.b32.xlu2 %v3400_v38, %s3030_s28 }
0x10be   :  { %v682_v56 = vpop.permute.xlu2 %681 }
0x10bf   :  { %753 = vst.msk [vmem:[#allocation2] sm:$0x1] %vm243_vm5, %v682_v56  ;;  %2681 = vmatmul.msk.f32.vlgmr.msrb.gmra.mxu3 %vm72_vm0, %v682_v56 }
0x10c0   :  { %2691 = vmatpush.msk.msrb.mxu3 %vm219_vm7, %v3181_v36 }
0x1142   :  { %v702_v57 = vpop.f32.mrf.mxu3 }
0x1143   :  { %v705_v58 = vsel %vm190_vm6, %v702_v57, -inf }
0x1144   :  { %706 = vmax.xlane.f32.xlu0 %v705_v58 }
0x11b7   :  { %v707_v59 = vpop.xlane.xlu0 %706 }
0x11b8   :  { %v708_v49 = vsub.f32 %v702_v57, %v707_v59 }
0x11ba   :  { %v709_v60 = vmul.f32 1.442695, %v708_v49 }
0x11bc   :  { %2829 = vpow2.f32 %v709_v60 }
0x11c2   :  { %v2830_v61 = vpop.eup %2829 }
0x11c3   :  { %v711_v62 = vsel %vm190_vm6, %v2830_v61, 0.0 }
0x11c4   :  { %712 = vadd.xlane.f32.xlu1 %v711_v62 }
0x1237   :  { %v713_v12 = vpop.xlane.xlu1 %712 }
0x1238   :  { %2831 = vrcp.f32 %v713_v12  ;;  %v725_v26 = vand.u32 2147483648, %v713_v12  ;;  %v723_v29 = vand.u32 2147483647, %v713_v12  ;;  %vm719_vm11 = vweird.f32 %v713_v12 }
0x123a   :  { %v726_v31 = vor.u32 1.1754944e-38, %v725_v26  ;;  %vm724_vm2 = vcmp.eq.f32.partialorder %v723_v29, 8.507059e+37  ;;  %v3453_v26 = vld [vmem:[%s4012_s2 + $0x18] sm:$0xff]  ;;  %v3465_v29 = vld [vmem:[%s4012_s2 + $0x8] sm:$0xff] }
0x123e   :  { %v2832_v18 = vpop.eup %2831 }
0x123f   :  { %v715_v19 = vmul.f32 %v2832_v18, %v713_v12  ;;  %vm720_vm10 = vweird.f32 %v2832_v18 }
0x1240   :  { %vm721_vm1 = vmor %vm719_vm11, %vm720_vm10 }
0x1241   :  { %v716_v25 = vsub.f32 1.0, %v715_v19 }
0x1243   :  { %v717_v27 = vmul.f32 %v2832_v18, %v716_v25 }
0x1245   :  { %v718_v30 = vadd.f32 %v2832_v18, %v717_v27  ;;  %v3459_v27 = vld [vmem:[%s4012_s2 + $0x10] sm:$0xff] }
0x1247   :  { %v722_v32 = vsel %vm721_vm1, %v2832_v18, %v718_v30  ;;  %v3471_v30 = vld [vmem:[%s4012_s2] sm:$0xff] }
0x1248   :  { %v727_v34 = vsel %vm724_vm2, %v726_v31, %v722_v32 }
0x1249   :  { %v728_v37 = vmul.f32 %v2830_v61, %v727_v34 }
0x124b   :  { %2683 = vmatmul.msk.f32.vlgmr.msrb.gmra.mxu2 %vm215_vm12, %v728_v37 }
0x124c   :  { %1024 = vmatpush.msrb.mxu2 %v3205_v63 }
0x124e   :  { %1025 = vmatpush.msrb.mxu2 %v3210_v8 }
0x1250   :  { %1026 = vmatpush.msrb.mxu2 %v3217_v9 }
0x1252   :  { %1027 = vmatpush.msrb.mxu2 %v3224_v11 }
0x1253   :  { %2687 = vmatmul.msk.f32.vlgmr.msra.gmra.mxu2 %vm72_vm0, %v682_v56 }
0x1254   :  { %1028 = vmatpush.msrb.mxu2 %v3234_v14 }
0x1256   :  { %1029 = vmatpush.msrb.mxu2 %v3241_v15 }
0x1258   :  { %1030 = vmatpush.msrb.mxu2 %v3248_v16 }
0x125a   :  { %1031 = vmatpush.msrb.mxu2 %v3255_v17 }
0x125c   :  { %1305 = vmatpush.msra.mxu2 %v3264_v20 }
0x125e   :  { %1306 = vmatpush.msra.mxu2 %v3270_v21 }
0x1260   :  { %1307 = vmatpush.msra.mxu2 %v3276_v22 }
0x1262   :  { %1308 = vmatpush.msra.mxu2 %v3284_v23 }
0x12ce   :  { %v749_v39 = vpop.f32.mrf.mxu2 }
0x12cf   :  { %755 = vrot.lane.b32.xlu2 %v749_v39, %s3031_s13 }
0x12d6   :  { %v891_v55 = vpop.f32.mrf.mxu2 }
0x12d7   :  { %v892_v56 = vadd.f32 %v891_v55, %v3162_v10 }
0x1329   :  { %v756_v33 = vpop.permute.xlu2 %755 }
0x132a   :  { %758 = vst.msk [vmem:[#allocation2] sm:$0x1] %vm249_vm13, %v756_v33 }
0x1331   :  { %v759_v40 = vld [vmem:[#allocation2] sm:$0x1] }
0x1332   :  { %2684 = vmatmul.msk.f32.vlgmr.msra.gmra.mxu0 %vm252_vm14, %v759_v40 }
0x1333   :  { %2698 = vmatpush.xpose.msk.msra.mxu0 %vm72_vm0, %v3181_v36 }
0x13af   :  { %v780_v41 = vpop.f32.mrf.mxu0 }
0x13b0   :  { %v781_v44 = vadd.f32 %v780_v41, %v3302_v24 }
0x13b2   :  { %2833 = vtanh.f32 %v781_v44 }
0x13b3   :  { %2835 = vpow2.f32 %v585_v47 }
0x13b8   :  { %v2834_v1 = vpop.eup %2833 }
0x13b9   :  { %2685 = vmatmul.msk.f32.vlgmr.msra.gmra.mxu1 %vm72_vm0, %v2834_v1  ;;  %v2836_v48 = vpop.eup %2835 }
0x13ba   :  { %1119 = vmatpush.msra.mxu1 %v3102_v0  ;;  %v587_v50 = vsel %vm300_vm15, %v2836_v48, 0.0 }
0x13bc   :  { %1120 = vmatpush.msra.mxu1 %v3112_v2 }
0x13be   :  { %1121 = vmatpush.msra.mxu1 %v3124_v4 }
0x13c0   :  { %1122 = vmatpush.msra.mxu1 %v3136_v6 }
0x1436   :  { %v804_v3 = vpop.f32.mrf.mxu1 }
0x1437   :  { %v805_v45 = vadd.f32 %v804_v3, %v3317_v28 }
0x1439   :  { %v807_v5 = vsel %vm300_vm15, %v805_v45, -inf }
0x143a   :  { %808 = vmax.xlane.f32.xlu2 %v807_v5 }
0x14ad   :  { %v809_v7 = vpop.xlane.xlu2 %808 }
0x14ae   :  { %v3437_v46 = vsub.f32 %v805_v45, %v809_v7 }
0x14b0   :  { %vm811_vm3 = vcmp.eq.f32.partialorder %v3437_v46, 0.0 }
0x14b1   :  { %v812_v0 = vsel %vm811_vm3, %v3323_v35, 64 }
0x14b2   :  { %v813_v2 = vsel %vm300_vm15, %v812_v0, 2147483647 }
0x14b3   :  { %v815_v4 = vshra.s32 %v813_v2, 16  ;;  %v814_v51 = vand.u32 65535, %v813_v2 }
0x14b5   :  { %v817_v6 = vcvt.s32.f32 %v815_v4  ;;  %v816_v53 = vcvt.s32.f32 %v814_v51 }
0x14b7   :  { %818 = vmin.xlane.f32.xlu0 %v817_v6 }
0x14bf   :  { %588 = vadd.xlane.f32.xlu0 %v587_v50 }
0x152a   :  { %v819_v52 = vpop.xlane.xlu0 %818 }
0x152b   :  { %vm820_vm4 = vcmp.eq.f32.partialorder %v817_v6, %v819_v52  ;;  %v825_v57 = vcvt.f32.s32 %v819_v52 }
0x152c   :  { %v821_v42 = vsel %vm820_vm4, %v816_v53, inf }
0x152d   :  { %822 = vmin.xlane.f32.xlu1 %v821_v42  ;;  %v826_v59 = vshll.u32 %v825_v57, 16 }
0x1532   :  { %v589_v54 = vpop.xlane.xlu0 %588 }
0x1533   :  { %2837 = vrcp.f32 %v589_v54 }
0x1539   :  { %v2838_v43 = vpop.eup %2837 }
0x153a   :  { %2755 = vpush %v2838_v43 }
0x1546   :  { %915 = vrot.lane.b32.xlu1 %v892_v56, %s3029_s25 }
0x156b   :  { %s2756_s20 = spop %2755 }
0x156c   :  { %595 = sst [smem:[#allocation5 + $0x1]] %s2756_s20 }
0x15a0   :  { %v823_v58 = vpop.xlane.xlu1 %822 }
0x15a1   :  { %v824_v49 = vcvt.f32.s32 %v823_v58 }
0x15a3   :  { %v827_v60 = vadd.s32 %v826_v59, %v824_v49 }
0x15a5   :  { %v828_v61 = vrot.slane %v827_v60, 4 }
0x15a7   :  { %vm829_vm8 = vcmp.lt.s32.totalorder %v827_v60, %v828_v61 }
0x15a8   :  { %v830_v62 = vsel %vm829_vm8, %v827_v60, %v828_v61 }
0x15a9   :  { %v831_v12 = vrot.slane %v830_v62, 2 }
0x15ab   :  { %vm832_vm9 = vcmp.lt.s32.totalorder %v830_v62, %v831_v12 }
0x15ac   :  { %v833_v18 = vsel %vm832_vm9, %v830_v62, %v831_v12 }
0x15ad   :  { %v834_v19 = vrot.slane %v833_v18, 1 }
0x15af   :  { %vm835_vm10 = vcmp.lt.s32.totalorder %v833_v18, %v834_v19 }
0x15b0   :  { %v836_v25 = vsel %vm835_vm10, %v833_v18, %v834_v19 }
0x15b1   :  { %2757 = vpush %v836_v25 }
0x15e2   :  { %s2758_s21 = spop %2757 }
0x15e3   :  { %846 = sst [smem:[#allocation3 + $0x2]] %s2758_s21  ;;  %s849_s24 = scalar_lea.vmem %s4010_s0, %s2758_s21 }
0x15e4   :  { %v850_v10 = vld [vmem:[%s849_s24] sm:$0x1] }
0x15e5   :  { %2686 = vmatmul.msk.f32.vlgmr.msra.gmra.mxu3 %vm72_vm0, %v850_v10 }
0x15e6   :  { %1139 = vmatpush.msra.mxu3 %v3453_v26 }
0x15e8   :  { %1140 = vmatpush.msra.mxu3 %v3459_v27 }
0x15ea   :  { %1141 = vmatpush.msra.mxu3 %v3465_v29 }
0x15ec   :  { %1142 = vmatpush.msra.mxu3 %v3471_v30 }
0x1668   :  { %v871_v31 = vpop.f32.mrf.mxu3 }
0x1669   :  { %v872_v32 = vadd.f32 %v871_v31, %v3169_v13  ;;  %v916_v13 = vpop.permute.xlu1 %915 }
0x166b   :  { %v894_v34 = vadd.f32 %v892_v56, %v872_v32 }
0x166d   :  { %v2688_v37 = vmul.f32 -1.442695, %v894_v34 }
0x166f   :  { %2839 = vpow2.f32 %v2688_v37 }
0x1675   :  { %v2840_v39 = vpop.eup %2839 }
0x1676   :  { %v898_v33 = vadd.f32 1.0, %v2840_v39 }
0x1678   :  { %2841 = vrcp.f32 %v898_v33  ;;  %v910_v1 = vand.u32 2147483648, %v898_v33  ;;  %v908_v45 = vand.u32 2147483647, %v898_v33  ;;  %vm904_vm1 = vweird.f32 %v898_v33 }
0x167a   :  { %v911_v7 = vor.u32 1.1754944e-38, %v910_v1  ;;  %vm909_vm3 = vcmp.eq.f32.partialorder %v908_v45, 8.507059e+37 }
0x167e   :  { %v2842_v40 = vpop.eup %2841 }
0x167f   :  { %v900_v41 = vmul.f32 %v2842_v40, %v898_v33  ;;  %vm905_vm11 = vweird.f32 %v2842_v40  ;;  %v838_v33 = vmul.f32 1.442695, %v3437_v46 }
0x1680   :  { %vm906_vm2 = vmor %vm904_vm1, %vm905_vm11 }
0x1681   :  { %v901_v44 = vsub.f32 1.0, %v900_v41 }
0x1683   :  { %v902_v3 = vmul.f32 %v2842_v40, %v901_v44 }
0x1685   :  { %v903_v5 = vadd.f32 %v2842_v40, %v902_v3 }
0x1687   :  { %v907_v47 = vsel %vm906_vm2, %v2842_v40, %v903_v5 }
0x1688   :  { %v912_v0 = vsel %vm909_vm3, %v911_v7, %v907_v47 }
0x1689   :  { %v918_v2 = vmul.f32 %v916_v13, %v912_v0  ;;  %v925_v50 = vsub.f32 1.0, %v912_v0  ;;  %v931_v52 = vmul.f32 %v912_v0, %v3400_v38 }
0x168b   :  { %920 = vrot.lane.b32.xlu2 %v918_v2, %s3029_s25  ;;  %v3550_v2 = vld [vmem:[%s4014_s4] sm:$0x1] }
0x16e5   :  { %v921_v4 = vpop.permute.xlu2 %920 }
0x16e6   :  { %v923_v6 = vadd.f32 %v921_v4, %v872_v32 }
0x16e8   :  { %2843 = vtanh.f32 %v923_v6 }
0x16ee   :  { %v2844_v48 = vpop.eup %2843 }
0x16ef   :  { %927 = vrot.lane.b32.xlu0 %v2844_v48, %s3030_s28 }
0x1761   :  { %v928_v51 = vpop.permute.xlu0 %927 }
0x1762   :  { %v930_v53 = vmul.f32 %v928_v51, %v925_v50 }
0x1764   :  { %v3478_v42 = vadd.f32 %v931_v52, %v930_v53 }
0x1766   :  { %934 = vrot.lane.b32.xlu1 %v3478_v42, %s3030_s28 }
0x17d8   :  { %v935_v54 = vpop.permute.xlu1 %934 }
0x17d9   :  { %1006 = vst.msk [vmem:[#allocation2] sm:$0x1] %vm243_vm5, %v935_v54  ;;  %2690 = vmatmul.msk.f32.vlgmr.msrb.gmra.mxu1 %vm72_vm0, %v935_v54 }
0x17da   :  { %2700 = vmatpush.msk.msrb.mxu1 %vm219_vm7, %v3181_v36 }
0x1856   :  { %v955_v43 = vpop.f32.mrf.mxu1 }
0x1857   :  { %v958_v55 = vsel %vm190_vm6, %v955_v43, -inf }
0x1858   :  { %959 = vmax.xlane.f32.xlu0 %v958_v55 }
0x18cb   :  { %v960_v56 = vpop.xlane.xlu0 %959 }
0x18cc   :  { %v961_v38 = vsub.f32 %v955_v43, %v960_v56 }
0x18ce   :  { %v962_v57 = vmul.f32 1.442695, %v961_v38 }
0x18d0   :  { %2845 = vpow2.f32 %v962_v57 }
0x18d6   :  { %v2846_v58 = vpop.eup %2845 }
0x18d7   :  { %v964_v59 = vsel %vm190_vm6, %v2846_v58, 0.0 }
0x18d8   :  { %965 = vadd.xlane.f32.xlu2 %v964_v59  ;;  %v3565_v59 = vld [vmem:[%s4013_s3] sm:$0x1] }
0x194b   :  { %v966_v49 = vpop.xlane.xlu2 %965 }
0x194c   :  { %2847 = vrcp.f32 %v966_v49  ;;  %v978_v12 = vand.u32 2147483648, %v966_v49  ;;  %v976_v36 = vand.u32 2147483647, %v966_v49  ;;  %vm972_vm8 = vweird.f32 %v966_v49 }
0x194e   :  { %v979_v25 = vor.u32 1.1754944e-38, %v978_v12  ;;  %vm977_vm10 = vcmp.eq.f32.partialorder %v976_v36, 8.507059e+37 }
0x1952   :  { %v2848_v60 = vpop.eup %2847 }
0x1953   :  { %v968_v61 = vmul.f32 %v2848_v60, %v966_v49  ;;  %vm973_vm4 = vweird.f32 %v2848_v60 }
0x1954   :  { %vm974_vm9 = vmor %vm972_vm8, %vm973_vm4 }
0x1955   :  { %v969_v62 = vsub.f32 1.0, %v968_v61 }
0x1957   :  { %v970_v18 = vmul.f32 %v2848_v60, %v969_v62 }
0x1959   :  { %v971_v19 = vadd.f32 %v2848_v60, %v970_v18 }
0x195b   :  { %v975_v10 = vsel %vm974_vm9, %v2848_v60, %v971_v19 }
0x195c   :  { %v980_v31 = vsel %vm977_vm10, %v979_v25, %v975_v10 }
0x195d   :  { %v981_v32 = vmul.f32 %v2846_v58, %v980_v31 }
0x195f   :  { %2692 = vmatmul.msk.f32.vlgmr.msrb.gmra.mxu3 %vm215_vm12, %v981_v32 }
0x1960   :  { %1277 = vmatpush.msrb.mxu3 %v3205_v63 }
0x1962   :  { %1278 = vmatpush.msrb.mxu3 %v3210_v8 }
0x1964   :  { %1279 = vmatpush.msrb.mxu3 %v3217_v9 }
0x1966   :  { %1280 = vmatpush.msrb.mxu3 %v3224_v11  ;;  %v3508_v11 = vld [vmem:[%s4015_s5] sm:$0x3] }
0x1967   :  { %2696 = vmatmul.msk.f32.vlgmr.msra.gmra.mxu3 %vm72_vm0, %v935_v54 }
0x1968   :  { %1281 = vmatpush.msrb.mxu3 %v3234_v14 }
0x196a   :  { %1282 = vmatpush.msrb.mxu3 %v3241_v15 }
0x196c   :  { %1283 = vmatpush.msrb.mxu3 %v3248_v16 }
0x196e   :  { %1284 = vmatpush.msrb.mxu3 %v3255_v17  ;;  %v3517_v17 = vld [vmem:[%s4011_s1 + $0x18] sm:$0xff] }
0x1970   :  { %1558 = vmatpush.msra.mxu3 %v3264_v20  ;;  %v3523_v20 = vld [vmem:[%s4011_s1 + $0x10] sm:$0xff] }
0x1972   :  { %1559 = vmatpush.msra.mxu3 %v3270_v21  ;;  %v3529_v21 = vld [vmem:[%s4011_s1 + $0x8] sm:$0xff] }
0x1974   :  { %1560 = vmatpush.msra.mxu3 %v3276_v22  ;;  %v3535_v22 = vld [vmem:[%s4011_s1] sm:$0xff] }
0x1976   :  { %1561 = vmatpush.msra.mxu3 %v3284_v23 }
0x19e2   :  { %v1002_v63 = vpop.f32.mrf.mxu3 }
0x19e3   :  { %1008 = vrot.lane.b32.xlu1 %v1002_v63, %s3031_s13 }
0x19ea   :  { %v1144_v0 = vpop.f32.mrf.mxu3 }
0x19eb   :  { %v1145_v4 = vadd.f32 %v3550_v2, %v1144_v0 }
0x1a55   :  { %v1009_v8 = vpop.permute.xlu1 %1008 }
0x1a56   :  { %1011 = vst.msk [vmem:[#allocation2] sm:$0x1] %vm249_vm13, %v1009_v8 }
0x1a5d   :  { %v1012_v9 = vld [vmem:[#allocation2] sm:$0x1] }
0x1a5e   :  { %2693 = vmatmul.msk.f32.vlgmr.msrb.gmra.mxu2 %vm252_vm14, %v1012_v9 }
0x1a5f   :  { %2707 = vmatpush.xpose.msk.msrb.mxu2 %vm72_vm0, %v3508_v11 }
0x1ae1   :  { %v1033_v14 = vpop.f32.mrf.mxu2 }
0x1ae2   :  { %v1034_v15 = vadd.f32 %v1033_v14, %v3302_v24 }
0x1ae4   :  { %2849 = vtanh.f32 %v1034_v15 }
0x1ae5   :  { %2851 = vpow2.f32 %v838_v33 }
0x1aea   :  { %v2850_v16 = vpop.eup %2849 }
0x1aeb   :  { %2694 = vmatmul.msk.f32.vlgmr.msrb.gmra.mxu0 %vm72_vm0, %v2850_v16  ;;  %v2852_v3 = vpop.eup %2851 }
0x1aec   :  { %1372 = vmatpush.msrb.mxu0 %v3517_v17 }
0x1aee   :  { %1373 = vmatpush.msrb.mxu0 %v3523_v20 }
0x1af0   :  { %1374 = vmatpush.msrb.mxu0 %v3529_v21 }
0x1af2   :  { %1375 = vmatpush.msrb.mxu0 %v3535_v22 }
0x1b68   :  { %v1057_v23 = vpop.f32.mrf.mxu0 }
0x1b69   :  { %v1058_v24 = vadd.f32 %v1057_v23, %v3317_v28  ;;  %v840_v28 = vsel %vm300_vm15, %v2852_v3, 0.0 }
0x1b6b   :  { %v1060_v34 = vsel %vm300_vm15, %v1058_v24, -inf }
0x1b6c   :  { %1061 = vmax.xlane.f32.xlu1 %v1060_v34 }
0x1bdf   :  { %v1062_v37 = vpop.xlane.xlu1 %1061 }
0x1be0   :  { %v3540_v39 = vsub.f32 %v1058_v24, %v1062_v37 }
0x1be2   :  { %vm1064_vm11 = vcmp.eq.f32.partialorder %v3540_v39, 0.0 }
0x1be3   :  { %v1065_v40 = vsel %vm1064_vm11, %v3323_v35, 64 }
0x1be4   :  { %v1066_v41 = vsel %vm300_vm15, %v1065_v40, 2147483647 }
0x1be5   :  { %v1068_v44 = vshra.s32 %v1066_v41, 16  ;;  %v1067_v45 = vand.u32 65535, %v1066_v41 }
0x1be7   :  { %v1070_v1 = vcvt.s32.f32 %v1068_v44  ;;  %v1069_v7 = vcvt.s32.f32 %v1067_v45 }
0x1be9   :  { %1071 = vmin.xlane.f32.xlu0 %v1070_v1 }
0x1bf1   :  { %841 = vadd.xlane.f32.xlu0 %v840_v28 }
0x1c5c   :  { %v1072_v5 = vpop.xlane.xlu0 %1071 }
0x1c5d   :  { %vm1073_vm1 = vcmp.eq.f32.partialorder %v1070_v1, %v1072_v5  ;;  %v1078_v6 = vcvt.f32.s32 %v1072_v5 }
0x1c5e   :  { %v1074_v47 = vsel %vm1073_vm1, %v1069_v7, inf }
0x1c5f   :  { %1075 = vmin.xlane.f32.xlu2 %v1074_v47  ;;  %v1079_v50 = vshll.u32 %v1078_v6, 16 }
0x1c64   :  { %v842_v13 = vpop.xlane.xlu0 %841 }
0x1c65   :  { %2853 = vrcp.f32 %v842_v13 }
0x1c6b   :  { %v2854_v46 = vpop.eup %2853 }
0x1c6c   :  { %2759 = vpush %v2854_v46 }
0x1c77   :  { %1168 = vrot.lane.b32.xlu2 %v1145_v4, %s3029_s25 }
0x1c9d   :  { %s2760_s14 = spop %2759 }
0x1c9e   :  { %848 = sst [smem:[#allocation5 + $0x2]] %s2760_s14 }
0x1cd2   :  { %v1076_v48 = vpop.xlane.xlu2 %1075 }
0x1cd3   :  { %v1077_v51 = vcvt.f32.s32 %v1076_v48 }
0x1cd5   :  { %v1080_v52 = vadd.s32 %v1079_v50, %v1077_v51 }
0x1cd7   :  { %v1081_v53 = vrot.slane %v1080_v52, 4 }
0x1cd9   :  { %vm1082_vm2 = vcmp.lt.s32.totalorder %v1080_v52, %v1081_v53 }
0x1cda   :  { %v1083_v54 = vsel %vm1082_vm2, %v1080_v52, %v1081_v53  ;;  %v1169_v9 = vpop.permute.xlu2 %1168 }
0x1cdb   :  { %v1084_v43 = vrot.slane %v1083_v54, 2 }
0x1cdd   :  { %vm1085_vm3 = vcmp.lt.s32.totalorder %v1083_v54, %v1084_v43 }
0x1cde   :  { %v1086_v55 = vsel %vm1085_vm3, %v1083_v54, %v1084_v43  ;;  %v3585_v43 = vld [vmem:[%s4016_s6 + $0x38] sm:$0xff] }
0x1cdf   :  { %v1087_v56 = vrot.slane %v1086_v55, 1 }
0x1ce1   :  { %vm1088_vm4 = vcmp.lt.s32.totalorder %v1086_v55, %v1087_v56 }
0x1ce2   :  { %v1089_v38 = vsel %vm1088_vm4, %v1086_v55, %v1087_v56  ;;  %v3591_v55 = vld [vmem:[%s4016_s6 + $0x30] sm:$0xff]  ;;  %v3597_v56 = vld [vmem:[%s4016_s6 + $0x28] sm:$0xff] }
0x1ce3   :  { %2761 = vpush %v1089_v38  ;;  %v3603_v38 = vld [vmem:[%s4016_s6 + $0x20] sm:$0xff] }
0x1d14   :  { %s2762_s15 = spop %2761 }
0x1d15   :  { %1099 = sst [smem:[#allocation3 + $0x3]] %s2762_s15  ;;  %s1102_s17 = scalar_lea.vmem %s4010_s0, %s2762_s15 }
0x1d16   :  { %v1103_v57 = vld [vmem:[%s1102_s17] sm:$0x1] }
0x1d17   :  { %2695 = vmatmul.msk.f32.vlgmr.msra.gmra.mxu1 %vm72_vm0, %v1103_v57  ;;  %v3610_v57 = vld [vmem:[%s4016_s6 + $0x18] sm:$0xff] }
0x1d18   :  { %1392 = vmatpush.msra.mxu1 %v3453_v26 }
0x1d1a   :  { %1393 = vmatpush.msra.mxu1 %v3459_v27 }
0x1d1c   :  { %1394 = vmatpush.msra.mxu1 %v3465_v29 }
0x1d1e   :  { %1395 = vmatpush.msra.mxu1 %v3471_v30 }
0x1d94   :  { %v1124_v58 = vpop.f32.mrf.mxu1 }
0x1d95   :  { %v1125_v49 = vadd.f32 %v3565_v59, %v1124_v58  ;;  %v3616_v58 = vld [vmem:[%s4016_s6 + $0x10] sm:$0xff] }
0x1d97   :  { %v1147_v60 = vadd.f32 %v1145_v4, %v1125_v49 }
0x1d99   :  { %v2697_v61 = vmul.f32 -1.442695, %v1147_v60  ;;  %v3628_v60 = vld [vmem:[%s4016_s6] sm:$0xff] }
0x1d9b   :  { %2855 = vpow2.f32 %v2697_v61  ;;  %v3634_v61 = vld [vmem:[%s4018_s8 + $0x18] sm:$0xff] }
0x1da1   :  { %v2856_v62 = vpop.eup %2855 }
0x1da2   :  { %v1151_v12 = vadd.f32 1.0, %v2856_v62  ;;  %v3640_v62 = vld [vmem:[%s4018_s8 + $0x10] sm:$0xff] }
0x1da4   :  { %2857 = vrcp.f32 %v1151_v12  ;;  %v1163_v25 = vand.u32 2147483648, %v1151_v12  ;;  %v1161_v31 = vand.u32 2147483647, %v1151_v12  ;;  %vm1157_vm9 = vweird.f32 %v1151_v12 }
0x1da6   :  { %v1164_v63 = vor.u32 1.1754944e-38, %v1163_v25  ;;  %vm1162_vm11 = vcmp.eq.f32.partialorder %v1161_v31, 8.507059e+37  ;;  %v3663_v31 = vld [vmem:[%s4017_s7] sm:$0x1] }
0x1daa   :  { %v2858_v18 = vpop.eup %2857 }
0x1dab   :  { %v1153_v36 = vmul.f32 %v2858_v18, %v1151_v12  ;;  %vm1158_vm8 = vweird.f32 %v2858_v18  ;;  %v3646_v12 = vld [vmem:[%s4018_s8 + $0x8] sm:$0xff] }
0x1dac   :  { %vm1159_vm10 = vmor %vm1157_vm9, %vm1158_vm8 }
0x1dad   :  { %v1154_v19 = vsub.f32 1.0, %v1153_v36 }
0x1daf   :  { %v1155_v10 = vmul.f32 %v2858_v18, %v1154_v19 }
0x1db1   :  { %v1156_v32 = vadd.f32 %v2858_v18, %v1155_v10 }
0x1db3   :  { %v1160_v8 = vsel %vm1159_vm10, %v2858_v18, %v1156_v32  ;;  %v3652_v18 = vld [vmem:[%s4018_s8] sm:$0xff] }
0x1db4   :  { %v1165_v14 = vsel %vm1162_vm11, %v1164_v63, %v1160_v8 }
0x1db5   :  { %v1171_v15 = vmul.f32 %v1169_v9, %v1165_v14  ;;  %v1178_v34 = vsub.f32 1.0, %v1165_v14  ;;  %v1184_v33 = vmul.f32 %v1165_v14, %v3478_v42  ;;  %v3674_v9 = vld [vmem:[%s4019_s9] sm:$0x1] }
0x1db7   :  { %1173 = vrot.lane.b32.xlu1 %v1171_v15, %s3029_s25 }
0x1e29   :  { %v1174_v16 = vpop.permute.xlu1 %1173 }
0x1e2a   :  { %v1176_v23 = vadd.f32 %v1174_v16, %v1125_v49  ;;  %v3622_v49 = vld [vmem:[%s4016_s6 + $0x8] sm:$0xff] }
0x1e2c   :  { %2859 = vtanh.f32 %v1176_v23 }
0x1e32   :  { %v2860_v24 = vpop.eup %2859 }
0x1e33   :  { %1180 = vrot.lane.b32.xlu0 %v2860_v24, %s3030_s28 }
0x1ea5   :  { %v1181_v37 = vpop.permute.xlu0 %1180 }
0x1ea6   :  { %v1183_v40 = vmul.f32 %v1181_v37, %v1178_v34  ;;  %v1091_v37 = vmul.f32 1.442695, %v3540_v39 }
0x1ea8   :  { %v3571_v41 = vadd.f32 %v1184_v33, %v1183_v40 }
0x1eaa   :  { %1187 = vrot.lane.b32.xlu2 %v3571_v41, %s3030_s28 }
0x1f04   :  { %v1188_v44 = vpop.permute.xlu2 %1187 }
0x1f05   :  { %1259 = vst.msk [vmem:[#allocation2] sm:$0x1] %vm243_vm5, %v1188_v44  ;;  %2699 = vmatmul.msk.f32.vlgmr.msra.gmra.mxu0 %vm72_vm0, %v1188_v44 }
0x1f06   :  { %2709 = vmatpush.msk.msra.mxu0 %vm219_vm7, %v3508_v11 }
0x1f82   :  { %v1208_v1 = vpop.f32.mrf.mxu0 }
0x1f83   :  { %v1211_v3 = vsel %vm190_vm6, %v1208_v1, -inf }
0x1f84   :  { %1212 = vmax.xlane.f32.xlu0 %v1211_v3 }
0x1ff7   :  { %v1213_v28 = vpop.xlane.xlu0 %1212 }
0x1ff8   :  { %v1214_v42 = vsub.f32 %v1208_v1, %v1213_v28 }
0x1ffa   :  { %v1215_v45 = vmul.f32 1.442695, %v1214_v42 }
0x1ffc   :  { %2861 = vpow2.f32 %v1215_v45 }
0x2002   :  { %v2862_v5 = vpop.eup %2861 }
0x2003   :  { %v1217_v7 = vsel %vm190_vm6, %v2862_v5, 0.0 }
0x2004   :  { %1218 = vadd.xlane.f32.xlu1 %v1217_v7 }
0x2077   :  { %v1219_v47 = vpop.xlane.xlu1 %1218 }
0x2078   :  { %2863 = vrcp.f32 %v1219_v47  ;;  %v1231_v4 = vand.u32 2147483648, %v1219_v47  ;;  %v1229_v48 = vand.u32 2147483647, %v1219_v47  ;;  %vm1225_vm2 = vweird.f32 %v1219_v47 }
0x207a   :  { %v1232_v51 = vor.u32 1.1754944e-38, %v1231_v4  ;;  %vm1230_vm4 = vcmp.eq.f32.partialorder %v1229_v48, 8.507059e+37 }
0x207e   :  { %v2864_v13 = vpop.eup %2863 }
0x207f   :  { %v1221_v46 = vmul.f32 %v2864_v13, %v1219_v47  ;;  %vm1226_vm1 = vweird.f32 %v2864_v13 }
0x2080   :  { %vm1227_vm3 = vmor %vm1225_vm2, %vm1226_vm1 }
0x2081   :  { %v1222_v0 = vsub.f32 1.0, %v1221_v46 }
0x2083   :  { %v1223_v6 = vmul.f32 %v2864_v13, %v1222_v0 }
0x2085   :  { %v1224_v50 = vadd.f32 %v2864_v13, %v1223_v6 }
0x2087   :  { %v1228_v52 = vsel %vm1227_vm3, %v2864_v13, %v1224_v50 }
0x2088   :  { %v1233_v53 = vsel %vm1230_vm4, %v1232_v51, %v1228_v52 }
0x2089   :  { %v1234_v54 = vmul.f32 %v2862_v5, %v1233_v53 }
0x208b   :  { %2701 = vmatmul.msk.f32.vlgmr.msrb.gmra.mxu1 %vm215_vm12, %v1234_v54 }
0x208c   :  { %1530 = vmatpush.msrb.mxu1 %v3585_v43 }
0x208e   :  { %1531 = vmatpush.msrb.mxu1 %v3591_v55 }
0x2090   :  { %1532 = vmatpush.msrb.mxu1 %v3597_v56 }
0x2092   :  { %1533 = vmatpush.msrb.mxu1 %v3603_v38 }
0x2093   :  { %2705 = vmatmul.msk.f32.vlgmr.msra.gmra.mxu1 %vm72_vm0, %v1188_v44 }
0x2094   :  { %1534 = vmatpush.msrb.mxu1 %v3610_v57 }
0x2096   :  { %1535 = vmatpush.msrb.mxu1 %v3616_v58 }
0x2098   :  { %1536 = vmatpush.msrb.mxu1 %v3622_v49 }
0x209a   :  { %1537 = vmatpush.msrb.mxu1 %v3628_v60 }
0x209c   :  { %1811 = vmatpush.msra.mxu1 %v3634_v61 }
0x209e   :  { %1812 = vmatpush.msra.mxu1 %v3640_v62 }
0x20a0   :  { %1813 = vmatpush.msra.mxu1 %v3646_v12 }
0x20a2   :  { %1814 = vmatpush.msra.mxu1 %v3652_v18 }
0x2108   :  { %v1255_v36 = vpop.f32.mrf.mxu1 }
0x2109   :  { %1261 = vrot.lane.b32.xlu2 %v1255_v36, %s3031_s13 }
0x2110   :  { %v1397_v16 = vpop.f32.mrf.mxu1 }
0x2111   :  { %v1398_v23 = vadd.f32 %v3550_v2, %v1397_v16 }
0x2163   :  { %v1262_v19 = vpop.permute.xlu2 %1261 }
0x2164   :  { %1264 = vst.msk [vmem:[#allocation2] sm:$0x1] %vm249_vm13, %v1262_v19 }
0x216b   :  { %v1265_v25 = vld [vmem:[#allocation2] sm:$0x1] }
0x216c   :  { %2702 = vmatmul.msk.f32.vlgmr.msrb.gmra.mxu3 %vm252_vm14, %v1265_v25 }
0x216d   :  { %2716 = vmatpush.xpose.msk.msrb.mxu3 %vm72_vm0, %v3508_v11 }
0x21ef   :  { %v1286_v10 = vpop.f32.mrf.mxu3 }
0x21f0   :  { %v1287_v32 = vadd.f32 %v3663_v31, %v1286_v10 }
0x21f2   :  { %2865 = vtanh.f32 %v1287_v32 }
0x21f3   :  { %2867 = vpow2.f32 %v1091_v37 }
0x21f8   :  { %v2866_v63 = vpop.eup %2865 }
0x21f9   :  { %2703 = vmatmul.msk.f32.vlgmr.msra.gmra.mxu2 %vm72_vm0, %v2866_v63  ;;  %v2868_v3 = vpop.eup %2867 }
0x21fa   :  { %1625 = vmatpush.msra.mxu2 %v3517_v17  ;;  %v1093_v28 = vsel %vm300_vm15, %v2868_v3, 0.0 }
0x21fc   :  { %1626 = vmatpush.msra.mxu2 %v3523_v20 }
0x21fe   :  { %1627 = vmatpush.msra.mxu2 %v3529_v21 }
0x2200   :  { %1628 = vmatpush.msra.mxu2 %v3535_v22 }
0x227c   :  { %v1310_v8 = vpop.f32.mrf.mxu2 }
0x227d   :  { %v1311_v14 = vadd.f32 %v3674_v9, %v1310_v8 }
0x227f   :  { %v1313_v15 = vsel %vm300_vm15, %v1311_v14, -inf }
0x2280   :  { %1314 = vmax.xlane.f32.xlu2 %v1313_v15 }
0x2298   :  { %1421 = vrot.lane.b32.xlu2 %v1398_v23, %s3029_s25 }
0x22f3   :  { %v1315_v24 = vpop.xlane.xlu2 %1314 }
0x22f4   :  { %v3680_v34 = vsub.f32 %v1311_v14, %v1315_v24 }
0x22f6   :  { %vm1317_vm8 = vcmp.eq.f32.partialorder %v3680_v34, 0.0 }
0x22f7   :  { %v1318_v33 = vsel %vm1317_vm8, %v3323_v35, 64 }
0x22f8   :  { %v1319_v40 = vsel %vm300_vm15, %v1318_v33, 2147483647 }
0x22f9   :  { %v1321_v44 = vshra.s32 %v1319_v40, 16  ;;  %v1320_v42 = vand.u32 65535, %v1319_v40 }
0x22fb   :  { %v1323_v1 = vcvt.s32.f32 %v1321_v44  ;;  %v1322_v5 = vcvt.s32.f32 %v1320_v42  ;;  %v1422_v3 = vpop.permute.xlu2 %1421 }
0x22fd   :  { %1324 = vmin.xlane.f32.xlu0 %v1323_v1 }
0x2305   :  { %1094 = vadd.xlane.f32.xlu0 %v1093_v28 }
0x2370   :  { %v1325_v45 = vpop.xlane.xlu0 %1324 }
0x2371   :  { %vm1326_vm9 = vcmp.eq.f32.partialorder %v1323_v1, %v1325_v45  ;;  %v1331_v13 = vcvt.f32.s32 %v1325_v45 }
0x2372   :  { %v1327_v7 = vsel %vm1326_vm9, %v1322_v5, inf }
0x2373   :  { %1328 = vmin.xlane.f32.xlu1 %v1327_v7  ;;  %v1332_v0 = vshll.u32 %v1331_v13, 16 }
0x2378   :  { %v1095_v47 = vpop.xlane.xlu0 %1094 }
0x2379   :  { %2869 = vrcp.f32 %v1095_v47 }
0x237f   :  { %v2870_v39 = vpop.eup %2869 }
0x2380   :  { %2763 = vpush %v2870_v39 }
0x23b1   :  { %s2764_s10 = spop %2763 }
0x23b2   :  { %1101 = sst [smem:[#allocation5 + $0x3]] %s2764_s10 }
0x23e6   :  { %v1329_v46 = vpop.xlane.xlu1 %1328 }
0x23e7   :  { %v1330_v4 = vcvt.f32.s32 %v1329_v46 }
0x23e9   :  { %v1333_v6 = vadd.s32 %v1332_v0, %v1330_v4 }
0x23eb   :  { %v1334_v48 = vrot.slane %v1333_v6, 4 }
0x23ed   :  { %vm1335_vm10 = vcmp.lt.s32.totalorder %v1333_v6, %v1334_v48 }
0x23ee   :  { %v1336_v50 = vsel %vm1335_vm10, %v1333_v6, %v1334_v48 }
0x23ef   :  { %v1337_v51 = vrot.slane %v1336_v50, 2 }
0x23f1   :  { %vm1338_vm11 = vcmp.lt.s32.totalorder %v1336_v50, %v1337_v51 }
0x23f2   :  { %v1339_v52 = vsel %vm1338_vm11, %v1336_v50, %v1337_v51 }
0x23f3   :  { %v1340_v53 = vrot.slane %v1339_v52, 1 }
0x23f5   :  { %vm1341_vm1 = vcmp.lt.s32.totalorder %v1339_v52, %v1340_v53 }
0x23f6   :  { %v1342_v54 = vsel %vm1341_vm1, %v1339_v52, %v1340_v53 }
0x23f7   :  { %2765 = vpush %v1342_v54 }
0x2428   :  { %s2766_s16 = spop %2765 }
0x2429   :  { %1352 = sst [smem:[#allocation3 + $0x4]] %s2766_s16  ;;  %s1355_s19 = scalar_lea.vmem %s4010_s0, %s2766_s16 }
0x242a   :  { %v1356_v36 = vld [vmem:[%s1355_s19] sm:$0x1] }
0x242b   :  { %2704 = vmatmul.msk.f32.vlgmr.msrb.gmra.mxu0 %vm72_vm0, %v1356_v36 }
0x242c   :  { %1645 = vmatpush.msrb.mxu0 %v3453_v26 }
0x242e   :  { %1646 = vmatpush.msrb.mxu0 %v3459_v27 }
0x2430   :  { %1647 = vmatpush.msrb.mxu0 %v3465_v29 }
0x2432   :  { %1648 = vmatpush.msrb.mxu0 %v3471_v30 }
0x24a8   :  { %v1377_v19 = vpop.f32.mrf.mxu0 }
0x24a9   :  { %v1378_v25 = vadd.f32 %v3565_v59, %v1377_v19 }
0x24ab   :  { %v1400_v10 = vadd.f32 %v1398_v23, %v1378_v25 }
0x24ad   :  { %v2706_v32 = vmul.f32 -1.442695, %v1400_v10 }
0x24af   :  { %2871 = vpow2.f32 %v2706_v32 }
0x24b5   :  { %v2872_v63 = vpop.eup %2871 }
0x24b6   :  { %v1404_v8 = vadd.f32 1.0, %v2872_v63 }
0x24b8   :  { %2873 = vrcp.f32 %v1404_v8  ;;  %v1416_v24 = vand.u32 2147483648, %v1404_v8  ;;  %v1414_v33 = vand.u32 2147483647, %v1404_v8  ;;  %vm1410_vm3 = vweird.f32 %v1404_v8 }
0x24ba   :  { %v1417_v44 = vor.u32 1.1754944e-38, %v1416_v24  ;;  %vm1415_vm8 = vcmp.eq.f32.partialorder %v1414_v33, 8.507059e+37 }
0x24be   :  { %v2874_v14 = vpop.eup %2873 }
0x24bf   :  { %v1406_v15 = vmul.f32 %v2874_v14, %v1404_v8  ;;  %vm1411_vm2 = vweird.f32 %v2874_v14 }
0x24c0   :  { %vm1412_vm4 = vmor %vm1410_vm3, %vm1411_vm2 }
0x24c1   :  { %v1407_v16 = vsub.f32 1.0, %v1406_v15 }
0x24c3   :  { %v1408_v37 = vmul.f32 %v2874_v14, %v1407_v16 }
0x24c5   :  { %v1409_v40 = vadd.f32 %v2874_v14, %v1408_v37 }
0x24c7   :  { %v1413_v1 = vsel %vm1412_vm4, %v2874_v14, %v1409_v40 }
0x24c8   :  { %v1418_v23 = vsel %vm1415_vm8, %v1417_v44, %v1413_v1 }
0x24c9   :  { %v1424_v28 = vmul.f32 %v1422_v3, %v1418_v23  ;;  %v1431_v7 = vsub.f32 1.0, %v1418_v23  ;;  %v1437_v39 = vmul.f32 %v1418_v23, %v3571_v41 }
0x24cb   :  { %1426 = vrot.lane.b32.xlu1 %v1424_v28, %s3029_s25 }
0x253d   :  { %v1427_v42 = vpop.permute.xlu1 %1426 }
0x253e   :  { %v1429_v45 = vadd.f32 %v1427_v42, %v1378_v25 }
0x2540   :  { %2875 = vtanh.f32 %v1429_v45 }
0x2546   :  { %v2876_v5 = vpop.eup %2875 }
0x2547   :  { %1433 = vrot.lane.b32.xlu0 %v2876_v5, %s3030_s28  ;;  %v1344_v5 = vmul.f32 1.442695, %v3680_v34 }
0x25b9   :  { %v1434_v47 = vpop.permute.xlu0 %1433 }
0x25ba   :  { %v1436_v13 = vmul.f32 %v1434_v47, %v1431_v7 }
0x25bc   :  { %v3699_v46 = vadd.f32 %v1437_v39, %v1436_v13 }
0x25be   :  { %1440 = vrot.lane.b32.xlu2 %v3699_v46, %s3030_s28 }
0x2618   :  { %v1441_v0 = vpop.permute.xlu2 %1440 }
0x2619   :  { %1512 = vst.msk [vmem:[#allocation2] sm:$0x1] %vm243_vm5, %v1441_v0  ;;  %2708 = vmatmul.msk.f32.vlgmr.msrb.gmra.mxu2 %vm72_vm0, %v1441_v0 }
0x261a   :  { %2718 = vmatpush.msk.msrb.mxu2 %vm219_vm7, %v3508_v11 }
0x269c   :  { %v1461_v4 = vpop.f32.mrf.mxu2 }
0x269d   :  { %v1464_v6 = vsel %vm190_vm6, %v1461_v4, -inf }
0x269e   :  { %1465 = vmax.xlane.f32.xlu0 %v1464_v6 }
0x2711   :  { %v1466_v48 = vpop.xlane.xlu0 %1465 }
0x2712   :  { %v1467_v41 = vsub.f32 %v1461_v4, %v1466_v48 }
0x2714   :  { %v1468_v50 = vmul.f32 1.442695, %v1467_v41 }
0x2716   :  { %2877 = vpow2.f32 %v1468_v50 }
0x271c   :  { %v2878_v51 = vpop.eup %2877 }
0x271d   :  { %v1470_v52 = vsel %vm190_vm6, %v2878_v51, 0.0 }
0x271e   :  { %1471 = vadd.xlane.f32.xlu1 %v1470_v52 }
0x2791   :  { %v1472_v53 = vpop.xlane.xlu1 %1471 }
0x2792   :  { %2879 = vrcp.f32 %v1472_v53  ;;  %v1484_v25 = vand.u32 2147483648, %v1472_v53  ;;  %v1482_v32 = vand.u32 2147483647, %v1472_v53  ;;  %vm1478_vm10 = vweird.f32 %v1472_v53 }
0x2794   :  { %v1485_v8 = vor.u32 1.1754944e-38, %v1484_v25  ;;  %vm1483_vm1 = vcmp.eq.f32.partialorder %v1482_v32, 8.507059e+37 }
0x2798   :  { %v2880_v54 = vpop.eup %2879 }
0x2799   :  { %v1474_v36 = vmul.f32 %v2880_v54, %v1472_v53  ;;  %vm1479_vm9 = vweird.f32 %v2880_v54 }
0x279a   :  { %vm1480_vm11 = vmor %vm1478_vm10, %vm1479_vm9 }
0x279b   :  { %v1475_v19 = vsub.f32 1.0, %v1474_v36 }
0x279d   :  { %v1476_v10 = vmul.f32 %v2880_v54, %v1475_v19 }
0x279f   :  { %v1477_v63 = vadd.f32 %v2880_v54, %v1476_v10 }
0x27a1   :  { %v1481_v14 = vsel %vm1480_vm11, %v2880_v54, %v1477_v63 }
0x27a2   :  { %v1486_v15 = vsel %vm1483_vm1, %v1485_v8, %v1481_v14 }
0x27a3   :  { %v1487_v16 = vmul.f32 %v2878_v51, %v1486_v15 }
0x27a5   :  { %2710 = vmatmul.msk.f32.vlgmr.msra.gmra.mxu0 %vm215_vm12, %v1487_v16 }
0x27a6   :  { %1783 = vmatpush.msra.mxu0 %v3585_v43 }
0x27a8   :  { %1784 = vmatpush.msra.mxu0 %v3591_v55 }
0x27aa   :  { %1785 = vmatpush.msra.mxu0 %v3597_v56 }
0x27ac   :  { %1786 = vmatpush.msra.mxu0 %v3603_v38 }
0x27ad   :  { %2714 = vmatmul.msk.f32.vlgmr.msrb.gmra.mxu0 %vm72_vm0, %v1441_v0 }
0x27ae   :  { %1787 = vmatpush.msra.mxu0 %v3610_v57 }
0x27b0   :  { %1788 = vmatpush.msra.mxu0 %v3616_v58 }
0x27b2   :  { %1789 = vmatpush.msra.mxu0 %v3622_v49 }
0x27b4   :  { %1790 = vmatpush.msra.mxu0 %v3628_v60 }
0x27b6   :  { %2064 = vmatpush.msrb.mxu0 %v3634_v61 }
0x27b8   :  { %2065 = vmatpush.msrb.mxu0 %v3640_v62 }
0x27ba   :  { %2066 = vmatpush.msrb.mxu0 %v3646_v12 }
0x27bc   :  { %2067 = vmatpush.msrb.mxu0 %v3652_v18 }
0x2822   :  { %v1508_v24 = vpop.f32.mrf.mxu0 }
0x2823   :  { %1514 = vrot.lane.b32.xlu2 %v1508_v24, %s3031_s13 }
0x282a   :  { %v1650_v52 = vpop.f32.mrf.mxu0 }
0x282b   :  { %v1651_v53 = vadd.f32 %v3550_v2, %v1650_v52 }
0x287d   :  { %v1515_v37 = vpop.permute.xlu2 %1514 }
0x287e   :  { %1517 = vst.msk [vmem:[#allocation2] sm:$0x1] %vm249_vm13, %v1515_v37 }
0x2885   :  { %v1518_v33 = vld [vmem:[#allocation2] sm:$0x1] }
0x2886   :  { %2711 = vmatmul.msk.f32.vlgmr.msrb.gmra.mxu1 %vm252_vm14, %v1518_v33 }
0x2887   :  { %2725 = vmatpush.xpose.msk.msrb.mxu1 %vm72_vm0, %v3508_v11 }
0x2903   :  { %v1539_v40 = vpop.f32.mrf.mxu1 }
0x2904   :  { %v1540_v44 = vadd.f32 %v3663_v31, %v1539_v40 }
0x2906   :  { %2881 = vtanh.f32 %v1540_v44 }
0x2907   :  { %2883 = vpow2.f32 %v1344_v5 }
0x290c   :  { %v2882_v1 = vpop.eup %2881 }
0x290d   :  { %2712 = vmatmul.msk.f32.vlgmr.msra.gmra.mxu3 %vm72_vm0, %v2882_v1  ;;  %v2884_v0 = vpop.eup %2883 }
0x290e   :  { %1878 = vmatpush.msra.mxu3 %v3517_v17  ;;  %v1346_v4 = vsel %vm300_vm15, %v2884_v0, 0.0 }
0x2910   :  { %1879 = vmatpush.msra.mxu3 %v3523_v20 }
0x2912   :  { %1880 = vmatpush.msra.mxu3 %v3529_v21 }
0x2914   :  { %1881 = vmatpush.msra.mxu3 %v3535_v22 }
0x2990   :  { %v1563_v3 = vpop.f32.mrf.mxu3 }
0x2991   :  { %v1564_v23 = vadd.f32 %v3674_v9, %v1563_v3 }
0x2993   :  { %v1566_v28 = vsel %vm300_vm15, %v1564_v23, -inf }
0x2994   :  { %1567 = vmax.xlane.f32.xlu2 %v1566_v28 }
0x2a07   :  { %v1568_v42 = vpop.xlane.xlu2 %1567 }
0x2a08   :  { %v3736_v45 = vsub.f32 %v1564_v23, %v1568_v42 }
0x2a0a   :  { %vm1570_vm2 = vcmp.eq.f32.partialorder %v3736_v45, 0.0 }
0x2a0b   :  { %v1571_v7 = vsel %vm1570_vm2, %v3323_v35, 64 }
0x2a0c   :  { %v1572_v47 = vsel %vm300_vm15, %v1571_v7, 2147483647 }
0x2a0d   :  { %v1574_v39 = vshra.s32 %v1572_v47, 16  ;;  %v1573_v6 = vand.u32 65535, %v1572_v47 }
0x2a0f   :  { %v1576_v13 = vcvt.s32.f32 %v1574_v39  ;;  %v1575_v41 = vcvt.s32.f32 %v1573_v6 }
0x2a11   :  { %1577 = vmin.xlane.f32.xlu0 %v1576_v13 }
0x2a19   :  { %1347 = vadd.xlane.f32.xlu0 %v1346_v4 }
0x2a84   :  { %v1578_v48 = vpop.xlane.xlu0 %1577 }
0x2a85   :  { %vm1579_vm3 = vcmp.eq.f32.partialorder %v1576_v13, %v1578_v48  ;;  %v1584_v54 = vcvt.f32.s32 %v1578_v48 }
0x2a86   :  { %v1580_v50 = vsel %vm1579_vm3, %v1575_v41, inf }
0x2a87   :  { %1581 = vmin.xlane.f32.xlu1 %v1580_v50  ;;  %v1585_v19 = vshll.u32 %v1584_v54, 16 }
0x2a8c   :  { %v1348_v51 = vpop.xlane.xlu0 %1347 }
0x2a8d   :  { %2885 = vrcp.f32 %v1348_v51 }
0x2a93   :  { %v2886_v34 = vpop.eup %2885 }
0x2a94   :  { %2767 = vpush %v2886_v34 }
0x2aa0   :  { %1674 = vrot.lane.b32.xlu1 %v1651_v53, %s3029_s25 }
0x2ac5   :  { %s2768_s20 = spop %2767 }
0x2ac6   :  { %1354 = sst [smem:[#allocation5 + $0x4]] %s2768_s20  ;;  %s2634_s20 = sshll.u32 %s4022_s12, 4  ;;  %s2635_s20 = int_to_ptr.hbm [resolvable:$true] %s2634_s20 }
0x2afa   :  { %v1582_v36 = vpop.xlane.xlu1 %1581 }
0x2afb   :  { %v1583_v25 = vcvt.f32.s32 %v1582_v36 }
0x2afd   :  { %v1586_v10 = vadd.s32 %v1585_v19, %v1583_v25 }
0x2aff   :  { %v1587_v32 = vrot.slane %v1586_v10, 4 }
0x2b01   :  { %vm1588_vm4 = vcmp.lt.s32.totalorder %v1586_v10, %v1587_v32 }
0x2b02   :  { %v1589_v63 = vsel %vm1588_vm4, %v1586_v10, %v1587_v32 }
0x2b03   :  { %v1590_v8 = vrot.slane %v1589_v63, 2 }
0x2b05   :  { %vm1591_vm8 = vcmp.lt.s32.totalorder %v1589_v63, %v1590_v8 }
0x2b06   :  { %v1592_v14 = vsel %vm1591_vm8, %v1589_v63, %v1590_v8 }
0x2b07   :  { %v1593_v15 = vrot.slane %v1592_v14, 1 }
0x2b09   :  { %vm1594_vm9 = vcmp.lt.s32.totalorder %v1592_v14, %v1593_v15 }
0x2b0a   :  { %v1595_v16 = vsel %vm1594_vm9, %v1592_v14, %v1593_v15 }
0x2b0b   :  { %2769 = vpush %v1595_v16 }
0x2b12   :  { %v1675_v47 = vpop.permute.xlu1 %1674 }
0x2b3c   :  { %s2770_s21 = spop %2769 }
0x2b3d   :  { %1605 = sst [smem:[#allocation3 + $0x5]] %s2770_s21  ;;  %s1608_s24 = scalar_lea.vmem %s4010_s0, %s2770_s21 }
0x2b3e   :  { %v1609_v24 = vld [vmem:[%s1608_s24] sm:$0x1] }
0x2b3f   :  { %2713 = vmatmul.msk.f32.vlgmr.msra.gmra.mxu2 %vm72_vm0, %v1609_v24 }
0x2b40   :  { %1898 = vmatpush.msra.mxu2 %v3453_v26 }
0x2b42   :  { %1899 = vmatpush.msra.mxu2 %v3459_v27 }
0x2b44   :  { %1900 = vmatpush.msra.mxu2 %v3465_v29 }
0x2b46   :  { %1901 = vmatpush.msra.mxu2 %v3471_v30 }
0x2bc2   :  { %v1630_v37 = vpop.f32.mrf.mxu2 }
0x2bc3   :  { %v1631_v33 = vadd.f32 %v3565_v59, %v1630_v37 }
0x2bc5   :  { %v1653_v40 = vadd.f32 %v1651_v53, %v1631_v33 }
0x2bc7   :  { %v2715_v44 = vmul.f32 -1.442695, %v1653_v40 }
0x2bc9   :  { %2887 = vpow2.f32 %v2715_v44 }
0x2bcf   :  { %v2888_v1 = vpop.eup %2887 }
0x2bd0   :  { %v1657_v3 = vadd.f32 1.0, %v2888_v1 }
0x2bd2   :  { %2889 = vrcp.f32 %v1657_v3  ;;  %v1669_v5 = vand.u32 2147483648, %v1657_v3  ;;  %v1667_v27 = vand.u32 2147483647, %v1657_v3  ;;  %vm1663_vm11 = vweird.f32 %v1657_v3 }
0x2bd4   :  { %v1670_v29 = vor.u32 1.1754944e-38, %v1669_v5  ;;  %vm1668_vm2 = vcmp.eq.f32.partialorder %v1667_v27, 8.507059e+37 }
0x2bd8   :  { %v2890_v23 = vpop.eup %2889 }
0x2bd9   :  { %v1659_v28 = vmul.f32 %v2890_v23, %v1657_v3  ;;  %vm1664_vm10 = vweird.f32 %v2890_v23 }
0x2bda   :  { %vm1665_vm1 = vmor %vm1663_vm11, %vm1664_vm10 }
0x2bdb   :  { %v1660_v42 = vsub.f32 1.0, %v1659_v28 }
0x2bdd   :  { %v1661_v26 = vmul.f32 %v2890_v23, %v1660_v42 }
0x2bdf   :  { %v1662_v7 = vadd.f32 %v2890_v23, %v1661_v26 }
0x2be1   :  { %v1666_v30 = vsel %vm1665_vm1, %v2890_v23, %v1662_v7 }
0x2be2   :  { %v1671_v39 = vsel %vm1668_vm2, %v1670_v29, %v1666_v30 }
0x2be3   :  { %v1677_v13 = vmul.f32 %v1675_v47, %v1671_v39  ;;  %v1684_v48 = vsub.f32 1.0, %v1671_v39  ;;  %v1690_v50 = vmul.f32 %v1671_v39, %v3699_v46  ;;  %v1597_v47 = vmul.f32 1.442695, %v3736_v45 }
0x2be5   :  { %1679 = vrot.lane.b32.xlu2 %v1677_v13, %s3029_s25 }
0x2c3f   :  { %v1680_v0 = vpop.permute.xlu2 %1679 }
0x2c40   :  { %v1682_v4 = vadd.f32 %v1680_v0, %v1631_v33 }
0x2c42   :  { %2891 = vtanh.f32 %v1682_v4 }
0x2c48   :  { %v2892_v6 = vpop.eup %2891 }
0x2c49   :  { %1686 = vrot.lane.b32.xlu0 %v2892_v6, %s3030_s28 }
0x2cbb   :  { %v1687_v41 = vpop.permute.xlu0 %1686 }
0x2cbc   :  { %v1689_v51 = vmul.f32 %v1687_v41, %v1684_v48 }
0x2cbe   :  { %v3757_v34 = vadd.f32 %v1690_v50, %v1689_v51 }
0x2cc0   :  { %1693 = vrot.lane.b32.xlu1 %v3757_v34, %s3030_s28 }
0x2d32   :  { %v1694_v52 = vpop.permute.xlu1 %1693 }
0x2d33   :  { %1765 = vst.msk [vmem:[#allocation2] sm:$0x1] %vm243_vm5, %v1694_v52  ;;  %2717 = vmatmul.msk.f32.vlgmr.msrb.gmra.mxu3 %vm72_vm0, %v1694_v52 }
0x2d34   :  { %2727 = vmatpush.msk.msrb.mxu3 %vm219_vm7, %v3508_v11 }
0x2db6   :  { %v1714_v53 = vpop.f32.mrf.mxu3 }
0x2db7   :  { %v1717_v54 = vsel %vm190_vm6, %v1714_v53, -inf }
0x2db8   :  { %1718 = vmax.xlane.f32.xlu0 %v1717_v54 }
0x2e2b   :  { %v1719_v36 = vpop.xlane.xlu0 %1718 }
0x2e2c   :  { %v1720_v46 = vsub.f32 %v1714_v53, %v1719_v36 }
0x2e2e   :  { %v1721_v19 = vmul.f32 1.442695, %v1720_v46 }
0x2e30   :  { %2893 = vpow2.f32 %v1721_v19 }
0x2e36   :  { %v2894_v25 = vpop.eup %2893 }
0x2e37   :  { %v1723_v10 = vsel %vm190_vm6, %v2894_v25, 0.0 }
0x2e38   :  { %1724 = vadd.xlane.f32.xlu2 %v1723_v10 }
0x2eab   :  { %v1725_v32 = vpop.xlane.xlu2 %1724 }
0x2eac   :  { %2895 = vrcp.f32 %v1725_v32  ;;  %v1737_v15 = vand.u32 2147483648, %v1725_v32  ;;  %v1735_v24 = vand.u32 2147483647, %v1725_v32  ;;  %vm1731_vm4 = vweird.f32 %v1725_v32 }
0x2eae   :  { %v1738_v33 = vor.u32 1.1754944e-38, %v1737_v15  ;;  %vm1736_vm9 = vcmp.eq.f32.partialorder %v1735_v24, 8.507059e+37  ;;  %v3816_v15 = vld [vmem:[%s4012_s2 + $0x10] sm:$0xff]  ;;  %v3828_v24 = vld [vmem:[%s4012_s2] sm:$0xff] }
0x2eb2   :  { %v2896_v63 = vpop.eup %2895 }
0x2eb3   :  { %v1727_v8 = vmul.f32 %v2896_v63, %v1725_v32  ;;  %vm1732_vm3 = vweird.f32 %v2896_v63 }
0x2eb4   :  { %vm1733_vm8 = vmor %vm1731_vm4, %vm1732_vm3 }
0x2eb5   :  { %v1728_v14 = vsub.f32 1.0, %v1727_v8 }
0x2eb7   :  { %v1729_v16 = vmul.f32 %v2896_v63, %v1728_v14  ;;  %v3810_v14 = vld [vmem:[%s4012_s2 + $0x18] sm:$0xff] }
0x2eb9   :  { %v1730_v37 = vadd.f32 %v2896_v63, %v1729_v16  ;;  %v3822_v16 = vld [vmem:[%s4012_s2 + $0x8] sm:$0xff] }
0x2ebb   :  { %v1734_v40 = vsel %vm1733_vm8, %v2896_v63, %v1730_v37 }
0x2ebc   :  { %v1739_v44 = vsel %vm1736_vm9, %v1738_v33, %v1734_v40 }
0x2ebd   :  { %v1740_v1 = vmul.f32 %v2894_v25, %v1739_v44 }
0x2ebf   :  { %2719 = vmatmul.msk.f32.vlgmr.msrb.gmra.mxu2 %vm215_vm12, %v1740_v1 }
0x2ec0   :  { %2036 = vmatpush.msrb.mxu2 %v3585_v43 }
0x2ec2   :  { %2037 = vmatpush.msrb.mxu2 %v3591_v55 }
0x2ec4   :  { %2038 = vmatpush.msrb.mxu2 %v3597_v56 }
0x2ec6   :  { %2039 = vmatpush.msrb.mxu2 %v3603_v38 }
0x2ec7   :  { %2723 = vmatmul.msk.f32.vlgmr.msra.gmra.mxu2 %vm72_vm0, %v1694_v52 }
0x2ec8   :  { %2040 = vmatpush.msrb.mxu2 %v3610_v57 }
0x2eca   :  { %2041 = vmatpush.msrb.mxu2 %v3616_v58 }
0x2ecc   :  { %2042 = vmatpush.msrb.mxu2 %v3622_v49 }
0x2ece   :  { %2043 = vmatpush.msrb.mxu2 %v3628_v60 }
0x2ed0   :  { %2317 = vmatpush.msra.mxu2 %v3634_v61 }
0x2ed2   :  { %2318 = vmatpush.msra.mxu2 %v3640_v62 }
0x2ed4   :  { %2319 = vmatpush.msra.mxu2 %v3646_v12 }
0x2ed6   :  { %2320 = vmatpush.msra.mxu2 %v3652_v18 }
0x2f42   :  { %v1761_v3 = vpop.f32.mrf.mxu2 }
0x2f43   :  { %1767 = vrot.lane.b32.xlu1 %v1761_v3, %s3031_s13 }
0x2f4a   :  { %v1903_v50 = vpop.f32.mrf.mxu2 }
0x2f4b   :  { %v1904_v51 = vadd.f32 %v3550_v2, %v1903_v50 }
0x2fb5   :  { %v1768_v23 = vpop.permute.xlu1 %1767 }
0x2fb6   :  { %1770 = vst.msk [vmem:[#allocation2] sm:$0x1] %vm249_vm13, %v1768_v23 }
0x2fbd   :  { %v1771_v28 = vld [vmem:[#allocation2] sm:$0x1] }
0x2fbe   :  { %2720 = vmatmul.msk.f32.vlgmr.msra.gmra.mxu0 %vm252_vm14, %v1771_v28 }
0x2fbf   :  { %2734 = vmatpush.xpose.msk.msra.mxu0 %vm72_vm0, %v3508_v11 }
0x303b   :  { %v1792_v42 = vpop.f32.mrf.mxu0 }
0x303c   :  { %v1793_v5 = vadd.f32 %v3663_v31, %v1792_v42 }
0x303e   :  { %2897 = vtanh.f32 %v1793_v5 }
0x303f   :  { %2899 = vpow2.f32 %v1597_v47 }
0x3044   :  { %v2898_v26 = vpop.eup %2897 }
0x3045   :  { %2721 = vmatmul.msk.f32.vlgmr.msra.gmra.mxu1 %vm72_vm0, %v2898_v26  ;;  %v2900_v39 = vpop.eup %2899 }
0x3046   :  { %2131 = vmatpush.msra.mxu1 %v3517_v17  ;;  %v1599_v13 = vsel %vm300_vm15, %v2900_v39, 0.0 }
0x3048   :  { %2132 = vmatpush.msra.mxu1 %v3523_v20 }
0x304a   :  { %2133 = vmatpush.msra.mxu1 %v3529_v21 }
0x304c   :  { %2134 = vmatpush.msra.mxu1 %v3535_v22 }
0x30c2   :  { %v1816_v27 = vpop.f32.mrf.mxu1 }
0x30c3   :  { %v1817_v7 = vadd.f32 %v3674_v9, %v1816_v27 }
0x30c5   :  { %v1819_v11 = vsel %vm300_vm15, %v1817_v7, -inf }
0x30c6   :  { %1820 = vmax.xlane.f32.xlu1 %v1819_v11 }
0x3139   :  { %v1821_v29 = vpop.xlane.xlu1 %1820 }
0x313a   :  { %v3794_v30 = vsub.f32 %v1817_v7, %v1821_v29 }
0x313c   :  { %vm1823_vm10 = vcmp.eq.f32.partialorder %v3794_v30, 0.0 }
0x313d   :  { %v1824_v17 = vsel %vm1823_vm10, %v3323_v35, 64 }
0x313e   :  { %v1825_v20 = vsel %vm300_vm15, %v1824_v17, 2147483647 }
0x313f   :  { %v1827_v21 = vshra.s32 %v1825_v20, 16  ;;  %v1826_v0 = vand.u32 65535, %v1825_v20 }
0x3141   :  { %v1829_v22 = vcvt.s32.f32 %v1827_v21  ;;  %v1828_v6 = vcvt.s32.f32 %v1826_v0 }
0x3143   :  { %1830 = vmin.xlane.f32.xlu0 %v1829_v22 }
0x314b   :  { %1600 = vadd.xlane.f32.xlu0 %v1599_v13 }
0x31b6   :  { %v1831_v4 = vpop.xlane.xlu0 %1830 }
0x31b7   :  { %vm1832_vm11 = vcmp.eq.f32.partialorder %v1829_v22, %v1831_v4  ;;  %v1837_v52 = vcvt.f32.s32 %v1831_v4 }
0x31b8   :  { %v1833_v48 = vsel %vm1832_vm11, %v1828_v6, inf }
0x31b9   :  { %1834 = vmin.xlane.f32.xlu2 %v1833_v48  ;;  %v1838_v54 = vshll.u32 %v1837_v52, 16 }
0x31be   :  { %v1601_v41 = vpop.xlane.xlu0 %1600 }
0x31bf   :  { %2901 = vrcp.f32 %v1601_v41  ;;  %v3844_v41 = vld [vmem:[%s4015_s5] sm:$0x3]  ;;  %s3032_s5 = smov [#allocation3]  }
0x31c5   :  { %v2902_v45 = vpop.eup %2901 }
0x31c6   :  { %2771 = vpush %v2902_v45 }
0x31d1   :  { %1927 = vrot.lane.b32.xlu2 %v1904_v51, %s3029_s25 }
0x31f7   :  { %s2772_s26 = spop %2771 }
0x31f8   :  { %1607 = sst [smem:[#allocation5 + $0x5]] %s2772_s26 }
0x322c   :  { %v1835_v53 = vpop.xlane.xlu2 %1834 }
0x322d   :  { %v1836_v36 = vcvt.f32.s32 %v1835_v53 }
0x322f   :  { %v1839_v46 = vadd.s32 %v1838_v54, %v1836_v36 }
0x3231   :  { %v1840_v19 = vrot.slane %v1839_v46, 4 }
0x3233   :  { %vm1841_vm1 = vcmp.lt.s32.totalorder %v1839_v46, %v1840_v19 }
0x3234   :  { %v1842_v25 = vsel %vm1841_vm1, %v1839_v46, %v1840_v19 }
0x3235   :  { %v1843_v10 = vrot.slane %v1842_v25, 2 }
0x3237   :  { %vm1844_vm2 = vcmp.lt.s32.totalorder %v1842_v25, %v1843_v10 }
0x3238   :  { %v1845_v32 = vsel %vm1844_vm2, %v1842_v25, %v1843_v10 }
0x3239   :  { %v1846_v63 = vrot.slane %v1845_v32, 1 }
0x323b   :  { %vm1847_vm3 = vcmp.lt.s32.totalorder %v1845_v32, %v1846_v63 }
0x323c   :  { %v1848_v8 = vsel %vm1847_vm3, %v1845_v32, %v1846_v63 }
0x323d   :  { %2773 = vpush %v1848_v8 }
0x326e   :  { %s2774_s27 = spop %2773 }
0x326f   :  { %1858 = sst [smem:[#allocation3 + $0x6]] %s2774_s27  ;;  %s1861_s14 = scalar_lea.vmem %s4010_s0, %s2774_s27 }
0x3270   :  { %v1862_v2 = vld [vmem:[%s1861_s14] sm:$0x1] }
0x3271   :  { %2722 = vmatmul.msk.f32.vlgmr.msra.gmra.mxu3 %vm72_vm0, %v1862_v2 }
0x3272   :  { %2151 = vmatpush.msra.mxu3 %v3810_v14 }
0x3274   :  { %2152 = vmatpush.msra.mxu3 %v3816_v15 }
0x3276   :  { %2153 = vmatpush.msra.mxu3 %v3822_v16 }
0x3278   :  { %2154 = vmatpush.msra.mxu3 %v3828_v24 }
0x32f4   :  { %v1883_v37 = vpop.f32.mrf.mxu3 }
0x32f5   :  { %v1884_v33 = vadd.f32 %v3565_v59, %v1883_v37  ;;  %v1928_v59 = vpop.permute.xlu2 %1927 }
0x32f7   :  { %v1906_v40 = vadd.f32 %v1904_v51, %v1884_v33 }
0x32f9   :  { %v2724_v44 = vmul.f32 -1.442695, %v1906_v40 }
0x32fb   :  { %2903 = vpow2.f32 %v2724_v44 }
0x3301   :  { %v2904_v1 = vpop.eup %2903 }
0x3302   :  { %v1910_v3 = vadd.f32 1.0, %v2904_v1 }
0x3304   :  { %2905 = vrcp.f32 %v1910_v3  ;;  %v1922_v5 = vand.u32 2147483648, %v1910_v3  ;;  %v1920_v27 = vand.u32 2147483647, %v1910_v3  ;;  %vm1916_vm8 = vweird.f32 %v1910_v3 }
0x3306   :  { %v1923_v11 = vor.u32 1.1754944e-38, %v1922_v5  ;;  %vm1921_vm10 = vcmp.eq.f32.partialorder %v1920_v27, 8.507059e+37 }
0x330a   :  { %v2906_v23 = vpop.eup %2905 }
0x330b   :  { %v1912_v28 = vmul.f32 %v2906_v23, %v1910_v3  ;;  %vm1917_vm4 = vweird.f32 %v2906_v23  ;;  %v1850_v3 = vmul.f32 1.442695, %v3794_v30 }
0x330c   :  { %vm1918_vm9 = vmor %vm1916_vm8, %vm1917_vm4 }
0x330d   :  { %v1913_v42 = vsub.f32 1.0, %v1912_v28 }
0x330f   :  { %v1914_v26 = vmul.f32 %v2906_v23, %v1913_v42 }
0x3311   :  { %v1915_v7 = vadd.f32 %v2906_v23, %v1914_v26 }
0x3313   :  { %v1919_v29 = vsel %vm1918_vm9, %v2906_v23, %v1915_v7 }
0x3314   :  { %v1924_v47 = vsel %vm1921_vm10, %v1923_v11, %v1919_v29 }
0x3315   :  { %v1930_v17 = vmul.f32 %v1928_v59, %v1924_v47  ;;  %v1937_v39 = vsub.f32 1.0, %v1924_v47  ;;  %v1943_v0 = vmul.f32 %v1924_v47, %v3757_v34 }
0x3317   :  { %1932 = vrot.lane.b32.xlu1 %v1930_v17, %s3029_s25  ;;  %v3895_v17 = vld [vmem:[%s4014_s4] sm:$0x1] }
0x3389   :  { %v1933_v20 = vpop.permute.xlu1 %1932 }
0x338a   :  { %v1935_v21 = vadd.f32 %v1933_v20, %v1884_v33 }
0x338c   :  { %2907 = vtanh.f32 %v1935_v21 }
0x3392   :  { %v2908_v22 = vpop.eup %2907 }
0x3393   :  { %1939 = vrot.lane.b32.xlu0 %v2908_v22, %s3030_s28 }
0x3405   :  { %v1940_v13 = vpop.permute.xlu0 %1939 }
0x3406   :  { %v1942_v4 = vmul.f32 %v1940_v13, %v1937_v39 }
0x3408   :  { %v3835_v6 = vadd.f32 %v1943_v0, %v1942_v4 }
0x340a   :  { %1946 = vrot.lane.b32.xlu2 %v3835_v6, %s3030_s28 }
0x3464   :  { %v1947_v48 = vpop.permute.xlu2 %1946 }
0x3465   :  { %2018 = vst.msk [vmem:[#allocation2] sm:$0x1] %vm243_vm5, %v1947_v48  ;;  %2726 = vmatmul.msk.f32.vlgmr.msrb.gmra.mxu1 %vm72_vm0, %v1947_v48 }
0x3466   :  { %2736 = vmatpush.msk.msrb.mxu1 %vm219_vm7, %v3844_v41 }
0x34e2   :  { %v1967_v34 = vpop.f32.mrf.mxu1 }
0x34e3   :  { %v1970_v45 = vsel %vm190_vm6, %v1967_v34, -inf }
0x34e4   :  { %1971 = vmax.xlane.f32.xlu0 %v1970_v45 }
0x3557   :  { %v1972_v50 = vpop.xlane.xlu0 %1971 }
0x3558   :  { %v1973_v51 = vsub.f32 %v1967_v34, %v1972_v50 }
0x355a   :  { %v1974_v52 = vmul.f32 1.442695, %v1973_v51 }
0x355c   :  { %2909 = vpow2.f32 %v1974_v52 }
0x3562   :  { %v2910_v53 = vpop.eup %2909 }
0x3563   :  { %v1976_v54 = vsel %vm190_vm6, %v2910_v53, 0.0 }
0x3564   :  { %1977 = vadd.xlane.f32.xlu1 %v1976_v54  ;;  %v3910_v54 = vld [vmem:[%s4013_s3] sm:$0x1] }
0x35d7   :  { %v1978_v36 = vpop.xlane.xlu1 %1977 }
0x35d8   :  { %2911 = vrcp.f32 %v1978_v36  ;;  %v1990_v10 = vand.u32 2147483648, %v1978_v36  ;;  %v1988_v63 = vand.u32 2147483647, %v1978_v36  ;;  %vm1984_vm1 = vweird.f32 %v1978_v36 }
0x35da   :  { %v1991_v2 = vor.u32 1.1754944e-38, %v1990_v10  ;;  %vm1989_vm3 = vcmp.eq.f32.partialorder %v1988_v63, 8.507059e+37 }
0x35de   :  { %v2912_v46 = vpop.eup %2911 }
0x35df   :  { %v1980_v19 = vmul.f32 %v2912_v46, %v1978_v36  ;;  %vm1985_vm11 = vweird.f32 %v2912_v46 }
0x35e0   :  { %vm1986_vm2 = vmor %vm1984_vm1, %vm1985_vm11 }
0x35e1   :  { %v1981_v25 = vsub.f32 1.0, %v1980_v19 }
0x35e3   :  { %v1982_v32 = vmul.f32 %v2912_v46, %v1981_v25 }
0x35e5   :  { %v1983_v8 = vadd.f32 %v2912_v46, %v1982_v32 }
0x35e7   :  { %v1987_v37 = vsel %vm1986_vm2, %v2912_v46, %v1983_v8 }
0x35e8   :  { %v1992_v33 = vsel %vm1989_vm3, %v1991_v2, %v1987_v37 }
0x35e9   :  { %v1993_v40 = vmul.f32 %v2910_v53, %v1992_v33 }
0x35eb   :  { %2728 = vmatmul.msk.f32.vlgmr.msrb.gmra.mxu3 %vm215_vm12, %v1993_v40 }
0x35ec   :  { %2289 = vmatpush.msrb.mxu3 %v3585_v43 }
0x35ee   :  { %2290 = vmatpush.msrb.mxu3 %v3591_v55 }
0x35f0   :  { %2291 = vmatpush.msrb.mxu3 %v3597_v56 }
0x35f2   :  { %2292 = vmatpush.msrb.mxu3 %v3603_v38 }
0x35f3   :  { %2732 = vmatmul.msk.f32.vlgmr.msra.gmra.mxu3 %vm72_vm0, %v1947_v48 }
0x35f4   :  { %2293 = vmatpush.msrb.mxu3 %v3610_v57 }
0x35f6   :  { %2294 = vmatpush.msrb.mxu3 %v3616_v58 }
0x35f8   :  { %2295 = vmatpush.msrb.mxu3 %v3622_v49  ;;  %v2985_v49 = vld [vmem:[%s4011_s1 + $0x18] sm:$0xff] }
0x35fa   :  { %2296 = vmatpush.msrb.mxu3 %v3628_v60  ;;  %v2986_v60 = vld [vmem:[%s4011_s1 + $0x10] sm:$0xff] }
0x35fc   :  { %2570 = vmatpush.msra.mxu3 %v3634_v61  ;;  %v2987_v61 = vld [vmem:[%s4011_s1 + $0x8] sm:$0xff] }
0x35fe   :  { %2571 = vmatpush.msra.mxu3 %v3640_v62  ;;  %v2988_v62 = vld [vmem:[%s4011_s1] sm:$0xff] }
0x3600   :  { %2572 = vmatpush.msra.mxu3 %v3646_v12 }
0x3602   :  { %2573 = vmatpush.msra.mxu3 %v3652_v18 }
0x366e   :  { %v2014_v43 = vpop.f32.mrf.mxu3 }
0x366f   :  { %2020 = vrot.lane.b32.xlu2 %v2014_v43, %s3031_s13 }
0x3676   :  { %v2156_v47 = vpop.f32.mrf.mxu3 }
0x3677   :  { %v2157_v20 = vadd.f32 %v3895_v17, %v2156_v47  ;;  %v2991_v47 = vld [vmem:[%s4016_s6 + $0x38] sm:$0xff] }
0x36c9   :  { %v2021_v55 = vpop.permute.xlu2 %2020 }
0x36ca   :  { %2023 = vst.msk [vmem:[#allocation2] sm:$0x1] %vm249_vm13, %v2021_v55 }
0x36d1   :  { %v2024_v56 = vld [vmem:[#allocation2] sm:$0x1] }
0x36d2   :  { %2729 = vmatmul.msk.f32.vlgmr.msrb.gmra.mxu2 %vm252_vm14, %v2024_v56 }
0x36d3   :  { %2743 = vmatpush.xpose.msk.msrb.mxu2 %vm72_vm0, %v3844_v41 }
0x3755   :  { %v2045_v38 = vpop.f32.mrf.mxu2 }
0x3756   :  { %v2046_v57 = vadd.f32 %v3663_v31, %v2045_v38 }
0x3758   :  { %2913 = vtanh.f32 %v2046_v57 }
0x3759   :  { %2915 = vpow2.f32 %v1850_v3 }
0x375e   :  { %v2914_v58 = vpop.eup %2913 }
0x375f   :  { %2730 = vmatmul.msk.f32.vlgmr.msrb.gmra.mxu0 %vm72_vm0, %v2914_v58  ;;  %v2916_v26 = vpop.eup %2915 }
0x3760   :  { %2384 = vmatpush.msrb.mxu0 %v2985_v49 }
0x3762   :  { %2385 = vmatpush.msrb.mxu0 %v2986_v60 }
0x3764   :  { %2386 = vmatpush.msrb.mxu0 %v2987_v61 }
0x3766   :  { %2387 = vmatpush.msrb.mxu0 %v2988_v62 }
0x37dc   :  { %v2069_v12 = vpop.f32.mrf.mxu0 }
0x37dd   :  { %v2070_v18 = vadd.f32 %v3674_v9, %v2069_v12  ;;  %v1852_v9 = vsel %vm300_vm15, %v2916_v26, 0.0 }
0x37df   :  { %v2072_v31 = vsel %vm300_vm15, %v2070_v18, -inf }
0x37e0   :  { %2073 = vmax.xlane.f32.xlu2 %v2072_v31 }
0x3853   :  { %v2074_v44 = vpop.xlane.xlu2 %2073 }
0x3854   :  { %v3885_v1 = vsub.f32 %v2070_v18, %v2074_v44 }
0x3856   :  { %vm2076_vm4 = vcmp.eq.f32.partialorder %v3885_v1, 0.0 }
0x3857   :  { %v2077_v23 = vsel %vm2076_vm4, %v3323_v35, 64 }
0x3858   :  { %v2078_v28 = vsel %vm300_vm15, %v2077_v23, 2147483647 }
0x3859   :  { %v2080_v42 = vshra.s32 %v2078_v28, 16  ;;  %v2079_v27 = vand.u32 65535, %v2078_v28 }
0x385b   :  { %v2082_v5 = vcvt.s32.f32 %v2080_v42  ;;  %v2081_v11 = vcvt.s32.f32 %v2079_v27 }
0x385d   :  { %2083 = vmin.xlane.f32.xlu0 %v2082_v5 }
0x3865   :  { %1853 = vadd.xlane.f32.xlu0 %v1852_v9 }
0x38d0   :  { %v2084_v7 = vpop.xlane.xlu0 %2083 }
0x38d1   :  { %vm2085_vm8 = vcmp.eq.f32.partialorder %v2082_v5, %v2084_v7  ;;  %v2090_v21 = vcvt.f32.s32 %v2084_v7 }
0x38d2   :  { %v2086_v29 = vsel %vm2085_vm8, %v2081_v11, inf }
0x38d3   :  { %2087 = vmin.xlane.f32.xlu1 %v2086_v29  ;;  %v2091_v39 = vshll.u32 %v2090_v21, 16  ;;  %v2993_v21 = vld [vmem:[%s4016_s6 + $0x28] sm:$0xff] }
0x38d8   :  { %v1854_v59 = vpop.xlane.xlu0 %1853 }
0x38d9   :  { %2917 = vrcp.f32 %v1854_v59 }
0x38df   :  { %v2918_v30 = vpop.eup %2917 }
0x38e0   :  { %2775 = vpush %v2918_v30 }
0x38ec   :  { %2180 = vrot.lane.b32.xlu1 %v2157_v20, %s3029_s25 }
0x3911   :  { %s2776_s8 = spop %2775 }
0x3912   :  { %1860 = sst [smem:[#allocation5 + $0x6]] %s2776_s8 }
0x3946   :  { %v2088_v22 = vpop.xlane.xlu1 %2087 }
0x3947   :  { %v2089_v13 = vcvt.f32.s32 %v2088_v22  ;;  %v2994_v22 = vld [vmem:[%s4016_s6 + $0x20] sm:$0xff] }
0x3949   :  { %v2092_v0 = vadd.s32 %v2091_v39, %v2089_v13  ;;  %v2995_v39 = vld [vmem:[%s4016_s6 + $0x18] sm:$0xff]  ;;  %v2996_v13 = vld [vmem:[%s4016_s6 + $0x10] sm:$0xff] }
0x394b   :  { %v2093_v4 = vrot.slane %v2092_v0, 4 }
0x394d   :  { %vm2094_vm9 = vcmp.lt.s32.totalorder %v2092_v0, %v2093_v4 }
0x394e   :  { %v2095_v48 = vsel %vm2094_vm9, %v2092_v0, %v2093_v4  ;;  %v2997_v0 = vld [vmem:[%s4016_s6 + $0x8] sm:$0xff]  ;;  %v2998_v4 = vld [vmem:[%s4016_s6] sm:$0xff] }
0x394f   :  { %v2096_v34 = vrot.slane %v2095_v48, 2 }
0x3951   :  { %vm2097_vm10 = vcmp.lt.s32.totalorder %v2095_v48, %v2096_v34 }
0x3952   :  { %v2098_v45 = vsel %vm2097_vm10, %v2095_v48, %v2096_v34 }
0x3953   :  { %v2099_v50 = vrot.slane %v2098_v45, 1 }
0x3955   :  { %vm2100_vm11 = vcmp.lt.s32.totalorder %v2098_v45, %v2099_v50 }
0x3956   :  { %v2101_v51 = vsel %vm2100_vm11, %v2098_v45, %v2099_v50 }
0x3957   :  { %2777 = vpush %v2101_v51  ;;  %v3958_v51 = vld [vmem:[%s4017_s7] sm:$0x1] }
0x395e   :  { %v2181_v33 = vpop.permute.xlu1 %2180 }
0x3988   :  { %s2778_s4 = spop %2777 }
0x3989   :  { %2111 = sst [smem:[#allocation3 + $0x7]] %s2778_s4  ;;  %s2114_s16 = scalar_lea.vmem %s4010_s0, %s2778_s4 }
0x398a   :  { %v2115_v52 = vld [vmem:[%s2114_s16] sm:$0x1] }
0x398b   :  { %2731 = vmatmul.msk.f32.vlgmr.msra.gmra.mxu1 %vm72_vm0, %v2115_v52 }
0x398c   :  { %2404 = vmatpush.msra.mxu1 %v3810_v14 }
0x398e   :  { %2405 = vmatpush.msra.mxu1 %v3816_v15 }
0x3990   :  { %2406 = vmatpush.msra.mxu1 %v3822_v16 }
0x3992   :  { %2407 = vmatpush.msra.mxu1 %v3828_v24 }
0x3a08   :  { %v2136_v53 = vpop.f32.mrf.mxu1 }
0x3a09   :  { %v2137_v36 = vadd.f32 %v3910_v54, %v2136_v53 }
0x3a0b   :  { %v2159_v46 = vadd.f32 %v2157_v20, %v2137_v36  ;;  %v2992_v20 = vld [vmem:[%s4016_s6 + $0x30] sm:$0xff] }
0x3a0d   :  { %v2733_v19 = vmul.f32 -1.442695, %v2159_v46  ;;  %v3965_v46 = vld [vmem:[%s4019_s9] sm:$0x1] }
0x3a0f   :  { %2919 = vpow2.f32 %v2733_v19 }
0x3a15   :  { %v2920_v25 = vpop.eup %2919 }
0x3a16   :  { %v2163_v10 = vadd.f32 1.0, %v2920_v25 }
0x3a18   :  { %2921 = vrcp.f32 %v2163_v10  ;;  %v2175_v16 = vand.u32 2147483648, %v2163_v10  ;;  %v2173_v24 = vand.u32 2147483647, %v2163_v10  ;;  %vm2169_vm2 = vweird.f32 %v2163_v10 }
0x3a1a   :  { %v2176_v2 = vor.u32 1.1754944e-38, %v2175_v16  ;;  %vm2174_vm4 = vcmp.eq.f32.partialorder %v2173_v24, 8.507059e+37 }
0x3a1e   :  { %v2922_v14 = vpop.eup %2921 }
0x3a1f   :  { %v2165_v15 = vmul.f32 %v2922_v14, %v2163_v10  ;;  %vm2170_vm1 = vweird.f32 %v2922_v14 }
0x3a20   :  { %vm2171_vm3 = vmor %vm2169_vm2, %vm2170_vm1 }
0x3a21   :  { %v2166_v32 = vsub.f32 1.0, %v2165_v15  ;;  %v2103_v15 = vmul.f32 1.442695, %v3885_v1 }
0x3a23   :  { %v2167_v63 = vmul.f32 %v2922_v14, %v2166_v32 }
0x3a25   :  { %v2168_v8 = vadd.f32 %v2922_v14, %v2167_v63 }
0x3a27   :  { %v2172_v37 = vsel %vm2171_vm3, %v2922_v14, %v2168_v8 }
0x3a28   :  { %v2177_v40 = vsel %vm2174_vm4, %v2176_v2, %v2172_v37 }
0x3a29   :  { %v2183_v43 = vmul.f32 %v2181_v33, %v2177_v40  ;;  %v2190_v57 = vsub.f32 1.0, %v2177_v40  ;;  %v2196_v49 = vmul.f32 %v2177_v40, %v3835_v6 }
0x3a2b   :  { %2185 = vrot.lane.b32.xlu2 %v2183_v43, %s3029_s25 }
0x3a85   :  { %v2186_v55 = vpop.permute.xlu2 %2185 }
0x3a86   :  { %v2188_v56 = vadd.f32 %v2186_v55, %v2137_v36 }
0x3a88   :  { %2923 = vtanh.f32 %v2188_v56 }
0x3a8e   :  { %v2924_v38 = vpop.eup %2923 }
0x3a8f   :  { %2192 = vrot.lane.b32.xlu0 %v2924_v38, %s3030_s28 }
0x3b01   :  { %v2193_v58 = vpop.permute.xlu0 %2192 }
0x3b02   :  { %v2195_v60 = vmul.f32 %v2193_v58, %v2190_v57 }
0x3b04   :  { %v3916_v61 = vadd.f32 %v2196_v49, %v2195_v60 }
0x3b06   :  { %2199 = vrot.lane.b32.xlu0 %v3916_v61, %s3030_s28 }
0x3b78   :  { %v2200_v62 = vpop.permute.xlu0 %2199 }
0x3b79   :  { %2271 = vst.msk [vmem:[#allocation2] sm:$0x1] %vm243_vm5, %v2200_v62  ;;  %2735 = vmatmul.msk.f32.vlgmr.msra.gmra.mxu0 %vm72_vm0, %v2200_v62 }
0x3b7a   :  { %2745 = vmatpush.msk.msra.mxu0 %vm219_vm7, %v3844_v41 }
0x3bf6   :  { %v2220_v12 = vpop.f32.mrf.mxu0 }
0x3bf7   :  { %v2223_v18 = vsel %vm190_vm6, %v2220_v12, -inf }
0x3bf8   :  { %2224 = vmax.xlane.f32.xlu1 %v2223_v18 }
0x3c6b   :  { %v2225_v31 = vpop.xlane.xlu1 %2224 }
0x3c6c   :  { %v2226_v6 = vsub.f32 %v2220_v12, %v2225_v31 }
0x3c6e   :  { %v2227_v44 = vmul.f32 1.442695, %v2226_v6 }
0x3c70   :  { %2925 = vpow2.f32 %v2227_v44 }
0x3c76   :  { %v2926_v3 = vpop.eup %2925 }
0x3c77   :  { %v2229_v23 = vsel %vm190_vm6, %v2926_v3, 0.0 }
0x3c78   :  { %2230 = vadd.xlane.f32.xlu2 %v2229_v23 }
0x3ceb   :  { %v2231_v28 = vpop.xlane.xlu2 %2230 }
0x3cec   :  { %2927 = vrcp.f32 %v2231_v28  ;;  %v2243_v9 = vand.u32 2147483648, %v2231_v28  ;;  %v2241_v41 = vand.u32 2147483647, %v2231_v28  ;;  %vm2237_vm8 = vweird.f32 %v2231_v28 }
0x3cee   :  { %v2244_v11 = vor.u32 1.1754944e-38, %v2243_v9  ;;  %vm2242_vm10 = vcmp.eq.f32.partialorder %v2241_v41, 8.507059e+37 }
0x3cf2   :  { %v2928_v42 = vpop.eup %2927 }
0x3cf3   :  { %v2233_v5 = vmul.f32 %v2928_v42, %v2231_v28  ;;  %vm2238_vm7 = vweird.f32 %v2928_v42 }
0x3cf4   :  { %vm2239_vm9 = vmor %vm2237_vm8, %vm2238_vm7 }
0x3cf5   :  { %v2234_v26 = vsub.f32 1.0, %v2233_v5 }
0x3cf7   :  { %v2235_v27 = vmul.f32 %v2928_v42, %v2234_v26 }
0x3cf9   :  { %v2236_v7 = vadd.f32 %v2928_v42, %v2235_v27 }
0x3cfb   :  { %v2240_v29 = vsel %vm2239_vm9, %v2928_v42, %v2236_v7 }
0x3cfc   :  { %v2245_v59 = vsel %vm2242_vm10, %v2244_v11, %v2240_v29 }
0x3cfd   :  { %v2246_v30 = vmul.f32 %v2926_v3, %v2245_v59 }
0x3cff   :  { %2737 = vmatmul.msk.f32.vlgmr.msrb.gmra.mxu1 %vm215_vm12, %v2246_v30 }
0x3d00   :  { %2542 = vmatpush.msrb.mxu1 %v2991_v47 }
0x3d02   :  { %2543 = vmatpush.msrb.mxu1 %v2992_v20 }
0x3d04   :  { %2544 = vmatpush.msrb.mxu1 %v2993_v21 }
0x3d06   :  { %2545 = vmatpush.msrb.mxu1 %v2994_v22 }
0x3d07   :  { %2741 = vmatmul.msk.f32.vlgmr.msra.gmra.mxu1 %vm72_vm0, %v2200_v62 }
0x3d08   :  { %2546 = vmatpush.msrb.mxu1 %v2995_v39 }
0x3d0a   :  { %2547 = vmatpush.msrb.mxu1 %v2996_v13 }
0x3d0c   :  { %2548 = vmatpush.msrb.mxu1 %v2997_v0 }
0x3d0e   :  { %2549 = vmatpush.msrb.mxu1 %v2998_v4 }
0x3d7c   :  { %v2267_v48 = vpop.f32.mrf.mxu1 }
0x3d7d   :  { %2273 = vrot.lane.b32.xlu0 %v2267_v48, %s3031_s13 }
0x3d84   :  { %v2409_v56 = vpop.f32.mrf.mxu1 }
0x3d85   :  { %v2410_v38 = vadd.f32 %v3895_v17, %v2409_v56 }
0x3def   :  { %v2274_v34 = vpop.permute.xlu0 %2273 }
0x3df0   :  { %2276 = vst.msk [vmem:[#allocation2] sm:$0x1] %vm249_vm13, %v2274_v34 }
0x3df7   :  { %v2277_v45 = vld [vmem:[#allocation2] sm:$0x1] }
0x3df8   :  { %2738 = vmatmul.msk.f32.vlgmr.msrb.gmra.mxu3 %vm252_vm14, %v2277_v45 }
0x3e7b   :  { %v2298_v50 = vpop.f32.mrf.mxu3 }
0x3e7c   :  { %v2299_v52 = vadd.f32 %v3958_v51, %v2298_v50 }
0x3e7e   :  { %2929 = vtanh.f32 %v2299_v52 }
0x3e7f   :  { %2931 = vpow2.f32 %v2103_v15 }
0x3e84   :  { %v2930_v53 = vpop.eup %2929 }
0x3e85   :  { %2739 = vmatmul.msk.f32.vlgmr.msra.gmra.mxu2 %vm72_vm0, %v2930_v53  ;;  %v2932_v8 = vpop.eup %2931 }
0x3e86   :  { %v2105_v2 = vsel %vm300_vm15, %v2932_v8, 0.0 }
0x3f08   :  { %v2322_v36 = vpop.f32.mrf.mxu2 }
0x3f09   :  { %v2323_v19 = vadd.f32 %v3965_v46, %v2322_v36 }
0x3f0b   :  { %v2325_v25 = vsel %vm300_vm15, %v2323_v19, -inf }
0x3f0c   :  { %2326 = vmax.xlane.f32.xlu0 %v2325_v25 }
0x3f7f   :  { %v2327_v10 = vpop.xlane.xlu0 %2326 }
0x3f80   :  { %v3969_v14 = vsub.f32 %v2323_v19, %v2327_v10 }
0x3f82   :  { %vm2329_vm11 = vcmp.eq.f32.partialorder %v3969_v14, 0.0 }
0x3f83   :  { %v2330_v32 = vsel %vm2329_vm11, %v3323_v35, 64 }
0x3f84   :  { %v2331_v16 = vsel %vm300_vm15, %v2330_v32, 2147483647 }
0x3f85   :  { %v2333_v63 = vshra.s32 %v2331_v16, 16  ;;  %v2332_v37 = vand.u32 65535, %v2331_v16 }
0x3f87   :  { %v2335_v24 = vcvt.s32.f32 %v2333_v63  ;;  %v2334_v40 = vcvt.s32.f32 %v2332_v37 }
0x3f89   :  { %2336 = vmin.xlane.f32.xlu2 %v2335_v24 }
0x3f91   :  { %2106 = vadd.xlane.f32.xlu2 %v2105_v2 }
0x3ffc   :  { %v2337_v33 = vpop.xlane.xlu2 %2336 }
0x3ffd   :  { %vm2338_vm1 = vcmp.eq.f32.partialorder %v2335_v24, %v2337_v33  ;;  %v2343_v57 = vcvt.f32.s32 %v2337_v33 }
0x3ffe   :  { %v2339_v43 = vsel %vm2338_vm1, %v2334_v40, inf }
0x3fff   :  { %2340 = vmin.xlane.f32.xlu1 %v2339_v43  ;;  %v2344_v49 = vshll.u32 %v2343_v57, 16 }
0x4004   :  { %v2107_v55 = vpop.xlane.xlu2 %2106 }
0x4005   :  { %2933 = vrcp.f32 %v2107_v55 }
0x400b   :  { %v2934_v1 = vpop.eup %2933 }
0x400c   :  { %2779 = vpush %v2934_v1 }
0x4018   :  { %2433 = vrot.lane.b32.xlu1 %v2410_v38, %s3029_s25 }
0x403d   :  { %s2780_s7 = spop %2779 }
0x403e   :  { %2113 = sst [smem:[#allocation5 + $0x7]] %s2780_s7 }
0x4072   :  { %v2341_v58 = vpop.xlane.xlu1 %2340 }
0x4073   :  { %v2342_v60 = vcvt.f32.s32 %v2341_v58 }
0x4075   :  { %v2345_v62 = vadd.s32 %v2344_v49, %v2342_v60 }
0x4077   :  { %v2346_v12 = vrot.slane %v2345_v62, 4 }
0x4079   :  { %vm2347_vm2 = vcmp.lt.s32.totalorder %v2345_v62, %v2346_v12 }
0x407a   :  { %v2348_v18 = vsel %vm2347_vm2, %v2345_v62, %v2346_v12 }
0x407b   :  { %v2349_v31 = vrot.slane %v2348_v18, 2 }
0x407d   :  { %vm2350_vm3 = vcmp.lt.s32.totalorder %v2348_v18, %v2349_v31 }
0x407e   :  { %v2351_v6 = vsel %vm2350_vm3, %v2348_v18, %v2349_v31 }
0x407f   :  { %v2352_v44 = vrot.slane %v2351_v6, 1 }
0x4081   :  { %vm2353_vm4 = vcmp.lt.s32.totalorder %v2351_v6, %v2352_v44 }
0x4082   :  { %v2354_v3 = vsel %vm2353_vm4, %v2351_v6, %v2352_v44  ;;  %v2356_v44 = vmul.f32 1.442695, %v3969_v14 }
0x4083   :  { %2781 = vpush %v2354_v3 }
0x40b4   :  { %s2782_s9 = spop %2781 }
0x40b5   :  { %2364 = sst [smem:[#allocation3 + $0x8]] %s2782_s9  ;;  %s2367_s18 = scalar_lea.vmem %s4010_s0, %s2782_s9 }
0x40b6   :  { %v2368_v17 = vld [vmem:[%s2367_s18] sm:$0x1] }
0x40b7   :  { %2740 = vmatmul.msk.f32.vlgmr.msrb.gmra.mxu0 %vm72_vm0, %v2368_v17 }
0x4134   :  { %v2389_v23 = vpop.f32.mrf.mxu0 }
0x4135   :  { %v2390_v28 = vadd.f32 %v3910_v54, %v2389_v23  ;;  %v2434_v54 = vpop.permute.xlu1 %2433 }
0x4137   :  { %v2412_v42 = vadd.f32 %v2410_v38, %v2390_v28 }
0x4139   :  { %v2742_v5 = vmul.f32 -1.442695, %v2412_v42 }
0x413b   :  { %2935 = vpow2.f32 %v2742_v5 }
0x4141   :  { %v2936_v26 = vpop.eup %2935 }
0x4142   :  { %v2416_v9 = vadd.f32 1.0, %v2936_v26 }
0x4144   :  { %2937 = vrcp.f32 %v2416_v9  ;;  %v2428_v11 = vand.u32 2147483648, %v2416_v9  ;;  %v2426_v59 = vand.u32 2147483647, %v2416_v9  ;;  %vm2422_vm8 = vweird.f32 %v2416_v9 }
0x4146   :  { %v2429_v47 = vor.u32 1.1754944e-38, %v2428_v11  ;;  %vm2427_vm10 = vcmp.eq.f32.partialorder %v2426_v59, 8.507059e+37 }
0x414a   :  { %v2938_v27 = vpop.eup %2937 }
0x414b   :  { %v2418_v41 = vmul.f32 %v2938_v27, %v2416_v9  ;;  %vm2423_vm7 = vweird.f32 %v2938_v27 }
0x414c   :  { %vm2424_vm9 = vmor %vm2422_vm8, %vm2423_vm7 }
0x414d   :  { %v2419_v7 = vsub.f32 1.0, %v2418_v41 }
0x414f   :  { %v2420_v29 = vmul.f32 %v2938_v27, %v2419_v7 }
0x4151   :  { %v2421_v30 = vadd.f32 %v2938_v27, %v2420_v29 }
0x4153   :  { %v2425_v20 = vsel %vm2424_vm9, %v2938_v27, %v2421_v30 }
0x4154   :  { %v2430_v21 = vsel %vm2427_vm10, %v2429_v47, %v2425_v20 }
0x4155   :  { %v2436_v22 = vmul.f32 %v2434_v54, %v2430_v21  ;;  %v2443_v4 = vsub.f32 1.0, %v2430_v21  ;;  %v2449_v34 = vmul.f32 %v2430_v21, %v3916_v61 }
0x4157   :  { %2438 = vrot.lane.b32.xlu2 %v2436_v22, %s3029_s25 }
0x41b1   :  { %v2439_v39 = vpop.permute.xlu2 %2438 }
0x41b2   :  { %v2441_v13 = vadd.f32 %v2439_v39, %v2390_v28 }
0x41b4   :  { %2939 = vtanh.f32 %v2441_v13 }
0x41ba   :  { %v2940_v0 = vpop.eup %2939 }
0x41bb   :  { %2445 = vrot.lane.b32.xlu0 %v2940_v0, %s3030_s28 }
0x422d   :  { %v2446_v48 = vpop.permute.xlu0 %2445 }
0x422e   :  { %v2448_v45 = vmul.f32 %v2446_v48, %v2443_v4 }
0x4230   :  { %v2450_v50 = vadd.f32 %v2449_v34, %v2448_v45 }
0x4232   :  { %2452 = vrot.lane.b32.xlu1 %v2450_v50, %s3030_s28 }
0x42a4   :  { %v2453_v52 = vpop.permute.xlu1 %2452 }
0x42a5   :  { %2524 = vst.msk [vmem:[#allocation2] sm:$0x1] %vm243_vm5, %v2453_v52  ;;  %2744 = vmatmul.msk.f32.vlgmr.msrb.gmra.mxu2 %vm72_vm0, %v2453_v52 }
0x4328   :  { %v2473_v53 = vpop.f32.mrf.mxu2 }
0x4329   :  { %v2476_v36 = vsel %vm190_vm6, %v2473_v53, -inf }
0x432a   :  { %2477 = vmax.xlane.f32.xlu0 %v2476_v36 }
0x439d   :  { %v2478_v19 = vpop.xlane.xlu0 %2477 }
0x439e   :  { %v2479_v25 = vsub.f32 %v2473_v53, %v2478_v19 }
0x43a0   :  { %v2480_v10 = vmul.f32 1.442695, %v2479_v25 }
0x43a2   :  { %2941 = vpow2.f32 %v2480_v10 }
0x43a8   :  { %v2942_v15 = vpop.eup %2941 }
0x43a9   :  { %v2482_v61 = vsel %vm190_vm6, %v2942_v15, 0.0 }
0x43aa   :  { %2483 = vadd.xlane.f32.xlu2 %v2482_v61 }
0x441d   :  { %v2484_v32 = vpop.xlane.xlu2 %2483 }
0x441e   :  { %2943 = vrcp.f32 %v2484_v32  ;;  %v2496_v8 = vand.u32 2147483648, %v2484_v32  ;;  %v2494_v37 = vand.u32 2147483647, %v2484_v32  ;;  %vm2490_vm11 = vweird.f32 %v2484_v32 }
0x4420   :  { %v2497_v40 = vor.u32 1.1754944e-38, %v2496_v8  ;;  %vm2495_vm2 = vcmp.eq.f32.partialorder %v2494_v37, 8.507059e+37 }
0x4424   :  { %v2944_v16 = vpop.eup %2943 }
0x4425   :  { %v2486_v63 = vmul.f32 %v2944_v16, %v2484_v32  ;;  %vm2491_vm5 = vweird.f32 %v2944_v16 }
0x4426   :  { %vm2492_vm1 = vmor %vm2490_vm11, %vm2491_vm5 }
0x4427   :  { %v2487_v24 = vsub.f32 1.0, %v2486_v63 }
0x4429   :  { %v2488_v2 = vmul.f32 %v2944_v16, %v2487_v24 }
0x442b   :  { %v2489_v33 = vadd.f32 %v2944_v16, %v2488_v2 }
0x442d   :  { %v2493_v43 = vsel %vm2492_vm1, %v2944_v16, %v2489_v33 }
0x442e   :  { %v2498_v55 = vsel %vm2495_vm2, %v2497_v40, %v2493_v43 }
0x442f   :  { %v2499_v1 = vmul.f32 %v2942_v15, %v2498_v55 }
0x4431   :  { %2746 = vmatmul.msk.f32.vlgmr.msra.gmra.mxu0 %vm215_vm12, %v2499_v1 }
0x44ae   :  { %v2520_v56 = vpop.f32.mrf.mxu0 }
0x44af   :  { %2526 = vrot.lane.b32.xlu1 %v2520_v56, %s3031_s13  ;;  %s2625_s13 = sshll.u32 %s4021_s11, 4  ;;  %s2626_s13 = int_to_ptr.hbm [resolvable:$true] %s2625_s13 }
0x4521   :  { %v2527_v38 = vpop.permute.xlu1 %2526 }
0x4522   :  { %2529 = vst.msk [vmem:[#allocation2] sm:$0x1] %vm249_vm13, %v2527_v38 }
0x4529   :  { %v2530_v57 = vld [vmem:[#allocation2] sm:$0x1] }
0x452a   :  { %2747 = vmatmul.msk.f32.vlgmr.msrb.gmra.mxu1 %vm252_vm14, %v2530_v57 }
0x45a7   :  { %v2551_v58 = vpop.f32.mrf.mxu1 }
0x45a8   :  { %v2552_v49 = vadd.f32 %v3958_v51, %v2551_v58 }
0x45aa   :  { %2945 = vtanh.f32 %v2552_v49 }
0x45ab   :  { %2947 = vpow2.f32 %v2356_v44 }
0x45b0   :  { %v2946_v60 = vpop.eup %2945 }
0x45b1   :  { %2748 = vmatmul.msk.f32.vlgmr.msra.gmra.mxu3 %vm72_vm0, %v2946_v60  ;;  %v2948_v28 = vpop.eup %2947 }
0x45b2   :  { %v2358_v42 = vsel %vm300_vm15, %v2948_v28, 0.0 }
0x4634   :  { %v2575_v62 = vpop.f32.mrf.mxu3 }
0x4635   :  { %v2576_v12 = vadd.f32 %v3965_v46, %v2575_v62 }
0x4637   :  { %v2578_v18 = vsel %vm300_vm15, %v2576_v12, -inf }
0x4638   :  { %2579 = vmax.xlane.f32.xlu1 %v2578_v18 }
0x46ab   :  { %v2580_v31 = vpop.xlane.xlu1 %2579 }
0x46ac   :  { %v2581_v6 = vsub.f32 %v2576_v12, %v2580_v31 }
0x46ae   :  { %vm2582_vm6 = vcmp.eq.f32.partialorder %v2581_v6, 0.0  ;;  %v2609_v5 = vmul.f32 1.442695, %v2581_v6 }
0x46af   :  { %v2583_v3 = vsel %vm2582_vm6, %v3323_v35, 64 }
0x46b0   :  { %v2584_v17 = vsel %vm300_vm15, %v2583_v3, 2147483647  ;;  %2949 = vpow2.f32 %v2609_v5 }
0x46b1   :  { %v2586_v51 = vshra.s32 %v2584_v17, 16  ;;  %v2585_v46 = vand.u32 65535, %v2584_v17 }
0x46b3   :  { %v2588_v23 = vcvt.s32.f32 %v2586_v51  ;;  %v2587_v9 = vcvt.s32.f32 %v2585_v46 }
0x46b5   :  { %2589 = vmin.xlane.f32.xlu0 %v2588_v23 }
0x46b6   :  { %v2950_v14 = vpop.eup %2949 }
0x46b7   :  { %v2611_v41 = vsel %vm300_vm15, %v2950_v14, 0.0 }
0x46bd   :  { %2359 = vadd.xlane.f32.xlu0 %v2358_v42 }
0x4728   :  { %v2590_v26 = vpop.xlane.xlu0 %2589 }
0x4729   :  { %vm2591_vm0 = vcmp.eq.f32.partialorder %v2588_v23, %v2590_v26  ;;  %v2596_v11 = vcvt.f32.s32 %v2590_v26 }
0x472a   :  { %v2592_v27 = vsel %vm2591_vm0, %v2587_v9, inf }
0x472b   :  { %2593 = vmin.xlane.f32.xlu2 %v2592_v27  ;;  %v2597_v59 = vshll.u32 %v2596_v11, 16 }
0x4730   :  { %v2360_v35 = vpop.xlane.xlu0 %2359 }
0x4731   :  { %2951 = vrcp.f32 %v2360_v35 }
0x4733   :  { %2612 = vadd.xlane.f32.xlu2 %v2611_v41 }
0x4737   :  { %v2952_v7 = vpop.eup %2951 }
0x4738   :  { %2783 = vpush %v2952_v7 }
0x4769   :  { %s2784_s0 = spop %2783 }
0x476a   :  { %2366 = sst [smem:[#allocation5 + $0x8]] %s2784_s0 }
0x479e   :  { %v2594_v29 = vpop.xlane.xlu2 %2593 }
0x479f   :  { %v2595_v30 = vcvt.f32.s32 %v2594_v29 }
0x47a1   :  { %v2598_v47 = vadd.s32 %v2597_v59, %v2595_v30 }
0x47a3   :  { %v2599_v20 = vrot.slane %v2598_v47, 4 }
0x47a5   :  { %vm2600_vm12 = vcmp.lt.s32.totalorder %v2598_v47, %v2599_v20 }
0x47a6   :  { %v2613_v54 = vpop.xlane.xlu2 %2612  ;;  %v2601_v21 = vsel %vm2600_vm12, %v2598_v47, %v2599_v20 }
0x47a7   :  { %2953 = vrcp.f32 %v2613_v54  ;;  %v2602_v22 = vrot.slane %v2601_v21, 2 }
0x47a9   :  { %vm2603_vm13 = vcmp.lt.s32.totalorder %v2601_v21, %v2602_v22 }
0x47aa   :  { %v2604_v39 = vsel %vm2603_vm13, %v2601_v21, %v2602_v22 }
0x47ab   :  { %v2605_v13 = vrot.slane %v2604_v39, 1 }
0x47ad   :  { %v2954_v0 = vpop.eup %2953  ;;  %vm2606_vm14 = vcmp.lt.s32.totalorder %v2604_v39, %v2605_v13 }
0x47ae   :  { %v2607_v4 = vsel %vm2606_vm14, %v2604_v39, %v2605_v13 }
0x47af   :  { %2785 = vpush %v2607_v4 }
0x47b0   :  { %2787 = vpush %v2954_v0 }
0x47e0   :  { %s2786_s2 = spop %2785 }
0x47e1   :  { %2617 = sst [smem:[#allocation3 + $0x9]] %s2786_s2  ;;  %s2788_s21 = spop %2787 }
0x47e2   :  { %2619 = sst [smem:[#allocation5 + $0x9]] %s2788_s21 }
0x47e3   :  { %2628 = dma.smem_to_hbm %s3032_s5, 16, %s2626_s13, [#allocation4]  }
0x47e4   :  { %2637 = dma.smem_to_hbm %s3033_s22, 16, %s2635_s20, [#allocation6]  }
0x47e5   :  { %3025 = dma.done.wait [#allocation4], 16  }
0x47e6   :  { %3026 = vsyncadd [#allocation4], 4294967280 }
0x47e7   :  { %3027 = dma.done.wait [#allocation6], 16  }
0x47e8   :  { %3028 = vsyncadd [#allocation6], 4294967280 }
0x47e9   :  { %2646 = sfence }
0x47ea   :  { %2647 = vsyncpa [#allocation4], 1 }
0x47eb   :  { %2648 = vsyncpa [#allocation6], 1 }

</bundles_post_ra>
